<compile_context>
chip_gen: v6e
topology: v6e:2x2x1
jax: 0.10.0
libtpu: 0.0.40
codegen_flags: <defaults>
</compile_context>

<pallas_src>
import jax
import jax.numpy as jnp
from jax.experimental import pallas as pl
from jax.experimental.pallas import tpu as pltpu

NUM_CLASSES = 13
INPUT_SIZE = 768
SEQ_LEN = 46                       # smallest length for which Flatten -> 64
BATCH = 2
BLOCK = ((SEQ_LEN + 7) // 8) * 8   # per-batch row block inside the slab (48)


# ----------------------------- kernel ------------------------------------ #

def classifier_kernel(x_ref, w1, b1, w2, b2, w3, b3, w4, b4,
                      wf1, bf1, wf2, bf2, out_ref):
    n = x_ref.shape[0]             # B * BLOCK slab rows
    B = out_ref.shape[0]

    def shift_up(v, k):
        # Row r of the result holds row r+k of v (the wrap-around only lands
        # on rows that are garbage/padding positions).  XLU rotate -> no
        # sublane relayout on the vld/vst path.
        return pltpu.roll(v, (n - k) % n, axis=0)

    def conv_relu(h, w_ref, b_ref, cout, step):
        """Conv1d(k=3, valid) + bias + ReLU on a strided in-place sequence.

        h: (n, Cin); valid samples live every `step` rows inside each 48-row
        batch block.  w_ref: (Cin, 3*cout) bf16 with the 3 taps along N.
        Returns (n, cout) f32 with valid outputs at the same row positions.
        """
        hb = h.astype(jnp.bfloat16)                 # bf16 into MXU, f32 acc
        y = jnp.dot(hb, w_ref[...], preferred_element_type=jnp.float32)
        acc = (y[:, 0:cout]                          # 128-aligned lane slices
               + shift_up(y[:, cout:2 * cout], step)
               + shift_up(y[:, 2 * cout:3 * cout], 2 * step))
        return jnp.maximum(acc + b_ref[...], 0.0)

    def maxpool2(h, step):
        # MaxPool1d(2,2) without compaction: the max of the pair (p, p+1)
        # lands on row(p); the sequence stride doubles to 2*step.
        return jnp.maximum(h, shift_up(h, step))

    h = x_ref[...]                              # (n, 768) bf16, stride 1
    h = conv_relu(h, w1, b1, 256, 1)            # stride 1, 44 valid rows/blk
    h = maxpool2(h, 1)                          # stride 2, 22 valid
    h = conv_relu(h, w2, b2, 128, 2)            # stride 2, 20 valid
    h = maxpool2(h, 2)                          # stride 4, 10 valid
    h = conv_relu(h, w3, b3, 128, 4)            # stride 4,  8 valid (64 real ch)
    h = maxpool2(h, 4)                          # stride 8,  4 valid
    h = conv_relu(h, w4, b4, 128, 8)            # stride 8,  2 valid (32 real ch)

    # Flatten + fc1 (batched over B): time-steps 0/1 of batch b sit at rows
    # b*BLOCK + {0, 8} (both 8-aligned).  PyTorch's channel-major flatten was
    # folded into wf1's per-time-step column blocks at param-prep time.
    blk = n // B
    h0 = jnp.concatenate([h[b * blk:b * blk + 1] for b in range(B)], axis=0)
    h1 = jnp.concatenate([h[b * blk + 8:b * blk + 9] for b in range(B)], axis=0)
    z = (jnp.dot(h0.astype(jnp.bfloat16), wf1[0],
                 preferred_element_type=jnp.float32)
         + jnp.dot(h1.astype(jnp.bfloat16), wf1[1],
                   preferred_element_type=jnp.float32)
         + bf1[...])
    z = jnp.maximum(z, 0.0)                     # (B, 128) f32

    out_ref[...] = (jnp.dot(z.astype(jnp.bfloat16), wf2[...],
                            preferred_element_type=jnp.float32) + bf2[...])


# ----------------------------- wrapper ------------------------------------ #

@jax.jit
def text_classifier_forward(x_ncl, p):
    """x_ncl: (B, 768, 46) float32 (PyTorch NCL).  Returns (B, 13) float32."""
    B = x_ncl.shape[0]
    # NCL -> NLC, pad L to a multiple of 8, cast to bf16 and fold the batch
    # into the matmul M dimension.  One fused XLA copy; bf16 halves input DMA.
    x = jnp.transpose(x_ncl, (0, 2, 1))
    x = jnp.pad(x, ((0, 0), (0, BLOCK - SEQ_LEN), (0, 0)))
    x = x.astype(jnp.bfloat16).reshape(B * BLOCK, INPUT_SIZE)

    n_inputs = 13
    return pl.pallas_call(
        classifier_kernel,
        out_shape=jax.ShapeDtypeStruct((B, NUM_CLASSES), jnp.float32),
        # No grid: one invocation, every weight DMA'd to VMEM exactly once
        # (~1.6 MiB bf16); total footprint ~3 MiB << VMEM on v5e/v6e/v7x.
        in_specs=[pl.BlockSpec(memory_space=pltpu.MemorySpace.VMEM)
                  for _ in range(n_inputs)],
        out_specs=pl.BlockSpec(memory_space=pltpu.MemorySpace.VMEM),
    )(x, p["w1"], p["b1"], p["w2"], p["b2"], p["w3"], p["b3"],
      p["w4"], p["b4"], p["wf1"], p["bf1"], p["wf2"], p["bf2"])


# ------------------- deterministic parameter construction ----------------- #

def init_torch_style_params(key):
    """Parameters in PyTorch shapes: Conv1d (Cout, Cin, K), Linear (Cout, Cin)."""
    ks = jax.random.split(key, 12)

    def conv_w(k, co, ci, ksz):
        return jax.random.normal(k, (co, ci, ksz), jnp.float32) / jnp.sqrt(ci * ksz)

    def lin_w(k, co, ci):
        return jax.random.normal(k, (co, ci), jnp.float32) / jnp.sqrt(ci)

    return dict(
        c1w=conv_w(ks[0], 256, INPUT_SIZE, 3),
        c1b=0.01 * jax.random.normal(ks[1], (256,), jnp.float32),
        c2w=conv_w(ks[2], 128, 256, 3),
        c2b=0.01 * jax.random.normal(ks[3], (128,), jnp.float32),
        c3w=conv_w(ks[4], 64, 128, 3),
        c3b=0.01 * jax.random.normal(ks[5], (64,), jnp.float32),
        c4w=conv_w(ks[6], 32, 64, 3),
        c4b=0.01 * jax.random.normal(ks[7], (32,), jnp.float32),
        f1w=lin_w(ks[8], 128, 64),
        f1b=0.01 * jax.random.normal(ks[9], (128,), jnp.float32),
        f2w=lin_w(ks[10], NUM_CLASSES, 128),
        f2b=0.01 * jax.random.normal(ks[11], (NUM_CLASSES,), jnp.float32),
    )


def to_kernel_params(tp):
    """Re-layout PyTorch-shaped params for the channels-last slab kernel.

    Conv weights: (Cin_pad, 3*Cout_pad) bf16 with taps concatenated along N;
    Cin/Cout padded with zeros to 128-multiples where needed so every lane
    slice in the kernel is 128-aligned.  Biases stay f32 (zero-padded).
    """
    def conv_cat(w, cin_pad, cout_pad):
        co, ci, k = w.shape
        taps = []
        for t in range(k):
            wt = jnp.zeros((cin_pad, cout_pad), jnp.float32)
            wt = wt.at[:ci, :co].set(w[:, :, t].T)
            taps.append(wt)
        return jnp.concatenate(taps, axis=1).astype(jnp.bfloat16)

    def pad_bias(b, cpad):
        return jnp.pad(b, (0, cpad - b.shape[0])).reshape(1, -1).astype(jnp.float32)

    p = {}
    p["w1"] = conv_cat(tp["c1w"], 768, 256); p["b1"] = pad_bias(tp["c1b"], 256)
    p["w2"] = conv_cat(tp["c2w"], 256, 128); p["b2"] = pad_bias(tp["c2b"], 128)
    p["w3"] = conv_cat(tp["c3w"], 128, 128); p["b3"] = pad_bias(tp["c3b"], 128)
    p["w4"] = conv_cat(tp["c4w"], 128, 128); p["b4"] = pad_bias(tp["c4b"], 128)

    # fc1: PyTorch flatten index j = c*2 + l  ->  per-time-step column blocks;
    # Cin padded 32 -> 128 to match the padded conv4 output channels.
    wf1 = jnp.zeros((2, 128, 128), jnp.float32)
    wf1 = wf1.at[0, :32, :].set(tp["f1w"][:, 0::2].T)
    wf1 = wf1.at[1, :32, :].set(tp["f1w"][:, 1::2].T)
    p["wf1"] = wf1.astype(jnp.bfloat16)
    p["bf1"] = tp["f1b"].reshape(1, -1).astype(jnp.float32)
    p["wf2"] = tp["f2w"].T.astype(jnp.bfloat16)            # (128, 13)
    p["bf2"] = tp["f2b"].reshape(1, -1).astype(jnp.float32)
    return p


# ----------------------------- references --------------------------------- #

def reference_forward_f32(x_ncl, tp):
    """Pure-f32 JAX replica of the PyTorch forward (NCL layout)."""
    h = x_ncl.astype(jnp.float32)
    for wk, bk, pool in [("c1w", "c1b", True), ("c2w", "c2b", True),
                         ("c3w", "c3b", True), ("c4w", "c4b", False)]:
        h = jax.lax.conv_general_dilated(
            h, tp[wk], window_strides=(1,), padding="VALID",
            dimension_numbers=("NCH", "OIH", "NCH"))
        h = jnp.maximum(h + tp[bk][None, :, None], 0.0)
        if pool:
            B_, C_, L_ = h.shape
            h = jnp.max(h.reshape(B_, C_, L_ // 2, 2), axis=-1)
    f = h.reshape(h.shape[0], -1)                 # PyTorch Flatten order
    z = jnp.maximum(f @ tp["f1w"].T + tp["f1b"], 0.0)
    return z @ tp["f2w"].T + tp["f2b"]


def reference_forward_bf16(x_ncl, tp):
    """bf16-faithful replica (same roundings as the kernel: bf16 matmul inputs,
    f32 accumulation/elementwise) but WITHOUT the kernel's padding/roll/slab
    tricks — an independent, tight check of those tricks."""
    h = jnp.transpose(x_ncl, (0, 2, 1)).astype(jnp.bfloat16)   # (B, L, Cin)
    for wk, bk, pool in [("c1w", "c1b", True), ("c2w", "c2b", True),
                         ("c3w", "c3b", True), ("c4w", "c4b", False)]:
        w = tp[wk].astype(jnp.bfloat16)                        # (Cout, Cin, 3)
        hb = h.astype(jnp.bfloat16)
        L = hb.shape[1]
        taps = [jnp.einsum("blc,oc->blo", hb, w[:, :, t],
                           preferred_element_type=jnp.float32)
                for t in range(3)]
        acc = taps[0][:, :L - 2] + taps[1][:, 1:L - 1] + taps[2][:, 2:L]
        h = jnp.maximum(acc + tp[bk][None, None, :], 0.0)
        if pool:
            h = jnp.maximum(h[:, 0::2], h[:, 1::2])
    # h: (B, 2, 32) channels-last; PyTorch flattens (B, 32, 2) channel-major.
    f = jnp.transpose(h, (0, 2, 1)).reshape(h.shape[0], -1)    # (B, 64)
    z = jnp.maximum(
        jnp.dot(f.astype(jnp.bfloat16), tp["f1w"].T.astype(jnp.bfloat16),
                preferred_element_type=jnp.float32) + tp["f1b"], 0.0)
    return (jnp.dot(z.astype(jnp.bfloat16), tp["f2w"].T.astype(jnp.bfloat16),
                    preferred_element_type=jnp.float32) + tp["f2b"])


# ------------------------------- main -------------------------------------- #

if __name__ == "__main__":
    key = jax.random.PRNGKey(0)
    k_param, k_x = jax.random.split(key)

    torch_params = init_torch_style_params(k_param)
    kernel_params = to_kernel_params(torch_params)

    x = jax.random.normal(k_x, (BATCH, INPUT_SIZE, SEQ_LEN), jnp.float32)

    out = jax.block_until_ready(text_classifier_forward(x, kernel_params))
    assert out.shape == (BATCH, NUM_CLASSES), out.shape

    # Tight check vs the bf16-faithful reference (validates conv taps, rolls,
    # strided in-place pooling, channel padding and the flatten permutation).
    ref_bf16 = jax.block_until_ready(reference_forward_bf16(x, torch_params))
    if not jnp.allclose(out, ref_bf16, atol=1e-2, rtol=1e-2):
        raise AssertionError(
            f"bf16-ref mismatch: max abs err = {float(jnp.max(jnp.abs(out - ref_bf16)))}")

    # Loose sanity check vs the pure-f32 PyTorch-equivalent reference.
    ref_f32 = jax.block_until_ready(reference_forward_f32(x, torch_params))
    if not jnp.allclose(out, ref_f32, atol=6e-2, rtol=6e-2):
        raise AssertionError(
            f"f32-ref mismatch: max abs err = {float(jnp.max(jnp.abs(out - ref_f32)))}")

    print("KERNEL_OK")
</pallas_src>

<mosaic_0001>
module attributes {stable_mosaic.version = 11 : i64} {
  func.func @classifier_kernel(%arg0: memref<96x768xbf16, #tpu.memory_space<vmem>>, %arg1: memref<768x768xbf16, #tpu.memory_space<vmem>>, %arg2: memref<1x256xf32, #tpu.memory_space<vmem>>, %arg3: memref<256x384xbf16, #tpu.memory_space<vmem>>, %arg4: memref<1x128xf32, #tpu.memory_space<vmem>>, %arg5: memref<128x384xbf16, #tpu.memory_space<vmem>>, %arg6: memref<1x128xf32, #tpu.memory_space<vmem>>, %arg7: memref<128x384xbf16, #tpu.memory_space<vmem>>, %arg8: memref<1x128xf32, #tpu.memory_space<vmem>>, %arg9: memref<2x128x128xbf16, #tpu.memory_space<vmem>>, %arg10: memref<1x128xf32, #tpu.memory_space<vmem>>, %arg11: memref<128x13xbf16, #tpu.memory_space<vmem>>, %arg12: memref<1x13xf32, #tpu.memory_space<vmem>>, %arg13: memref<2x13xf32, #tpu.memory_space<vmem>>) attributes {dimension_semantics = [], scalar_prefetch = 0 : i64, scratch_operands = 0 : i64, tpu.core_type = #tpu.core_type<tc>} {
    %c0 = arith.constant 0 : index
    %c0_0 = arith.constant 0 : index
    %0 = vector.load %arg0[%c0, %c0_0] : memref<96x768xbf16, #tpu.memory_space<vmem>>, vector<96x768xbf16>
    %c0_1 = arith.constant 0 : index
    %c0_2 = arith.constant 0 : index
    %1 = vector.load %arg1[%c0_1, %c0_2] : memref<768x768xbf16, #tpu.memory_space<vmem>>, vector<768x768xbf16>
    %cst = arith.constant dense<0.000000e+00> : vector<96x768xf32>
    %2 = tpu.matmul %0, %1, %cst {dimension_numbers = #tpu.dot_dimension_numbers<[1], [0], [0], [1], [0, 0, 1, 1], [], []>} : vector<96x768xbf16>, vector<768x768xbf16>, vector<96x768xf32> -> vector<96x768xf32>
    %3 = vector.extract_strided_slice %2 {offsets = [0, 0], sizes = [96, 256], strides = [1, 1]} : vector<96x768xf32> to vector<96x256xf32>
    %4 = vector.extract_strided_slice %2 {offsets = [0, 256], sizes = [96, 256], strides = [1, 1]} : vector<96x768xf32> to vector<96x256xf32>
    %c95_i32 = arith.constant 95 : i32
    %5 = tpu.dynamic_rotate %4 by %c95_i32 dim 0 : vector<96x256xf32>, i32 -> vector<96x256xf32>
    %6 = arith.addf %3, %5 : vector<96x256xf32>
    %7 = vector.extract_strided_slice %2 {offsets = [0, 512], sizes = [96, 256], strides = [1, 1]} : vector<96x768xf32> to vector<96x256xf32>
    %c94_i32 = arith.constant 94 : i32
    %8 = tpu.dynamic_rotate %7 by %c94_i32 dim 0 : vector<96x256xf32>, i32 -> vector<96x256xf32>
    %9 = arith.addf %6, %8 : vector<96x256xf32>
    %c0_3 = arith.constant 0 : index
    %c0_4 = arith.constant 0 : index
    %10 = vector.load %arg2[%c0_3, %c0_4] : memref<1x256xf32, #tpu.memory_space<vmem>>, vector<1x256xf32>
    %11 = vector.broadcast %10 : vector<1x256xf32> to vector<96x256xf32>
    %12 = arith.addf %9, %11 : vector<96x256xf32>
    %cst_5 = arith.constant 0.000000e+00 : f32
    %13 = vector.broadcast %cst_5 : f32 to vector<96x256xf32>
    %14 = arith.maximumf %12, %13 : vector<96x256xf32>
    %c95_i32_6 = arith.constant 95 : i32
    %15 = tpu.dynamic_rotate %14 by %c95_i32_6 dim 0 : vector<96x256xf32>, i32 -> vector<96x256xf32>
    %16 = arith.maximumf %14, %15 : vector<96x256xf32>
    %17 = arith.truncf %16 : vector<96x256xf32> to vector<96x256xbf16>
    %c0_7 = arith.constant 0 : index
    %c0_8 = arith.constant 0 : index
    %18 = vector.load %arg3[%c0_7, %c0_8] : memref<256x384xbf16, #tpu.memory_space<vmem>>, vector<256x384xbf16>
    %cst_9 = arith.constant dense<0.000000e+00> : vector<96x384xf32>
    %19 = tpu.matmul %17, %18, %cst_9 {dimension_numbers = #tpu.dot_dimension_numbers<[1], [0], [0], [1], [0, 0, 1, 1], [], []>} : vector<96x256xbf16>, vector<256x384xbf16>, vector<96x384xf32> -> vector<96x384xf32>
    %20 = vector.extract_strided_slice %19 {offsets = [0, 0], sizes = [96, 128], strides = [1, 1]} : vector<96x384xf32> to vector<96x128xf32>
    %21 = vector.extract_strided_slice %19 {offsets = [0, 128], sizes = [96, 128], strides = [1, 1]} : vector<96x384xf32> to vector<96x128xf32>
    %c94_i32_10 = arith.constant 94 : i32
    %22 = tpu.dynamic_rotate %21 by %c94_i32_10 dim 0 : vector<96x128xf32>, i32 -> vector<96x128xf32>
    %23 = arith.addf %20, %22 : vector<96x128xf32>
    %24 = vector.extract_strided_slice %19 {offsets = [0, 256], sizes = [96, 128], strides = [1, 1]} : vector<96x384xf32> to vector<96x128xf32>
    %c92_i32 = arith.constant 92 : i32
    %25 = tpu.dynamic_rotate %24 by %c92_i32 dim 0 : vector<96x128xf32>, i32 -> vector<96x128xf32>
    %26 = arith.addf %23, %25 : vector<96x128xf32>
    %c0_11 = arith.constant 0 : index
    %c0_12 = arith.constant 0 : index
    %27 = vector.load %arg4[%c0_11, %c0_12] : memref<1x128xf32, #tpu.memory_space<vmem>>, vector<1x128xf32>
    %28 = vector.broadcast %27 : vector<1x128xf32> to vector<96x128xf32>
    %29 = arith.addf %26, %28 : vector<96x128xf32>
    %cst_13 = arith.constant 0.000000e+00 : f32
    %30 = vector.broadcast %cst_13 : f32 to vector<96x128xf32>
    %31 = arith.maximumf %29, %30 : vector<96x128xf32>
    %c94_i32_14 = arith.constant 94 : i32
    %32 = tpu.dynamic_rotate %31 by %c94_i32_14 dim 0 : vector<96x128xf32>, i32 -> vector<96x128xf32>
    %33 = arith.maximumf %31, %32 : vector<96x128xf32>
    %34 = arith.truncf %33 : vector<96x128xf32> to vector<96x128xbf16>
    %c0_15 = arith.constant 0 : index
    %c0_16 = arith.constant 0 : index
    %35 = vector.load %arg5[%c0_15, %c0_16] : memref<128x384xbf16, #tpu.memory_space<vmem>>, vector<128x384xbf16>
    %cst_17 = arith.constant dense<0.000000e+00> : vector<96x384xf32>
    %36 = tpu.matmul %34, %35, %cst_17 {dimension_numbers = #tpu.dot_dimension_numbers<[1], [0], [0], [1], [0, 0, 1, 1], [], []>} : vector<96x128xbf16>, vector<128x384xbf16>, vector<96x384xf32> -> vector<96x384xf32>
    %37 = vector.extract_strided_slice %36 {offsets = [0, 0], sizes = [96, 128], strides = [1, 1]} : vector<96x384xf32> to vector<96x128xf32>
    %38 = vector.extract_strided_slice %36 {offsets = [0, 128], sizes = [96, 128], strides = [1, 1]} : vector<96x384xf32> to vector<96x128xf32>
    %c92_i32_18 = arith.constant 92 : i32
    %39 = tpu.dynamic_rotate %38 by %c92_i32_18 dim 0 : vector<96x128xf32>, i32 -> vector<96x128xf32>
    %40 = arith.addf %37, %39 : vector<96x128xf32>
    %41 = vector.extract_strided_slice %36 {offsets = [0, 256], sizes = [96, 128], strides = [1, 1]} : vector<96x384xf32> to vector<96x128xf32>
    %c88_i32 = arith.constant 88 : i32
    %42 = tpu.dynamic_rotate %41 by %c88_i32 dim 0 : vector<96x128xf32>, i32 -> vector<96x128xf32>
    %43 = arith.addf %40, %42 : vector<96x128xf32>
    %c0_19 = arith.constant 0 : index
    %c0_20 = arith.constant 0 : index
    %44 = vector.load %arg6[%c0_19, %c0_20] : memref<1x128xf32, #tpu.memory_space<vmem>>, vector<1x128xf32>
    %45 = vector.broadcast %44 : vector<1x128xf32> to vector<96x128xf32>
    %46 = arith.addf %43, %45 : vector<96x128xf32>
    %cst_21 = arith.constant 0.000000e+00 : f32
    %47 = vector.broadcast %cst_21 : f32 to vector<96x128xf32>
    %48 = arith.maximumf %46, %47 : vector<96x128xf32>
    %c92_i32_22 = arith.constant 92 : i32
    %49 = tpu.dynamic_rotate %48 by %c92_i32_22 dim 0 : vector<96x128xf32>, i32 -> vector<96x128xf32>
    %50 = arith.maximumf %48, %49 : vector<96x128xf32>
    %51 = arith.truncf %50 : vector<96x128xf32> to vector<96x128xbf16>
    %c0_23 = arith.constant 0 : index
    %c0_24 = arith.constant 0 : index
    %52 = vector.load %arg7[%c0_23, %c0_24] : memref<128x384xbf16, #tpu.memory_space<vmem>>, vector<128x384xbf16>
    %cst_25 = arith.constant dense<0.000000e+00> : vector<96x384xf32>
    %53 = tpu.matmul %51, %52, %cst_25 {dimension_numbers = #tpu.dot_dimension_numbers<[1], [0], [0], [1], [0, 0, 1, 1], [], []>} : vector<96x128xbf16>, vector<128x384xbf16>, vector<96x384xf32> -> vector<96x384xf32>
    %54 = vector.extract_strided_slice %53 {offsets = [0, 0], sizes = [96, 128], strides = [1, 1]} : vector<96x384xf32> to vector<96x128xf32>
    %55 = vector.extract_strided_slice %53 {offsets = [0, 128], sizes = [96, 128], strides = [1, 1]} : vector<96x384xf32> to vector<96x128xf32>
    %c88_i32_26 = arith.constant 88 : i32
    %56 = tpu.dynamic_rotate %55 by %c88_i32_26 dim 0 : vector<96x128xf32>, i32 -> vector<96x128xf32>
    %57 = arith.addf %54, %56 : vector<96x128xf32>
    %58 = vector.extract_strided_slice %53 {offsets = [0, 256], sizes = [96, 128], strides = [1, 1]} : vector<96x384xf32> to vector<96x128xf32>
    %c80_i32 = arith.constant 80 : i32
    %59 = tpu.dynamic_rotate %58 by %c80_i32 dim 0 : vector<96x128xf32>, i32 -> vector<96x128xf32>
    %60 = arith.addf %57, %59 : vector<96x128xf32>
    %c0_27 = arith.constant 0 : index
    %c0_28 = arith.constant 0 : index
    %61 = vector.load %arg8[%c0_27, %c0_28] : memref<1x128xf32, #tpu.memory_space<vmem>>, vector<1x128xf32>
    %62 = vector.broadcast %61 : vector<1x128xf32> to vector<96x128xf32>
    %63 = arith.addf %60, %62 : vector<96x128xf32>
    %cst_29 = arith.constant 0.000000e+00 : f32
    %64 = vector.broadcast %cst_29 : f32 to vector<96x128xf32>
    %65 = arith.maximumf %63, %64 : vector<96x128xf32>
    %66 = vector.extract_strided_slice %65 {offsets = [0, 0], sizes = [1, 128], strides = [1, 1]} : vector<96x128xf32> to vector<1x128xf32>
    %67 = vector.extract_strided_slice %65 {offsets = [48, 0], sizes = [1, 128], strides = [1, 1]} : vector<96x128xf32> to vector<1x128xf32>
    %68 = tpu.concatenate %66, %67 in 0 : vector<1x128xf32>, vector<1x128xf32> -> vector<2x128xf32>
    %69 = vector.extract_strided_slice %65 {offsets = [8, 0], sizes = [1, 128], strides = [1, 1]} : vector<96x128xf32> to vector<1x128xf32>
    %70 = vector.extract_strided_slice %65 {offsets = [56, 0], sizes = [1, 128], strides = [1, 1]} : vector<96x128xf32> to vector<1x128xf32>
    %71 = tpu.concatenate %69, %70 in 0 : vector<1x128xf32>, vector<1x128xf32> -> vector<2x128xf32>
    %72 = arith.truncf %68 : vector<2x128xf32> to vector<2x128xbf16>
    %c0_30 = arith.constant 0 : index
    %c0_31 = arith.constant 0 : index
    %c0_32 = arith.constant 0 : index
    %73 = vector.load %arg9[%c0_30, %c0_31, %c0_32] : memref<2x128x128xbf16, #tpu.memory_space<vmem>>, vector<1x128x128xbf16>
    %74 = vector.shape_cast %73 : vector<1x128x128xbf16> to vector<128x128xbf16>
    %cst_33 = arith.constant dense<0.000000e+00> : vector<2x128xf32>
    %75 = tpu.matmul %72, %74, %cst_33 {dimension_numbers = #tpu.dot_dimension_numbers<[1], [0], [0], [1], [0, 0, 1, 1], [], []>} : vector<2x128xbf16>, vector<128x128xbf16>, vector<2x128xf32> -> vector<2x128xf32>
    %76 = arith.truncf %71 : vector<2x128xf32> to vector<2x128xbf16>
    %c1 = arith.constant 1 : index
    %c0_34 = arith.constant 0 : index
    %c0_35 = arith.constant 0 : index
    %77 = vector.load %arg9[%c1, %c0_34, %c0_35] : memref<2x128x128xbf16, #tpu.memory_space<vmem>>, vector<1x128x128xbf16>
    %78 = vector.shape_cast %77 : vector<1x128x128xbf16> to vector<128x128xbf16>
    %cst_36 = arith.constant dense<0.000000e+00> : vector<2x128xf32>
    %79 = tpu.matmul %76, %78, %cst_36 {dimension_numbers = #tpu.dot_dimension_numbers<[1], [0], [0], [1], [0, 0, 1, 1], [], []>} : vector<2x128xbf16>, vector<128x128xbf16>, vector<2x128xf32> -> vector<2x128xf32>
    %80 = arith.addf %75, %79 : vector<2x128xf32>
    %c0_37 = arith.constant 0 : index
    %c0_38 = arith.constant 0 : index
    %81 = vector.load %arg10[%c0_37, %c0_38] : memref<1x128xf32, #tpu.memory_space<vmem>>, vector<1x128xf32>
    %82 = vector.broadcast %81 : vector<1x128xf32> to vector<2x128xf32>
    %83 = arith.addf %80, %82 : vector<2x128xf32>
    %cst_39 = arith.constant 0.000000e+00 : f32
    %84 = vector.broadcast %cst_39 : f32 to vector<2x128xf32>
    %85 = arith.maximumf %83, %84 : vector<2x128xf32>
    %86 = arith.truncf %85 : vector<2x128xf32> to vector<2x128xbf16>
    %c0_40 = arith.constant 0 : index
    %c0_41 = arith.constant 0 : index
    %87 = vector.load %arg11[%c0_40, %c0_41] : memref<128x13xbf16, #tpu.memory_space<vmem>>, vector<128x13xbf16>
    %cst_42 = arith.constant dense<0.000000e+00> : vector<2x13xf32>
    %88 = tpu.matmul %86, %87, %cst_42 {dimension_numbers = #tpu.dot_dimension_numbers<[1], [0], [0], [1], [0, 0, 1, 1], [], []>} : vector<2x128xbf16>, vector<128x13xbf16>, vector<2x13xf32> -> vector<2x13xf32>
    %c0_43 = arith.constant 0 : index
    %c0_44 = arith.constant 0 : index
    %89 = vector.load %arg12[%c0_43, %c0_44] : memref<1x13xf32, #tpu.memory_space<vmem>>, vector<1x13xf32>
    %90 = vector.broadcast %89 : vector<1x13xf32> to vector<2x13xf32>
    %91 = arith.addf %88, %90 : vector<2x13xf32>
    %c0_45 = arith.constant 0 : index
    %c0_46 = arith.constant 0 : index
    %92 = vector.load %arg13[%c0_45, %c0_46] : memref<2x13xf32, #tpu.memory_space<vmem>>, vector<2x13xf32>
    tpu.vector_store %arg13[%c0_45, %c0_46], %91 {strides = array<i32>} : memref<2x13xf32, #tpu.memory_space<vmem>>, vector<2x13xf32>,
    return
  }
}

</mosaic_0001>

<bundles_post_ra>
// kernel: text_classifier_forward.1
= control target key start
LH: loop header
LB: loop body
LE: loop exit
PB: predicated region body
PF: predicated region fallthrough
CT: control target
= control target key end

     0   :  { %18 = vsyncpa [#allocation3], 0  ;;  %s8368_s0 = inlined_call_operand.vmem [shape: bf16[96,768], index: 0, kind: input, shape index: {}]   ;;  %s8369_s1 = inlined_call_operand.hbm [shape: bf16[768,768], index: 1, kind: input, shape index: {}]   ;;  %s8370_s2 = inlined_call_operand.hbm [shape: f32[1,256], index: 2, kind: input, shape index: {}]   ;;  %s8371_s3 = inlined_call_operand.vmem [shape: bf16[256,384], index: 3, kind: input, shape index: {}]   ;;  %s8372_s4 = inlined_call_operand.hbm [shape: f32[1,128], index: 4, kind: input, shape index: {}]   ;;  %s8373_s5 = inlined_call_operand.hbm [shape: bf16[128,384], index: 5, kind: input, shape index: {}]   ;;  %s8374_s6 = inlined_call_operand.hbm [shape: f32[1,128], index: 6, kind: input, shape index: {}]   ;;  %s8375_s7 = inlined_call_operand.hbm [shape: bf16[128,384], index: 7, kind: input, shape index: {}]   ;;  %s8376_s8 = inlined_call_operand.hbm [shape: f32[1,128], index: 8, kind: input, shape index: {}]   ;;  %s8377_s9 = inlined_call_operand.hbm [shape: bf16[2,128,128], index: 9, kind: input, shape index: {}]   ;;  %s8378_s10 = inlined_call_operand.hbm [shape: f32[1,128], index: 10, kind: input, shape index: {}]   ;;  %s8379_s11 = inlined_call_operand.vmem [shape: bf16[128,13], index: 11, kind: input, shape index: {}]   ;;  %s8380_s12 = inlined_call_operand.hbm [shape: f32[1,13], index: 12, kind: input, shape index: {}]   ;;  %s8381_s13 = inlined_call_operand.hbm [shape: f32[2,13], index: 13, kind: output, shape index: {}]  }
   0x1   :  { %19 = vsyncpa [#allocation6], 0 }
   0x2   :  { %20 = vsyncpa [#allocation9], 0 }
   0x3   :  { %21 = vsyncpa [#allocation12], 0 }
   0x4   :  { %22 = vsyncpa [#allocation15], 0 }
   0x5   :  { %23 = vsyncpa [#allocation18], 0 }
   0x6   :  { %24 = vsyncpa [#allocation4], 0  ;;  %s6634_s25 = smov [#allocation5]   ;;  %s6635_s27 = smov [#allocation8]  }
   0x7   :  { %s45_s26 = sshll.u32 %s6634_s25, 4  ;;  %s66_s28 = sshll.u32 %s6635_s27, 4  ;;  %s46_s26 = int_to_ptr.vmem [resolvable:$true] %s45_s26  ;;  %s67_s28 = int_to_ptr.vmem [resolvable:$true] %s66_s28 }
   0x8   :  { %s6408_s29 = scalar_lea.vmem %s46_s26, 32  ;;  %p6413_p1 = scmp.lt.s32.totalorder %s46_s26, %s46_s26 }
   0x9   :  { %p6409_p0 = scmp.ne.s32.totalorder %s46_s26, %s6408_s29  ;;  %p6414_p2 = scmp.lt.s32.totalorder %s6408_s29, %s6408_s29 }
   0xb   :  { %p6415_p3 = por %p6414_p2, %p6413_p1 }
   0xd   :  { %p6416_p4 = pnand %p6415_p3, %p6409_p0 }
   0xf   :  { %6419 = shalt.err (!%p6416_p4)
}
  0x10   :  { %48 = dma.hbm_to_vmem [thread:$0]  %s8370_s2, 32, %s46_s26, [#allocation6]  }
  0x11   :  { %s6428_s15 = scalar_lea.vmem %s67_s28, 3072  ;;  %p6433_p6 = scmp.lt.s32.totalorder %s67_s28, %s67_s28 }
  0x12   :  { %p6429_p5 = scmp.ne.s32.totalorder %s67_s28, %s6428_s15  ;;  %p6434_p7 = scmp.lt.s32.totalorder %s6428_s15, %s6428_s15 }
  0x14   :  { %p6435_p8 = por %p6434_p7, %p6433_p6 }
  0x16   :  { %p6436_p9 = pnand %p6435_p8, %p6429_p5 }
  0x18   :  { %6439 = shalt.err (!%p6436_p9)
}
  0x19   :  { %s6636_s16 = smov 192   ;;  %s6637_s17 = smov 12  }
  0x1a   :  { %72 = dma.hbm_to_vmem [thread:$0]  %s8373_s5, 3072, %s67_s28, [#allocation9], %s6636_s16, %s6636_s16, %s6637_s17  }
  0x1b   :  { %s6638_s20 = smov [#allocation11]   ;;  %s6639_s22 = smov [#allocation14]  }
  0x1c   :  { %s88_s21 = sshll.u32 %s6638_s20, 4  ;;  %s110_s23 = sshll.u32 %s6639_s22, 4  ;;  %s89_s21 = int_to_ptr.vmem [resolvable:$true] %s88_s21  ;;  %s111_s23 = int_to_ptr.vmem [resolvable:$true] %s110_s23 }
  0x1d   :  { %s6448_s2 = scalar_lea.vmem %s89_s21, 3072  ;;  %p6453_p11 = scmp.lt.s32.totalorder %s89_s21, %s89_s21 }
  0x1e   :  { %p6449_p10 = scmp.ne.s32.totalorder %s89_s21, %s6448_s2  ;;  %p6454_p12 = scmp.lt.s32.totalorder %s6448_s2, %s6448_s2 }
  0x20   :  { %p6455_p13 = por %p6454_p12, %p6453_p11 }
  0x22   :  { %p6456_p0 = pnand %p6455_p13, %p6449_p10 }
  0x24   :  { %6459 = shalt.err (!%p6456_p0)
}
  0x25   :  { %94 = dma.hbm_to_vmem [thread:$0]  %s8375_s7, 3072, %s89_s21, [#allocation12], %s6636_s16, %s6636_s16, %s6637_s17  }
  0x26   :  { %s6468_s26 = scalar_lea.vmem %s111_s23, 2048  ;;  %p6473_p2 = scmp.lt.s32.totalorder %s111_s23, %s111_s23 }
  0x27   :  { %p6469_p1 = scmp.ne.s32.totalorder %s111_s23, %s6468_s26  ;;  %p6474_p3 = scmp.lt.s32.totalorder %s6468_s26, %s6468_s26 }
  0x29   :  { %p6475_p4 = por %p6474_p3, %p6473_p2 }
  0x2b   :  { %p6476_p5 = pnand %p6475_p4, %p6469_p1 }
  0x2d   :  { %6479 = shalt.err (!%p6476_p5)
}
  0x2e   :  { %s6640_s5 = smov 64   ;;  %s6641_s27 = smov 4  }
  0x2f   :  { %116 = dma.hbm_to_vmem [thread:$0]  %s8377_s9, 2048, %s111_s23, [#allocation15], %s6640_s5, %s6640_s5, %s6641_s27  }
  0x30   :  { %s6642_s30 = smov [#allocation2]  }
  0x31   :  { %s32_s14 = sshll.u32 %s6642_s30, 4  ;;  %s33_s14 = int_to_ptr.vmem [resolvable:$true] %s32_s14 }
  0x32   :  { %s6488_s15 = scalar_lea.vmem %s33_s14, 36864  ;;  %p6493_p7 = scmp.lt.s32.totalorder %s33_s14, %s33_s14 }
  0x33   :  { %p6489_p6 = scmp.ne.s32.totalorder %s33_s14, %s6488_s15  ;;  %p6494_p8 = scmp.lt.s32.totalorder %s6488_s15, %s6488_s15 }
  0x35   :  { %p6495_p9 = por %p6494_p8, %p6493_p7 }
  0x37   :  { %p6496_p10 = pnand %p6495_p9, %p6489_p6 }
  0x39   :  { %6499 = shalt.err (!%p6496_p10)
}
  0x3a   :  { %s6643_s7 = smov 384   ;;  %s6644_s16 = smov 24  }
  0x3b   :  { %38 = dma.hbm_to_vmem [thread:$0]  %s8369_s1, 36864, %s33_s14, [#allocation3], %s6643_s7, %s6643_s7, %s6644_s16  }
  0x3c   :  { %s6645_s19 = smov [#allocation7]   ;;  %s6646_s9 = smov [#allocation10]  }
  0x3d   :  { %s57_s20 = sshll.u32 %s6645_s19, 4  ;;  %s79_s21 = sshll.u32 %s6646_s9, 4  ;;  %s58_s20 = int_to_ptr.vmem [resolvable:$true] %s57_s20  ;;  %s80_s21 = int_to_ptr.vmem [resolvable:$true] %s79_s21 }
  0x3e   :  { %s6508_s22 = scalar_lea.vmem %s58_s20, 16  ;;  %s6512_s23 = scalar_lea.vmem %s58_s20, 32 }
  0x3f   :  { %p6509_p11 = scmp.ne.s32.totalorder %s58_s20, %s6508_s22  ;;  %p6513_p12 = scmp.lt.s32.totalorder %s58_s20, %s58_s20 }
  0x40   :  { %p6514_p13 = scmp.lt.s32.totalorder %s6512_s23, %s6508_s22 }
  0x42   :  { %p6515_p0 = por %p6514_p13, %p6513_p12 }
  0x44   :  { %p6516_p1 = pnand %p6515_p0, %p6509_p11 }
  0x46   :  { %6519 = shalt.err (!%p6516_p1)
}
  0x47   :  { %60 = dma.hbm_to_vmem [thread:$0]  %s8372_s4, 16, %s58_s20, [#allocation6]  }
  0x48   :  { %s6528_s25 = scalar_lea.vmem %s80_s21, 16  ;;  %s6532_s1 = scalar_lea.vmem %s80_s21, 32 }
  0x49   :  { %p6529_p2 = scmp.ne.s32.totalorder %s80_s21, %s6528_s25  ;;  %p6533_p3 = scmp.lt.s32.totalorder %s80_s21, %s80_s21 }
  0x4a   :  { %p6534_p4 = scmp.lt.s32.totalorder %s6532_s1, %s6528_s25 }
  0x4c   :  { %p6535_p5 = por %p6534_p4, %p6533_p3 }
  0x4e   :  { %p6536_p6 = pnand %p6535_p5, %p6529_p2 }
  0x50   :  { %6539 = shalt.err (!%p6536_p6)
}
  0x51   :  { %82 = dma.hbm_to_vmem [thread:$0]  %s8374_s6, 16, %s80_s21, [#allocation9]  }
  0x52   :  { %s6647_s27 = smov [#allocation13]   ;;  %s6648_s29 = smov [#allocation16]  }
  0x53   :  { %s101_s28 = sshll.u32 %s6647_s27, 4  ;;  %s123_s30 = sshll.u32 %s6648_s29, 4  ;;  %s102_s28 = int_to_ptr.vmem [resolvable:$true] %s101_s28  ;;  %s124_s30 = int_to_ptr.vmem [resolvable:$true] %s123_s30 }
  0x54   :  { %s6548_s14 = scalar_lea.vmem %s102_s28, 16  ;;  %s6552_s4 = scalar_lea.vmem %s102_s28, 32 }
  0x55   :  { %p6549_p7 = scmp.ne.s32.totalorder %s102_s28, %s6548_s14  ;;  %p6553_p8 = scmp.lt.s32.totalorder %s102_s28, %s102_s28 }
  0x56   :  { %p6554_p9 = scmp.lt.s32.totalorder %s6552_s4, %s6548_s14 }
  0x58   :  { %p6555_p10 = por %p6554_p9, %p6553_p8 }
  0x5a   :  { %p6556_p11 = pnand %p6555_p10, %p6549_p7 }
  0x5c   :  { %6559 = shalt.err (!%p6556_p11)
}
  0x5d   :  { %104 = dma.hbm_to_vmem [thread:$0]  %s8376_s8, 16, %s102_s28, [#allocation12]  }
  0x5e   :  { %s6568_s16 = scalar_lea.vmem %s124_s30, 16  ;;  %s6572_s6 = scalar_lea.vmem %s124_s30, 32 }
  0x5f   :  { %p6569_p12 = scmp.ne.s32.totalorder %s124_s30, %s6568_s16  ;;  %p6573_p13 = scmp.lt.s32.totalorder %s124_s30, %s124_s30 }
  0x60   :  { %p6574_p0 = scmp.lt.s32.totalorder %s6572_s6, %s6568_s16 }
  0x62   :  { %p6575_p1 = por %p6574_p0, %p6573_p13 }
  0x64   :  { %p6576_p2 = pnand %p6575_p1, %p6569_p12 }
  0x66   :  { %6579 = shalt.err (!%p6576_p2)
}
  0x67   :  { %126 = dma.hbm_to_vmem [thread:$0]  %s8378_s10, 16, %s124_s30, [#allocation15]  }
  0x68   :  { %s6649_s19 = smov [#allocation17]  }
  0x69   :  { %s135_s20 = sshll.u32 %s6649_s19, 4  ;;  %s136_s20 = int_to_ptr.vmem [resolvable:$true] %s135_s20 }
  0x6a   :  { %s6588_s9 = scalar_lea.vmem %s136_s20, 16  ;;  %s6592_s21 = scalar_lea.vmem %s136_s20, 32 }
  0x6b   :  { %p6589_p3 = scmp.ne.s32.totalorder %s136_s20, %s6588_s9  ;;  %p6593_p4 = scmp.lt.s32.totalorder %s136_s20, %s136_s20 }
  0x6c   :  { %p6594_p5 = scmp.lt.s32.totalorder %s6592_s21, %s6588_s9 }
  0x6e   :  { %p6595_p6 = por %p6594_p5, %p6593_p4 }
  0x70   :  { %p6596_p7 = pnand %p6595_p6, %p6589_p3 }
  0x72   :  { %6599 = shalt.err (!%p6596_p7)
}
  0x73   :  { %138 = dma.hbm_to_vmem [thread:$0]  %s8380_s12, 16, %s136_s20, [#allocation18]  }
  0x74   :  { %6620 = dma.done.wait [#allocation3], 36864  }
  0x75   :  { %6621 = vsyncadd [#allocation3], 4294930432 }
  0x76   :  { %6622 = dma.done.wait [#allocation6], 48  }
  0x77   :  { %6623 = vsyncadd [#allocation6], 4294967248 }
  0x78   :  { %6624 = dma.done.wait [#allocation9], 3088  }
  0x79   :  { %6625 = vsyncadd [#allocation9], 4294964208 }
  0x7a   :  { %6626 = dma.done.wait [#allocation12], 3088  }
  0x7b   :  { %6627 = vsyncadd [#allocation12], 4294964208 }
  0x7c   :  { %6628 = dma.done.wait [#allocation15], 2064  }
  0x7d   :  { %6629 = vsyncadd [#allocation15], 4294965232 }
  0x7e   :  { %6630 = dma.done.wait [#allocation18], 16  }
  0x7f   :  { %6631 = vsyncadd [#allocation18], 4294967280  ;;  %v5726_v0 = vld [vmem:[#allocation2 + $0x154] ss:$24 sps:$4 sm:$0xff]   ;;  %v5730_v2 = vld [vmem:[#allocation2 + $0x150] ss:$24 sps:$4 sm:$0xff]  }
  0x80   :  { %v5728_v1 = vld [vmem:[#allocation2 + $0x454] ss:$24 sps:$4 sm:$0xff]   ;;  %2114 = vmatprep.subr.bf16.mxu0 %v5726_v0  ;;  %v5731_v3 = vld [vmem:[#allocation2 + $0x450] ss:$24 sps:$4 sm:$0xff]   ;;  %v5732_v4 = vld [vmem:[#allocation2 + $0x124] ss:$24 sps:$4 sm:$0xff]  }
  0x81   :  { %2207 = vmatprep.subr.bf16.mxu1 %v5728_v1  ;;  %2115 = vmatpush1.bf16.msra.mxu0 %v5730_v2  ;;  %v5734_v5 = vld [vmem:[#allocation2 + $0x424] ss:$24 sps:$4 sm:$0xff]   ;;  %v5736_v6 = vld [vmem:[#allocation2 + $0x120] ss:$24 sps:$4 sm:$0xff]   ;;  %v5738_v8 = vld [vmem:[#allocation2 + $0xf4] ss:$24 sps:$4 sm:$0xff]  }
  0x82   :  { %2208 = vmatpush1.bf16.msra.mxu1 %v5731_v3  ;;  %2116 = vmatprep.subr.bf16.mxu0 %v5732_v4  ;;  %v5737_v7 = vld [vmem:[#allocation2 + $0x420] ss:$24 sps:$4 sm:$0xff]   ;;  %v5740_v9 = vld [vmem:[#allocation2 + $0x3f4] ss:$24 sps:$4 sm:$0xff]   ;;  %v5742_v10 = vld [vmem:[#allocation2 + $0xf0] ss:$24 sps:$4 sm:$0xff]  }
  0x83   :  { %2209 = vmatprep.subr.bf16.mxu1 %v5734_v5  ;;  %v5743_v11 = vld [vmem:[#allocation2 + $0x3f0] ss:$24 sps:$4 sm:$0xff]   ;;  %v5744_v12 = vld [vmem:[#allocation2 + $0xc4] ss:$24 sps:$4 sm:$0xff]   ;;  %v5748_v14 = vld [vmem:[#allocation2 + $0xc0] ss:$24 sps:$4 sm:$0xff]  }
  0x84   :  { %v5746_v13 = vld [vmem:[#allocation2 + $0x3c4] ss:$24 sps:$4 sm:$0xff]   ;;  %v5749_v15 = vld [vmem:[#allocation2 + $0x3c0] ss:$24 sps:$4 sm:$0xff]   ;;  %v5750_v16 = vld [vmem:[#allocation2 + $0x94] ss:$24 sps:$4 sm:$0xff]  }
  0x85   :  { %2117 = vmatpush1.bf16.msra.mxu0 %v5736_v6  ;;  %v5752_v17 = vld [vmem:[#allocation2 + $0x394] ss:$24 sps:$4 sm:$0xff]   ;;  %v5754_v18 = vld [vmem:[#allocation2 + $0x90] ss:$24 sps:$4 sm:$0xff]   ;;  %v5756_v20 = vld [vmem:[#allocation2 + $0x64] ss:$24 sps:$4 sm:$0xff]  }
  0x86   :  { %2210 = vmatpush1.bf16.msra.mxu1 %v5737_v7  ;;  %2118 = vmatprep.subr.bf16.mxu0 %v5738_v8  ;;  %v5755_v19 = vld [vmem:[#allocation2 + $0x390] ss:$24 sps:$4 sm:$0xff]   ;;  %v5758_v21 = vld [vmem:[#allocation2 + $0x364] ss:$24 sps:$4 sm:$0xff]   ;;  %v5760_v22 = vld [vmem:[#allocation2 + $0x60] ss:$24 sps:$4 sm:$0xff]  }
  0x87   :  { %2211 = vmatprep.subr.bf16.mxu1 %v5740_v9  ;;  %v5761_v23 = vld [vmem:[#allocation2 + $0x360] ss:$24 sps:$4 sm:$0xff]   ;;  %v5762_v24 = vld [vmem:[#allocation2 + $0x34] ss:$24 sps:$4 sm:$0xff]   ;;  %v5766_v26 = vld [vmem:[#allocation2 + $0x30] ss:$24 sps:$4 sm:$0xff]  }
  0x88   :  { %v5764_v25 = vld [vmem:[#allocation2 + $0x334] ss:$24 sps:$4 sm:$0xff]   ;;  %v5767_v27 = vld [vmem:[#allocation2 + $0x330] ss:$24 sps:$4 sm:$0xff]   ;;  %v5768_v28 = vld [vmem:[#allocation2 + $0x4] ss:$24 sps:$4 sm:$0xff]  }
  0x89   :  { %2119 = vmatpush1.bf16.msra.mxu0 %v5742_v10  ;;  %v5770_v29 = vld [vmem:[#allocation2 + $0x304] ss:$24 sps:$4 sm:$0xff]   ;;  %v5772_v30 = vld [vmem:[#allocation2] ss:$24 sps:$4 sm:$0xff]   ;;  %v5774_v32 = vld [vmem:[#allocation2 + $0x2d4] ss:$24 sps:$4 sm:$0xff]  }
  0x8a   :  { %2212 = vmatpush1.bf16.msra.mxu1 %v5743_v11  ;;  %2120 = vmatprep.subr.bf16.mxu0 %v5744_v12  ;;  %v5773_v31 = vld [vmem:[#allocation2 + $0x300] ss:$24 sps:$4 sm:$0xff]   ;;  %v5776_v33 = vld [vmem:[#allocation2 + $0x5d4] ss:$24 sps:$4 sm:$0xff]   ;;  %v5778_v34 = vld [vmem:[#allocation2 + $0x2d0] ss:$24 sps:$4 sm:$0xff]  }
  0x8b   :  { %2213 = vmatprep.subr.bf16.mxu1 %v5746_v13  ;;  %v5779_v35 = vld [vmem:[#allocation2 + $0x5d0] ss:$24 sps:$4 sm:$0xff]   ;;  %v5780_v36 = vld [vmem:[#allocation2 + $0x2a4] ss:$24 sps:$4 sm:$0xff]   ;;  %v5784_v38 = vld [vmem:[#allocation2 + $0x2a0] ss:$24 sps:$4 sm:$0xff]  }
  0x8c   :  { %v5782_v37 = vld [vmem:[#allocation2 + $0x5a4] ss:$24 sps:$4 sm:$0xff]   ;;  %v5785_v39 = vld [vmem:[#allocation2 + $0x5a0] ss:$24 sps:$4 sm:$0xff]   ;;  %v5786_v40 = vld [vmem:[#allocation2 + $0x274] ss:$24 sps:$4 sm:$0xff]  }
  0x8d   :  { %2121 = vmatpush1.bf16.msra.mxu0 %v5748_v14  ;;  %v5788_v41 = vld [vmem:[#allocation2 + $0x574] ss:$24 sps:$4 sm:$0xff]   ;;  %v5790_v42 = vld [vmem:[#allocation2 + $0x270] ss:$24 sps:$4 sm:$0xff]   ;;  %v5792_v44 = vld [vmem:[#allocation2 + $0x244] ss:$24 sps:$4 sm:$0xff]  }
  0x8e   :  { %2214 = vmatpush1.bf16.msra.mxu1 %v5749_v15  ;;  %2122 = vmatprep.subr.bf16.mxu0 %v5750_v16  ;;  %v5791_v43 = vld [vmem:[#allocation2 + $0x570] ss:$24 sps:$4 sm:$0xff]   ;;  %v5794_v45 = vld [vmem:[#allocation2 + $0x544] ss:$24 sps:$4 sm:$0xff]   ;;  %v5796_v46 = vld [vmem:[#allocation2 + $0x240] ss:$24 sps:$4 sm:$0xff]  }
  0x8f   :  { %2215 = vmatprep.subr.bf16.mxu1 %v5752_v17  ;;  %v5797_v47 = vld [vmem:[#allocation2 + $0x540] ss:$24 sps:$4 sm:$0xff]   ;;  %v6757_v48 = vld [vmem:[%s8368_s0 + $0x4] ss:$24 sps:$4 sm:$0xff]   ;;  %v5798_v49 = vld [vmem:[#allocation2 + $0x214] ss:$24 sps:$4 sm:$0xff]  }
  0x90   :  { %v5824_v50 = vld [vmem:[%s8368_s0 + $0xc] ss:$24 sps:$4 sm:$0xff]   ;;  %2146 = vmatprep.mubr.bf16.mxu0 %v6757_v48  ;;  %v5802_v52 = vld [vmem:[#allocation2 + $0x210] ss:$24 sps:$4 sm:$0xff]   ;;  %v5808_v56 = vld [vmem:[#allocation2 + $0x1e0] ss:$24 sps:$4 sm:$0xff]  }
  0x91   :  { %2123 = vmatpush1.bf16.msra.mxu0 %v5754_v18  ;;  %v5800_v51 = vld [vmem:[#allocation2 + $0x514] ss:$24 sps:$4 sm:$0xff]   ;;  %2239 = vmatprep.mubr.bf16.mxu1 %v5824_v50  ;;  %v5803_v53 = vld [vmem:[#allocation2 + $0x510] ss:$24 sps:$4 sm:$0xff]   ;;  %v5804_v54 = vld [vmem:[#allocation2 + $0x1e4] ss:$24 sps:$4 sm:$0xff]  }
  0x92   :  { %2216 = vmatpush1.bf16.msra.mxu1 %v5755_v19  ;;  %2124 = vmatprep.subr.bf16.mxu0 %v5756_v20  ;;  %v5806_v55 = vld [vmem:[#allocation2 + $0x4e4] ss:$24 sps:$4 sm:$0xff]   ;;  %v5809_v57 = vld [vmem:[#allocation2 + $0x4e0] ss:$24 sps:$4 sm:$0xff]   ;;  %v5810_v58 = vld [vmem:[#allocation2 + $0x1b4] ss:$24 sps:$4 sm:$0xff]  }
  0x93   :  { %2217 = vmatprep.subr.bf16.mxu1 %v5758_v21  ;;  %v5812_v59 = vld [vmem:[#allocation2 + $0x4b4] ss:$24 sps:$4 sm:$0xff]   ;;  %v5814_v60 = vld [vmem:[#allocation2 + $0x1b0] ss:$24 sps:$4 sm:$0xff]   ;;  %v5816_v62 = vld [vmem:[#allocation2 + $0x184] ss:$24 sps:$4 sm:$0xff]  }
  0x94   :  { %v5815_v61 = vld [vmem:[#allocation2 + $0x4b0] ss:$24 sps:$4 sm:$0xff]   ;;  %v5818_v63 = vld [vmem:[#allocation2 + $0x484] ss:$24 sps:$4 sm:$0xff]   ;;  %v5820_v0 = vld [vmem:[#allocation2 + $0x180] ss:$24 sps:$4 sm:$0xff]  }
  0x95   :  { %2125 = vmatpush1.bf16.msra.mxu0 %v5760_v22  ;;  %v5821_v1 = vld [vmem:[#allocation2 + $0x480] ss:$24 sps:$4 sm:$0xff]   ;;  %v5830_v2 = vld [vmem:[#allocation2 + $0x754] ss:$24 sps:$4 sm:$0xff]   ;;  %v5828_v6 = vld [vmem:[#allocation2 + $0x750] ss:$24 sps:$4 sm:$0xff]  }
  0x96   :  { %2218 = vmatpush1.bf16.msra.mxu1 %v5761_v23  ;;  %2126 = vmatprep.subr.bf16.mxu0 %v5762_v24  ;;  %v5833_v3 = vld [vmem:[#allocation2 + $0x15c] ss:$24 sps:$4 sm:$0xff]   ;;  %v6766_v4 = vld [vmem:[%s8368_s0] ss:$24 sps:$4 sm:$0xff]   ;;  %v5839_v9 = vld [vmem:[#allocation2 + $0x12c] ss:$24 sps:$4 sm:$0xff]  }
  0x97   :  { %2219 = vmatprep.subr.bf16.mxu1 %v5764_v25  ;;  %v5827_v5 = vld [vmem:[%s8368_s0 + $0x8] ss:$24 sps:$4 sm:$0xff]   ;;  %v5831_v7 = vld [vmem:[#allocation2 + $0x158] ss:$24 sps:$4 sm:$0xff]   ;;  %v5836_v8 = vld [vmem:[#allocation2 + $0x724] ss:$24 sps:$4 sm:$0xff]  }
  0x98   :  { %v6774_v10 = vld [vmem:[%s8368_s0 + $0x34] ss:$24 sps:$4 sm:$0xff]   ;;  %v5834_v12 = vld [vmem:[#allocation2 + $0x720] ss:$24 sps:$4 sm:$0xff]   ;;  %v5840_v16 = vld [vmem:[#allocation2 + $0x6f0] ss:$24 sps:$4 sm:$0xff]  }
  0x99   :  { %2127 = vmatpush1.bf16.msra.mxu0 %v5766_v26  ;;  %v5860_v11 = vld [vmem:[%s8368_s0 + $0x3c] ss:$24 sps:$4 sm:$0xff]   ;;  %v5837_v13 = vld [vmem:[#allocation2 + $0x128] ss:$24 sps:$4 sm:$0xff]   ;;  %v5843_v17 = vld [vmem:[#allocation2 + $0xf8] ss:$24 sps:$4 sm:$0xff]  }
  0x9a   :  { %2220 = vmatpush1.bf16.msra.mxu1 %v5767_v27  ;;  %2128 = vmatprep.subr.bf16.mxu0 %v5768_v28  ;;  %v5842_v14 = vld [vmem:[#allocation2 + $0x6f4] ss:$24 sps:$4 sm:$0xff]   ;;  %v6784_v18 = vld [vmem:[%s8368_s0 + $0x30] ss:$24 sps:$4 sm:$0xff]   ;;  %v5848_v20 = vld [vmem:[#allocation2 + $0x6c4] ss:$24 sps:$4 sm:$0xff]  }
  0x9b   :  { %2221 = vmatprep.subr.bf16.mxu1 %v5770_v29  ;;  %v5845_v15 = vld [vmem:[#allocation2 + $0xfc] ss:$24 sps:$4 sm:$0xff]   ;;  %v5863_v19 = vld [vmem:[%s8368_s0 + $0x38] ss:$24 sps:$4 sm:$0xff]   ;;  %v5851_v21 = vld [vmem:[#allocation2 + $0xcc] ss:$24 sps:$4 sm:$0xff]  }
  0x9c   :  { %v6792_v22 = vld [vmem:[%s8368_s0 + $0x64] ss:$24 sps:$4 sm:$0xff]   ;;  %v5846_v24 = vld [vmem:[#allocation2 + $0x6c0] ss:$24 sps:$4 sm:$0xff]   ;;  %v5854_v26 = vld [vmem:[#allocation2 + $0x694] ss:$24 sps:$4 sm:$0xff]  }
  0x9d   :  { %2129 = vmatpush1.bf16.msra.mxu0 %v5772_v30  ;;  %v5878_v23 = vld [vmem:[%s8368_s0 + $0x6c] ss:$24 sps:$4 sm:$0xff]   ;;  %v5849_v25 = vld [vmem:[#allocation2 + $0xc8] ss:$24 sps:$4 sm:$0xff]   ;;  %v5857_v27 = vld [vmem:[#allocation2 + $0x9c] ss:$24 sps:$4 sm:$0xff]  }
  0x9e   :  { %2222 = vmatpush1.bf16.msra.mxu1 %v5773_v31  ;;  %2130 = vmatprep.subr.bf16.mxu0 %v5774_v32  ;;  %v5852_v28 = vld [vmem:[#allocation2 + $0x690] ss:$24 sps:$4 sm:$0xff]   ;;  %v6802_v30 = vld [vmem:[%s8368_s0 + $0x60] ss:$24 sps:$4 sm:$0xff]   ;;  %v5866_v32 = vld [vmem:[#allocation2 + $0x664] ss:$24 sps:$4 sm:$0xff]  }
  0x9f   :  { %2223 = vmatprep.subr.bf16.mxu1 %v5776_v33  ;;  %v5855_v29 = vld [vmem:[#allocation2 + $0x98] ss:$24 sps:$4 sm:$0xff]   ;;  %v5881_v31 = vld [vmem:[%s8368_s0 + $0x68] ss:$24 sps:$4 sm:$0xff]   ;;  %v5869_v33 = vld [vmem:[#allocation2 + $0x6c] ss:$24 sps:$4 sm:$0xff]  }
  0xa0   :  { %v5885_v50 = vld [vmem:[#allocation2 + $0x8] ss:$24 sps:$4 sm:$0xff]   ;;  %vm6652_vm3 = vmmov 0   ;;  %vm4674_vm4 = vcmask 1040384   ;;  %s6653_s5 = smov [#allocation19]   ;;  %vm5012_vm5 = vcmask 99328  }
  0xa1   :  { %2131 = vmatpush2.bf16.msra.mxu0 %v5778_v34  ;;  %v6810_v34 = vld [vmem:[%s8368_s0 + $0x94] ss:$24 sps:$4 sm:$0xff]  }
  0xa2   :  { %2224 = vmatpush2.bf16.msra.mxu1 %v5779_v35  ;;  %2132 = vmatprep.subr.bf16.mxu0 %v5780_v36  ;;  %v5896_v35 = vld [vmem:[%s8368_s0 + $0x9c] ss:$24 sps:$4 sm:$0xff]   ;;  %v5864_v36 = vld [vmem:[#allocation2 + $0x660] ss:$24 sps:$4 sm:$0xff]  }
  0xa3   :  { %2225 = vmatprep.subr.bf16.mxu1 %v5782_v37  ;;  %v5867_v37 = vld [vmem:[#allocation2 + $0x68] ss:$24 sps:$4 sm:$0xff]  }
  0xa5   :  { %2133 = vmatpush2.bf16.msra.mxu0 %v5784_v38  ;;  %v5872_v38 = vld [vmem:[#allocation2 + $0x634] ss:$24 sps:$4 sm:$0xff]  }
  0xa6   :  { %2226 = vmatpush2.bf16.msra.mxu1 %v5785_v39  ;;  %2134 = vmatprep.subr.bf16.mxu0 %v5786_v40  ;;  %v5875_v39 = vld [vmem:[#allocation2 + $0x3c] ss:$24 sps:$4 sm:$0xff]   ;;  %v5870_v40 = vld [vmem:[#allocation2 + $0x630] ss:$24 sps:$4 sm:$0xff]  }
  0xa7   :  { %2227 = vmatprep.subr.bf16.mxu1 %v5788_v41  ;;  %v5873_v41 = vld [vmem:[#allocation2 + $0x38] ss:$24 sps:$4 sm:$0xff]  }
  0xa9   :  { %2135 = vmatpush2.bf16.msra.mxu0 %v5790_v42  ;;  %v6820_v42 = vld [vmem:[%s8368_s0 + $0x90] ss:$24 sps:$4 sm:$0xff]  }
  0xaa   :  { %2228 = vmatpush2.bf16.msra.mxu1 %v5791_v43  ;;  %2136 = vmatprep.subr.bf16.mxu0 %v5792_v44  ;;  %v5899_v43 = vld [vmem:[%s8368_s0 + $0x98] ss:$24 sps:$4 sm:$0xff]   ;;  %v5884_v44 = vld [vmem:[#allocation2 + $0x604] ss:$24 sps:$4 sm:$0xff]  }
  0xab   :  { %2229 = vmatprep.subr.bf16.mxu1 %v5794_v45  ;;  %v5887_v45 = vld [vmem:[#allocation2 + $0xc] ss:$24 sps:$4 sm:$0xff]  }
  0xad   :  { %2137 = vmatpush2.bf16.msra.mxu0 %v5796_v46  ;;  %v6828_v46 = vld [vmem:[%s8368_s0 + $0xc4] ss:$24 sps:$4 sm:$0xff]  }
  0xae   :  { %2230 = vmatpush2.bf16.msra.mxu1 %v5797_v47  ;;  %2138 = vmatprep.subr.bf16.mxu0 %v5798_v49  ;;  %v5914_v47 = vld [vmem:[%s8368_s0 + $0xcc] ss:$24 sps:$4 sm:$0xff]   ;;  %v5882_v49 = vld [vmem:[#allocation2 + $0x600] ss:$24 sps:$4 sm:$0xff]  }
  0xaf   :  { %2231 = vmatprep.subr.bf16.mxu1 %v5800_v51  ;;  %v5890_v51 = vld [vmem:[#allocation2 + $0x8d4] ss:$24 sps:$4 sm:$0xff]  }
  0xb1   :  { %2139 = vmatpush2.bf16.msra.mxu0 %v5802_v52  ;;  %v5893_v52 = vld [vmem:[#allocation2 + $0x2dc] ss:$24 sps:$4 sm:$0xff]  }
  0xb2   :  { %2232 = vmatpush2.bf16.msra.mxu1 %v5803_v53  ;;  %2140 = vmatprep.subr.bf16.mxu0 %v5804_v54  ;;  %v5888_v53 = vld [vmem:[#allocation2 + $0x8d0] ss:$24 sps:$4 sm:$0xff]  }
  0xb3   :  { %2233 = vmatprep.subr.bf16.mxu1 %v5806_v55  ;;  %v5891_v54 = vld [vmem:[#allocation2 + $0x2d8] ss:$24 sps:$4 sm:$0xff]  }
  0xb4   :  { %v6838_v55 = vld [vmem:[%s8368_s0 + $0xc0] ss:$24 sps:$4 sm:$0xff]  }
  0xb5   :  { %2141 = vmatpush2.bf16.msra.mxu0 %v5808_v56  ;;  %v5917_v56 = vld [vmem:[%s8368_s0 + $0xc8] ss:$24 sps:$4 sm:$0xff]  }
  0xb6   :  { %2234 = vmatpush2.bf16.msra.mxu1 %v5809_v57  ;;  %2142 = vmatprep.subr.bf16.mxu0 %v5810_v58  ;;  %v5902_v57 = vld [vmem:[#allocation2 + $0x8a4] ss:$24 sps:$4 sm:$0xff]  }
  0xb7   :  { %2235 = vmatprep.subr.bf16.mxu1 %v5812_v59  ;;  %v5905_v58 = vld [vmem:[#allocation2 + $0x2ac] ss:$24 sps:$4 sm:$0xff]  }
  0xb8   :  { %v6846_v59 = vld [vmem:[%s8368_s0 + $0xf4] ss:$24 sps:$4 sm:$0xff]  }
  0xb9   :  { %2143 = vmatpush2.bf16.msra.mxu0 %v5814_v60  ;;  %v5932_v60 = vld [vmem:[%s8368_s0 + $0xfc] ss:$24 sps:$4 sm:$0xff]  }
  0xba   :  { %2236 = vmatpush2.bf16.msra.mxu1 %v5815_v61  ;;  %2144 = vmatprep.subr.bf16.mxu0 %v5816_v62  ;;  %v5900_v61 = vld [vmem:[#allocation2 + $0x8a0] ss:$24 sps:$4 sm:$0xff]  }
  0xbb   :  { %2237 = vmatprep.subr.bf16.mxu1 %v5818_v63  ;;  %v5903_v62 = vld [vmem:[#allocation2 + $0x2a8] ss:$24 sps:$4 sm:$0xff]   ;;  %v5908_v63 = vld [vmem:[#allocation2 + $0x874] ss:$24 sps:$4 sm:$0xff]  }
  0xbd   :  { %2145 = vmatpush2.bf16.msra.mxu0 %v5820_v0  ;;  %v5911_v0 = vld [vmem:[#allocation2 + $0x27c] ss:$24 sps:$4 sm:$0xff]  }
  0xbe   :  { %2238 = vmatpush2.bf16.msra.mxu1 %v5821_v1  ;;  %2300 = vmatprep.subr.bf16.mxu0 %v5830_v2  ;;  %v5906_v1 = vld [vmem:[#allocation2 + $0x870] ss:$24 sps:$4 sm:$0xff]  }
  0xbf   :  { %2393 = vmatprep.subr.bf16.mxu1 %v5833_v3  ;;  %v5909_v2 = vld [vmem:[#allocation2 + $0x278] ss:$24 sps:$4 sm:$0xff]  }
  0xc0   :  { %2147 = vmatmul.mubr.bf16.vlgmr.msra.gmra.mxu0 %v6766_v4  ;;  %v6856_v3 = vld [vmem:[%s8368_s0 + $0xf0] ss:$24 sps:$4 sm:$0xff]  }
  0xc1   :  { %2240 = vmatmul.mubr.bf16.vlgmr.msra.gmra.mxu1 %v5827_v5  ;;  %2301 = vmatpush1.bf16.msra.mxu0 %v5828_v6  ;;  %v5935_v5 = vld [vmem:[%s8368_s0 + $0xf8] ss:$24 sps:$4 sm:$0xff]   ;;  %v5920_v6 = vld [vmem:[#allocation2 + $0x844] ss:$24 sps:$4 sm:$0xff]  }
  0xc2   :  { %2394 = vmatpush1.bf16.msra.mxu1 %v5831_v7  ;;  %2302 = vmatprep.subr.bf16.mxu0 %v5836_v8  ;;  %v5923_v7 = vld [vmem:[#allocation2 + $0x24c] ss:$24 sps:$4 sm:$0xff]  }
  0xc3   :  { %2395 = vmatprep.subr.bf16.mxu1 %v5839_v9  ;;  %2156 = vmatprep.mubr.bf16.mxu0 %v6774_v10  ;;  %v6864_v8 = vld [vmem:[%s8368_s0 + $0x14] ss:$24 sps:$4 sm:$0xff]   ;;  %v5918_v9 = vld [vmem:[#allocation2 + $0x840] ss:$24 sps:$4 sm:$0xff]  }
  0xc4   :  { %2249 = vmatprep.mubr.bf16.mxu1 %v5860_v11  ;;  %v5921_v11 = vld [vmem:[#allocation2 + $0x248] ss:$24 sps:$4 sm:$0xff]  }
  0xc5   :  { %2303 = vmatpush1.bf16.msra.mxu0 %v5834_v12  ;;  %v5926_v12 = vld [vmem:[#allocation2 + $0x814] ss:$24 sps:$4 sm:$0xff]  }
  0xc6   :  { %2396 = vmatpush1.bf16.msra.mxu1 %v5837_v13  ;;  %2304 = vmatprep.subr.bf16.mxu0 %v5842_v14  ;;  %v5929_v13 = vld [vmem:[#allocation2 + $0x21c] ss:$24 sps:$4 sm:$0xff]   ;;  %v5924_v14 = vld [vmem:[#allocation2 + $0x810] ss:$24 sps:$4 sm:$0xff]  }
  0xc7   :  { %2397 = vmatprep.subr.bf16.mxu1 %v5845_v15  ;;  %v5927_v15 = vld [vmem:[#allocation2 + $0x218] ss:$24 sps:$4 sm:$0xff]  }
  0xc8   :  { %2157 = vmatmul.mubr.bf16.gmra.mxu0 %v6784_v18 }
  0xc9   :  { %2250 = vmatmul.mubr.bf16.gmra.mxu1 %v5863_v19  ;;  %2305 = vmatpush1.bf16.msra.mxu0 %v5840_v16  ;;  %v5938_v16 = vld [vmem:[#allocation2 + $0x7e4] ss:$24 sps:$4 sm:$0xff]   ;;  %v5936_v19 = vld [vmem:[#allocation2 + $0x7e0] ss:$24 sps:$4 sm:$0xff]  }
  0xca   :  { %2398 = vmatpush1.bf16.msra.mxu1 %v5843_v17  ;;  %2306 = vmatprep.subr.bf16.mxu0 %v5848_v20  ;;  %v5941_v17 = vld [vmem:[#allocation2 + $0x1ec] ss:$24 sps:$4 sm:$0xff]   ;;  %v5939_v20 = vld [vmem:[#allocation2 + $0x1e8] ss:$24 sps:$4 sm:$0xff]  }
  0xcb   :  { %2399 = vmatprep.subr.bf16.mxu1 %v5851_v21  ;;  %2166 = vmatprep.mubr.bf16.mxu0 %v6792_v22  ;;  %v5944_v21 = vld [vmem:[#allocation2 + $0x7b4] ss:$24 sps:$4 sm:$0xff]  }
  0xcc   :  { %2259 = vmatprep.mubr.bf16.mxu1 %v5878_v23  ;;  %v5947_v23 = vld [vmem:[#allocation2 + $0x1bc] ss:$24 sps:$4 sm:$0xff]  }
  0xcd   :  { %2307 = vmatpush1.bf16.msra.mxu0 %v5846_v24  ;;  %v5942_v24 = vld [vmem:[#allocation2 + $0x7b0] ss:$24 sps:$4 sm:$0xff]  }
  0xce   :  { %2400 = vmatpush1.bf16.msra.mxu1 %v5849_v25  ;;  %2308 = vmatprep.subr.bf16.mxu0 %v5854_v26  ;;  %v5945_v25 = vld [vmem:[#allocation2 + $0x1b8] ss:$24 sps:$4 sm:$0xff]   ;;  %v5953_v26 = vld [vmem:[#allocation2 + $0x18c] ss:$24 sps:$4 sm:$0xff]  }
  0xcf   :  { %2401 = vmatprep.subr.bf16.mxu1 %v5857_v27  ;;  %v5948_v27 = vld [vmem:[#allocation2 + $0x780] ss:$24 sps:$4 sm:$0xff]  }
  0xd0   :  { %2167 = vmatmul.mubr.bf16.gmra.mxu0 %v6802_v30 }
  0xd1   :  { %2260 = vmatmul.mubr.bf16.gmra.mxu1 %v5881_v31  ;;  %2309 = vmatpush1.bf16.msra.mxu0 %v5852_v28  ;;  %v5951_v28 = vld [vmem:[#allocation2 + $0x188] ss:$24 sps:$4 sm:$0xff]   ;;  %v5962_v31 = vld [vmem:[#allocation2 + $0x75c] ss:$24 sps:$4 sm:$0xff]  }
  0xd2   :  { %2402 = vmatpush1.bf16.msra.mxu1 %v5855_v29  ;;  %2310 = vmatprep.subr.bf16.mxu0 %v5866_v32  ;;  %v5959_v29 = vld [vmem:[#allocation2 + $0x45c] ss:$24 sps:$4 sm:$0xff]   ;;  %v6872_v32 = vld [vmem:[%s8368_s0 + $0x10] ss:$24 sps:$4 sm:$0xff]  }
  0xd3   :  { %2403 = vmatprep.subr.bf16.mxu1 %v5869_v33  ;;  %2176 = vmatprep.mubr.bf16.mxu0 %v6810_v34  ;;  %v5957_v33 = vld [vmem:[#allocation2 + $0x458] ss:$24 sps:$4 sm:$0xff]  }
  0xd4   :  { %2269 = vmatprep.mubr.bf16.mxu1 %v5896_v35  ;;  %v5960_v35 = vld [vmem:[#allocation2 + $0x758] ss:$24 sps:$4 sm:$0xff]  }
  0xd5   :  { %2311 = vmatpush1.bf16.msra.mxu0 %v5864_v36  ;;  %v5965_v36 = vld [vmem:[#allocation2 + $0x42c] ss:$24 sps:$4 sm:$0xff]  }
  0xd6   :  { %2404 = vmatpush1.bf16.msra.mxu1 %v5867_v37  ;;  %2312 = vmatprep.subr.bf16.mxu0 %v5872_v38  ;;  %v5968_v37 = vld [vmem:[#allocation2 + $0x72c] ss:$24 sps:$4 sm:$0xff]  }
  0xd7   :  { %2405 = vmatprep.subr.bf16.mxu1 %v5875_v39  ;;  %v6877_v38 = vld [vmem:[%s8368_s0 + $0x44] ss:$24 sps:$4 sm:$0xff]   ;;  %v5963_v39 = vld [vmem:[#allocation2 + $0x428] ss:$24 sps:$4 sm:$0xff]  }
  0xd8   :  { %2177 = vmatmul.mubr.bf16.gmra.mxu0 %v6820_v42 }
  0xd9   :  { %2270 = vmatmul.mubr.bf16.gmra.mxu1 %v5899_v43  ;;  %2313 = vmatpush1.bf16.msra.mxu0 %v5870_v40  ;;  %v5966_v40 = vld [vmem:[#allocation2 + $0x728] ss:$24 sps:$4 sm:$0xff]   ;;  %v5977_v43 = vld [vmem:[#allocation2 + $0x6fc] ss:$24 sps:$4 sm:$0xff]  }
  0xda   :  { %2406 = vmatpush1.bf16.msra.mxu1 %v5873_v41  ;;  %2314 = vmatprep.subr.bf16.mxu0 %v5884_v44  ;;  %v5974_v41 = vld [vmem:[#allocation2 + $0x3fc] ss:$24 sps:$4 sm:$0xff]   ;;  %v6885_v44 = vld [vmem:[%s8368_s0 + $0x40] ss:$24 sps:$4 sm:$0xff]  }
  0xdb   :  { %2407 = vmatprep.subr.bf16.mxu1 %v5887_v45  ;;  %2186 = vmatprep.mubr.bf16.mxu0 %v6828_v46  ;;  %v5972_v45 = vld [vmem:[#allocation2 + $0x3f8] ss:$24 sps:$4 sm:$0xff]  }
  0xdc   :  { %2279 = vmatprep.mubr.bf16.mxu1 %v5914_v47  ;;  %v5975_v47 = vld [vmem:[#allocation2 + $0x6f8] ss:$24 sps:$4 sm:$0xff]  }
  0xdd   :  { %2315 = vmatpush1.bf16.msra.mxu0 %v5882_v49  ;;  %v5983_v49 = vld [vmem:[#allocation2 + $0x6cc] ss:$24 sps:$4 sm:$0xff]  }
  0xde   :  { %2408 = vmatpush1.bf16.msra.mxu1 %v5885_v50  ;;  %2316 = vmatprep.subr.bf16.mxu0 %v5890_v51  ;;  %v6891_v50 = vld [vmem:[%s8368_s0 + $0x74] ss:$24 sps:$4 sm:$0xff]   ;;  %v5978_v51 = vld [vmem:[#allocation2 + $0x3c8] ss:$24 sps:$4 sm:$0xff]  }
  0xdf   :  { %2409 = vmatprep.subr.bf16.mxu1 %v5893_v52  ;;  %v5981_v52 = vld [vmem:[#allocation2 + $0x6c8] ss:$24 sps:$4 sm:$0xff]  }
  0xe0   :  { %2187 = vmatmul.mubr.bf16.gmra.mxu0 %v6838_v55 }
  0xe1   :  { %2280 = vmatmul.mubr.bf16.gmra.mxu1 %v5917_v56  ;;  %2317 = vmatpush2.bf16.msra.mxu0 %v5888_v53  ;;  %v5992_v53 = vld [vmem:[#allocation2 + $0x69c] ss:$24 sps:$4 sm:$0xff]   ;;  %v5987_v56 = vld [vmem:[#allocation2 + $0x398] ss:$24 sps:$4 sm:$0xff]  }
  0xe2   :  { %2410 = vmatpush2.bf16.msra.mxu1 %v5891_v54  ;;  %2318 = vmatprep.subr.bf16.mxu0 %v5902_v57  ;;  %v6899_v54 = vld [vmem:[%s8368_s0 + $0x70] ss:$24 sps:$4 sm:$0xff]  }
  0xe3   :  { %2411 = vmatprep.subr.bf16.mxu1 %v5905_v58  ;;  %2196 = vmatprep.mubr.bf16.mxu0 %v6846_v59  ;;  %v5990_v57 = vld [vmem:[#allocation2 + $0x698] ss:$24 sps:$4 sm:$0xff]   ;;  %v5998_v58 = vld [vmem:[#allocation2 + $0x66c] ss:$24 sps:$4 sm:$0xff]  }
  0xe4   :  { %2289 = vmatprep.mubr.bf16.mxu1 %v5932_v60  ;;  %v6905_v60 = vld [vmem:[%s8368_s0 + $0xa4] ss:$24 sps:$4 sm:$0xff]  }
  0xe5   :  { %2319 = vmatpush2.bf16.msra.mxu0 %v5900_v61  ;;  %v5993_v61 = vld [vmem:[#allocation2 + $0x368] ss:$24 sps:$4 sm:$0xff]  }
  0xe6   :  { %2412 = vmatpush2.bf16.msra.mxu1 %v5903_v62  ;;  %2320 = vmatprep.subr.bf16.mxu0 %v5908_v63  ;;  %v5996_v62 = vld [vmem:[#allocation2 + $0x668] ss:$24 sps:$4 sm:$0xff]   ;;  %v6007_v63 = vld [vmem:[#allocation2 + $0x63c] ss:$24 sps:$4 sm:$0xff]  }
  0xe7   :  { %2413 = vmatprep.subr.bf16.mxu1 %v5911_v0  ;;  %v6913_v0 = vld [vmem:[%s8368_s0 + $0xa0] ss:$24 sps:$4 sm:$0xff]  }
  0xe8   :  { %2197 = vmatmul.mubr.bf16.gmra.mxu0 %v6856_v3 }
  0xe9   :  { %2290 = vmatmul.mubr.bf16.gmra.mxu1 %v5935_v5  ;;  %2321 = vmatpush2.bf16.msra.mxu0 %v5906_v1  ;;  %v6002_v1 = vld [vmem:[#allocation2 + $0x338] ss:$24 sps:$4 sm:$0xff]   ;;  %v6013_v5 = vld [vmem:[#allocation2 + $0x60c] ss:$24 sps:$4 sm:$0xff]  }
  0xea   :  { %2414 = vmatpush2.bf16.msra.mxu1 %v5909_v2  ;;  %2322 = vmatprep.subr.bf16.mxu0 %v5920_v6  ;;  %v6005_v2 = vld [vmem:[#allocation2 + $0x638] ss:$24 sps:$4 sm:$0xff]   ;;  %v6919_v6 = vld [vmem:[%s8368_s0 + $0xd4] ss:$24 sps:$4 sm:$0xff]  }
  0xeb   :  { %2415 = vmatprep.subr.bf16.mxu1 %v5923_v7  ;;  %2332 = vmatprep.mubr.bf16.mxu0 %v6864_v8  ;;  %v6008_v7 = vld [vmem:[#allocation2 + $0x308] ss:$24 sps:$4 sm:$0xff]  }
  0xec   :  { %2425 = vmatprep.mubr.bf16.mxu1 %v6757_v48  ;;  %v5950_v48 = vld [vmem:[#allocation2 + $0x784] ss:$24 sps:$4 sm:$0xff]  }
  0xed   :  { %2323 = vmatpush2.bf16.msra.mxu0 %v5918_v9  ;;  %v6011_v9 = vld [vmem:[#allocation2 + $0x608] ss:$24 sps:$4 sm:$0xff]  }
  0xee   :  { %2416 = vmatpush2.bf16.msra.mxu1 %v5921_v11  ;;  %2324 = vmatprep.subr.bf16.mxu0 %v5926_v12  ;;  %v6022_v11 = vld [vmem:[#allocation2 + $0x8dc] ss:$24 sps:$4 sm:$0xff]   ;;  %v6927_v12 = vld [vmem:[%s8368_s0 + $0xd0] ss:$24 sps:$4 sm:$0xff]  }
  0xef   :  { %2417 = vmatprep.subr.bf16.mxu1 %v5929_v13  ;;  %v6017_v13 = vld [vmem:[#allocation2 + $0x5d8] ss:$24 sps:$4 sm:$0xff]  }
  0xf1   :  { %2325 = vmatpush2.bf16.msra.mxu0 %v5924_v14  ;;  %v6020_v14 = vld [vmem:[#allocation2 + $0x8d8] ss:$24 sps:$4 sm:$0xff]  }
  0xf2   :  { %2418 = vmatpush2.bf16.msra.mxu1 %v5927_v15  ;;  %2326 = vmatprep.subr.bf16.mxu0 %v5938_v16  ;;  %v6028_v15 = vld [vmem:[#allocation2 + $0x8ac] ss:$24 sps:$4 sm:$0xff]  }
  0xf3   :  { %2419 = vmatprep.subr.bf16.mxu1 %v5941_v17  ;;  %v6933_v16 = vld [vmem:[%s8368_s0 + $0x104] ss:$24 sps:$4 sm:$0xff]   ;;  %v6023_v17 = vld [vmem:[#allocation2 + $0x5a8] ss:$24 sps:$4 sm:$0xff]  }
  0xf5   :  { %2327 = vmatpush2.bf16.msra.mxu0 %v5936_v19  ;;  %v6026_v19 = vld [vmem:[#allocation2 + $0x8a8] ss:$24 sps:$4 sm:$0xff]  }
  0xf6   :  { %2420 = vmatpush2.bf16.msra.mxu1 %v5939_v20  ;;  %2328 = vmatprep.subr.bf16.mxu0 %v5944_v21  ;;  %v6037_v20 = vld [vmem:[#allocation2 + $0x87c] ss:$24 sps:$4 sm:$0xff]   ;;  %v6941_v21 = vld [vmem:[%s8368_s0 + $0x100] ss:$24 sps:$4 sm:$0xff]  }
  0xf7   :  { %2421 = vmatprep.subr.bf16.mxu1 %v5947_v23  ;;  %v6032_v23 = vld [vmem:[#allocation2 + $0x578] ss:$24 sps:$4 sm:$0xff]  }
  0xf9   :  { %2329 = vmatpush2.bf16.msra.mxu0 %v5942_v24  ;;  %v6035_v24 = vld [vmem:[#allocation2 + $0x878] ss:$24 sps:$4 sm:$0xff]  }
  0xfa   :  { %2422 = vmatpush2.bf16.msra.mxu1 %v5945_v25  ;;  %2330 = vmatprep.subr.bf16.mxu0 %v5950_v48  ;;  %v6043_v25 = vld [vmem:[#allocation2 + $0x84c] ss:$24 sps:$4 sm:$0xff]   ;;  %v6038_v48 = vld [vmem:[#allocation2 + $0x548] ss:$24 sps:$4 sm:$0xff]  }
  0xfb   :  { %2423 = vmatprep.subr.bf16.mxu1 %v5953_v26  ;;  %v6041_v26 = vld [vmem:[#allocation2 + $0x848] ss:$24 sps:$4 sm:$0xff]  }
  0xfd   :  { %2331 = vmatpush2.bf16.msra.mxu0 %v5948_v27  ;;  %v6046_v27 = vld [vmem:[#allocation2 + $0x51c] ss:$24 sps:$4 sm:$0xff]  }
  0xfe   :  { %2424 = vmatpush2.bf16.msra.mxu1 %v5951_v28  ;;  %2486 = vmatprep.subr.bf16.mxu0 %v5959_v29  ;;  %v6949_v28 = vld [vmem:[%s8368_s0 + $0xc] ss:$24 sps:$4 sm:$0xff]   ;;  %v6044_v29 = vld [vmem:[#allocation2 + $0x518] ss:$24 sps:$4 sm:$0xff]  }
  0xff   :  { %2579 = vmatprep.subr.bf16.mxu1 %v5962_v31  ;;  %v6047_v31 = vld [vmem:[#allocation2 + $0x818] ss:$24 sps:$4 sm:$0xff]  }
 0x100   :  { %2333 = vmatmul.mubr.bf16.vlgmr.msra.gmra.mxu0 %v6872_v32 }
 0x101   :  { %2426 = vmatmul.mubr.bf16.vlgmr.msra.gmra.mxu1 %v6766_v4  ;;  %2487 = vmatpush1.bf16.msra.mxu0 %v5957_v33  ;;  %v5980_v4 = vld [vmem:[#allocation2 + $0x3cc] ss:$24 sps:$4 sm:$0xff]  }
 0x102   :  { %2580 = vmatpush1.bf16.msra.mxu1 %v5960_v35  ;;  %2488 = vmatprep.subr.bf16.mxu0 %v5965_v36  ;;  %v6055_v33 = vld [vmem:[#allocation2 + $0x7ec] ss:$24 sps:$4 sm:$0xff]   ;;  %v6050_v35 = vld [vmem:[#allocation2 + $0x4e8] ss:$24 sps:$4 sm:$0xff]  }
 0x103   :  { %2581 = vmatprep.subr.bf16.mxu1 %v5968_v37  ;;  %2342 = vmatprep.mubr.bf16.mxu0 %v6877_v38  ;;  %v6053_v36 = vld [vmem:[#allocation2 + $0x7e8] ss:$24 sps:$4 sm:$0xff]   ;;  %v6058_v37 = vld [vmem:[#allocation2 + $0x4bc] ss:$24 sps:$4 sm:$0xff]  }
 0x104   :  { %2435 = vmatprep.mubr.bf16.mxu1 %v6774_v10  ;;  %v5989_v10 = vld [vmem:[#allocation2 + $0x39c] ss:$24 sps:$4 sm:$0xff]  }
 0x105   :  { %2489 = vmatpush1.bf16.msra.mxu0 %v5963_v39  ;;  %v6061_v39 = vld [vmem:[#allocation2 + $0x7bc] ss:$24 sps:$4 sm:$0xff]  }
 0x106   :  { %2582 = vmatpush1.bf16.msra.mxu1 %v5966_v40  ;;  %2490 = vmatprep.subr.bf16.mxu0 %v5974_v41  ;;  %v6056_v40 = vld [vmem:[#allocation2 + $0x4b8] ss:$24 sps:$4 sm:$0xff]  }
 0x107   :  { %2583 = vmatprep.subr.bf16.mxu1 %v5977_v43  ;;  %v6059_v41 = vld [vmem:[#allocation2 + $0x7b8] ss:$24 sps:$4 sm:$0xff]   ;;  %v6067_v43 = vld [vmem:[#allocation2 + $0x78c] ss:$24 sps:$4 sm:$0xff]  }
 0x108   :  { %2343 = vmatmul.mubr.bf16.gmra.mxu0 %v6885_v44 }
 0x109   :  { %2436 = vmatmul.mubr.bf16.gmra.mxu1 %v6784_v18  ;;  %2491 = vmatpush1.bf16.msra.mxu0 %v5972_v45  ;;  %v5995_v18 = vld [vmem:[#allocation2 + $0x36c] ss:$24 sps:$4 sm:$0xff]   ;;  %v6062_v45 = vld [vmem:[#allocation2 + $0x488] ss:$24 sps:$4 sm:$0xff]  }
 0x10a   :  { %2584 = vmatpush1.bf16.msra.mxu1 %v5975_v47  ;;  %2492 = vmatprep.subr.bf16.mxu0 %v5980_v4  ;;  %v6065_v47 = vld [vmem:[#allocation2 + $0x788] ss:$24 sps:$4 sm:$0xff]   ;;  %v6070_v4 = vld [vmem:[#allocation2 + $0x164] ss:$24 sps:$4 sm:$0xff]  }
 0x10b   :  { %2585 = vmatprep.subr.bf16.mxu1 %v5983_v49  ;;  %2352 = vmatprep.mubr.bf16.mxu0 %v6891_v50  ;;  %v6073_v49 = vld [vmem:[#allocation2 + $0x464] ss:$24 sps:$4 sm:$0xff]  }
 0x10c   :  { %2445 = vmatprep.mubr.bf16.mxu1 %v6792_v22  ;;  %v6004_v22 = vld [vmem:[#allocation2 + $0x33c] ss:$24 sps:$4 sm:$0xff]  }
 0x10d   :  { %2493 = vmatpush1.bf16.msra.mxu0 %v5978_v51  ;;  %v6068_v51 = vld [vmem:[#allocation2 + $0x160] ss:$24 sps:$4 sm:$0xff]  }
 0x10e   :  { %2586 = vmatpush1.bf16.msra.mxu1 %v5981_v52  ;;  %2494 = vmatprep.subr.bf16.mxu0 %v5989_v10  ;;  %v6071_v52 = vld [vmem:[#allocation2 + $0x460] ss:$24 sps:$4 sm:$0xff]   ;;  %v6076_v10 = vld [vmem:[#allocation2 + $0x134] ss:$24 sps:$4 sm:$0xff]  }
 0x10f   :  { %2587 = vmatprep.subr.bf16.mxu1 %v5992_v53  ;;  %v6079_v53 = vld [vmem:[#allocation2 + $0x434] ss:$24 sps:$4 sm:$0xff]  }
 0x110   :  { %2353 = vmatmul.mubr.bf16.gmra.mxu0 %v6899_v54 }
 0x111   :  { %2446 = vmatmul.mubr.bf16.gmra.mxu1 %v6802_v30  ;;  %2495 = vmatpush1.bf16.msra.mxu0 %v5987_v56  ;;  %v6010_v30 = vld [vmem:[#allocation2 + $0x30c] ss:$24 sps:$4 sm:$0xff]   ;;  %v6956_v56 = vld [vmem:[%s8368_s0 + $0x8] ss:$24 sps:$4 sm:$0xff]  }
 0x112   :  { %2588 = vmatpush1.bf16.msra.mxu1 %v5990_v57  ;;  %2496 = vmatprep.subr.bf16.mxu0 %v5995_v18  ;;  %v6074_v57 = vld [vmem:[#allocation2 + $0x130] ss:$24 sps:$4 sm:$0xff]  }
 0x113   :  { %2589 = vmatprep.subr.bf16.mxu1 %v5998_v58  ;;  %2362 = vmatprep.mubr.bf16.mxu0 %v6905_v60  ;;  %v6077_v18 = vld [vmem:[#allocation2 + $0x430] ss:$24 sps:$4 sm:$0xff]   ;;  %v6082_v58 = vld [vmem:[#allocation2 + $0x104] ss:$24 sps:$4 sm:$0xff]  }
 0x114   :  { %2455 = vmatprep.mubr.bf16.mxu1 %v6810_v34  ;;  %v6019_v34 = vld [vmem:[#allocation2 + $0x5dc] ss:$24 sps:$4 sm:$0xff]  }
 0x115   :  { %2497 = vmatpush1.bf16.msra.mxu0 %v5993_v61  ;;  %v6085_v61 = vld [vmem:[#allocation2 + $0x404] ss:$24 sps:$4 sm:$0xff]  }
 0x116   :  { %2590 = vmatpush1.bf16.msra.mxu1 %v5996_v62  ;;  %2498 = vmatprep.subr.bf16.mxu0 %v6004_v22  ;;  %v6963_v62 = vld [vmem:[%s8368_s0 + $0x3c] ss:$24 sps:$4 sm:$0xff]   ;;  %v6080_v22 = vld [vmem:[#allocation2 + $0x100] ss:$24 sps:$4 sm:$0xff]  }
 0x117   :  { %2591 = vmatprep.subr.bf16.mxu1 %v6007_v63  ;;  %v6083_v63 = vld [vmem:[#allocation2 + $0x400] ss:$24 sps:$4 sm:$0xff]  }
 0x118   :  { %2363 = vmatmul.mubr.bf16.gmra.mxu0 %v6913_v0 }
 0x119   :  { %2456 = vmatmul.mubr.bf16.gmra.mxu1 %v6820_v42  ;;  %2499 = vmatpush1.bf16.msra.mxu0 %v6002_v1  ;;  %v6025_v42 = vld [vmem:[#allocation2 + $0x5ac] ss:$24 sps:$4 sm:$0xff]  }
 0x11a   :  { %2592 = vmatpush1.bf16.msra.mxu1 %v6005_v2  ;;  %2500 = vmatprep.subr.bf16.mxu0 %v6010_v30  ;;  %v6091_v1 = vld [vmem:[#allocation2 + $0x3d4] ss:$24 sps:$4 sm:$0xff]   ;;  %v6970_v2 = vld [vmem:[%s8368_s0 + $0x38] ss:$24 sps:$4 sm:$0xff]  }
 0x11b   :  { %2593 = vmatprep.subr.bf16.mxu1 %v6013_v5  ;;  %2372 = vmatprep.mubr.bf16.mxu0 %v6919_v6  ;;  %v6086_v30 = vld [vmem:[#allocation2 + $0xd0] ss:$24 sps:$4 sm:$0xff]  }
 0x11c   :  { %2465 = vmatprep.mubr.bf16.mxu1 %v6828_v46  ;;  %v6034_v46 = vld [vmem:[#allocation2 + $0x57c] ss:$24 sps:$4 sm:$0xff]   ;;  %v6089_v5 = vld [vmem:[#allocation2 + $0x3d0] ss:$24 sps:$4 sm:$0xff]  }
 0x11d   :  { %2501 = vmatpush1.bf16.msra.mxu0 %v6008_v7  ;;  %v6097_v7 = vld [vmem:[#allocation2 + $0x3a4] ss:$24 sps:$4 sm:$0xff]  }
 0x11e   :  { %2594 = vmatpush1.bf16.msra.mxu1 %v6011_v9  ;;  %2502 = vmatprep.subr.bf16.mxu0 %v6019_v34  ;;  %v6977_v9 = vld [vmem:[%s8368_s0 + $0x6c] ss:$24 sps:$4 sm:$0xff]   ;;  %v6092_v34 = vld [vmem:[#allocation2 + $0xa0] ss:$24 sps:$4 sm:$0xff]  }
 0x11f   :  { %2595 = vmatprep.subr.bf16.mxu1 %v6022_v11  ;;  %v6095_v11 = vld [vmem:[#allocation2 + $0x3a0] ss:$24 sps:$4 sm:$0xff]  }
 0x120   :  { %2373 = vmatmul.mubr.bf16.gmra.mxu0 %v6927_v12 }
 0x121   :  { %2466 = vmatmul.mubr.bf16.gmra.mxu1 %v6838_v55  ;;  %2503 = vmatpush2.bf16.msra.mxu0 %v6017_v13  ;;  %v6040_v55 = vld [vmem:[#allocation2 + $0x54c] ss:$24 sps:$4 sm:$0xff]  }
 0x122   :  { %2596 = vmatpush2.bf16.msra.mxu1 %v6020_v14  ;;  %2504 = vmatprep.subr.bf16.mxu0 %v6025_v42  ;;  %v6103_v13 = vld [vmem:[#allocation2 + $0x374] ss:$24 sps:$4 sm:$0xff]   ;;  %v6984_v14 = vld [vmem:[%s8368_s0 + $0x68] ss:$24 sps:$4 sm:$0xff]  }
 0x123   :  { %2597 = vmatprep.subr.bf16.mxu1 %v6028_v15  ;;  %2382 = vmatprep.mubr.bf16.mxu0 %v6933_v16  ;;  %v6098_v42 = vld [vmem:[#allocation2 + $0x70] ss:$24 sps:$4 sm:$0xff]  }
 0x124   :  { %2475 = vmatprep.mubr.bf16.mxu1 %v6846_v59  ;;  %v6049_v59 = vld [vmem:[#allocation2 + $0x81c] ss:$24 sps:$4 sm:$0xff]   ;;  %v6101_v15 = vld [vmem:[#allocation2 + $0x370] ss:$24 sps:$4 sm:$0xff]  }
 0x125   :  { %2505 = vmatpush2.bf16.msra.mxu0 %v6023_v17  ;;  %v6109_v17 = vld [vmem:[#allocation2 + $0x344] ss:$24 sps:$4 sm:$0xff]  }
 0x126   :  { %2598 = vmatpush2.bf16.msra.mxu1 %v6026_v19  ;;  %2506 = vmatprep.subr.bf16.mxu0 %v6034_v46  ;;  %v6991_v19 = vld [vmem:[%s8368_s0 + $0x9c] ss:$24 sps:$4 sm:$0xff]   ;;  %v6104_v46 = vld [vmem:[#allocation2 + $0x40] ss:$24 sps:$4 sm:$0xff]  }
 0x127   :  { %2599 = vmatprep.subr.bf16.mxu1 %v6037_v20  ;;  %v6107_v20 = vld [vmem:[#allocation2 + $0x340] ss:$24 sps:$4 sm:$0xff]  }
 0x128   :  { %2383 = vmatmul.mubr.bf16.gmra.mxu0 %v6941_v21 }
 0x129   :  { %2476 = vmatmul.mubr.bf16.gmra.mxu1 %v6856_v3  ;;  %2507 = vmatpush2.bf16.msra.mxu0 %v6032_v23  ;;  %v6052_v3 = vld [vmem:[#allocation2 + $0x4ec] ss:$24 sps:$4 sm:$0xff]  }
 0x12a   :  { %2600 = vmatpush2.bf16.msra.mxu1 %v6035_v24  ;;  %2508 = vmatprep.subr.bf16.mxu0 %v6040_v55  ;;  %v6115_v23 = vld [vmem:[#allocation2 + $0x314] ss:$24 sps:$4 sm:$0xff]   ;;  %v6110_v24 = vld [vmem:[#allocation2 + $0x10] ss:$24 sps:$4 sm:$0xff]  }
 0x12b   :  { %2601 = vmatprep.subr.bf16.mxu1 %v6043_v25  ;;  %2518 = vmatprep.mubr.bf16.mxu0 %v6949_v28  ;;  %v6113_v55 = vld [vmem:[#allocation2 + $0x310] ss:$24 sps:$4 sm:$0xff]  }
 0x12c   :  { %2611 = vmatprep.mubr.bf16.mxu1 %v6864_v8  ;;  %v6064_v8 = vld [vmem:[#allocation2 + $0x48c] ss:$24 sps:$4 sm:$0xff]   ;;  %v6998_v25 = vld [vmem:[%s8368_s0 + $0x98] ss:$24 sps:$4 sm:$0xff]  }
 0x12d   :  { %2509 = vmatpush2.bf16.msra.mxu0 %v6038_v48  ;;  %v6118_v48 = vld [vmem:[#allocation2 + $0x2e4] ss:$24 sps:$4 sm:$0xff]  }
 0x12e   :  { %2602 = vmatpush2.bf16.msra.mxu1 %v6041_v26  ;;  %2510 = vmatprep.subr.bf16.mxu0 %v6046_v27  ;;  %v6121_v26 = vld [vmem:[#allocation2 + $0x5e4] ss:$24 sps:$4 sm:$0xff]   ;;  %v6116_v27 = vld [vmem:[#allocation2 + $0x2e0] ss:$24 sps:$4 sm:$0xff]  }
 0x12f   :  { %2603 = vmatprep.subr.bf16.mxu1 %v6049_v59  ;;  %v6119_v59 = vld [vmem:[#allocation2 + $0x5e0] ss:$24 sps:$4 sm:$0xff]  }
 0x131   :  { %2511 = vmatpush2.bf16.msra.mxu0 %v6044_v29  ;;  %v6124_v29 = vld [vmem:[#allocation2 + $0x2b4] ss:$24 sps:$4 sm:$0xff]  }
 0x132   :  { %2604 = vmatpush2.bf16.msra.mxu1 %v6047_v31  ;;  %2512 = vmatprep.subr.bf16.mxu0 %v6052_v3  ;;  %v6127_v31 = vld [vmem:[#allocation2 + $0x5b4] ss:$24 sps:$4 sm:$0xff]   ;;  %v6125_v3 = vld [vmem:[#allocation2 + $0x5b0] ss:$24 sps:$4 sm:$0xff]  }
 0x133   :  { %2605 = vmatprep.subr.bf16.mxu1 %v6055_v33  ;;  %v7012_v33 = vld [vmem:[%s8368_s0 + $0xc8] ss:$24 sps:$4 sm:$0xff]  }
 0x135   :  { %2513 = vmatpush2.bf16.msra.mxu0 %v6050_v35  ;;  %v6130_v35 = vld [vmem:[#allocation2 + $0x284] ss:$24 sps:$4 sm:$0xff]  }
 0x136   :  { %2606 = vmatpush2.bf16.msra.mxu1 %v6053_v36  ;;  %2514 = vmatprep.subr.bf16.mxu0 %v6058_v37  ;;  %v6133_v36 = vld [vmem:[#allocation2 + $0x584] ss:$24 sps:$4 sm:$0xff]   ;;  %v6128_v37 = vld [vmem:[#allocation2 + $0x280] ss:$24 sps:$4 sm:$0xff]  }
 0x137   :  { %2607 = vmatprep.subr.bf16.mxu1 %v6061_v39  ;;  %v6131_v39 = vld [vmem:[#allocation2 + $0x580] ss:$24 sps:$4 sm:$0xff]  }
 0x139   :  { %2515 = vmatpush2.bf16.msra.mxu0 %v6056_v40  ;;  %v6136_v40 = vld [vmem:[#allocation2 + $0x254] ss:$24 sps:$4 sm:$0xff]  }
 0x13a   :  { %2608 = vmatpush2.bf16.msra.mxu1 %v6059_v41  ;;  %2516 = vmatprep.subr.bf16.mxu0 %v6064_v8  ;;  %v6139_v41 = vld [vmem:[#allocation2 + $0x554] ss:$24 sps:$4 sm:$0xff]   ;;  %v6137_v8 = vld [vmem:[#allocation2 + $0x550] ss:$24 sps:$4 sm:$0xff]  }
 0x13b   :  { %2609 = vmatprep.subr.bf16.mxu1 %v6067_v43  ;;  %v7026_v43 = vld [vmem:[%s8368_s0 + $0xf8] ss:$24 sps:$4 sm:$0xff]  }
 0x13d   :  { %2517 = vmatpush2.bf16.msra.mxu0 %v6062_v45  ;;  %v6142_v45 = vld [vmem:[#allocation2 + $0x224] ss:$24 sps:$4 sm:$0xff]  }
 0x13e   :  { %2610 = vmatpush2.bf16.msra.mxu1 %v6065_v47  ;;  %2672 = vmatprep.subr.bf16.mxu0 %v6070_v4  ;;  %v6145_v47 = vld [vmem:[#allocation2 + $0x524] ss:$24 sps:$4 sm:$0xff]   ;;  %v6143_v4 = vld [vmem:[#allocation2 + $0x520] ss:$24 sps:$4 sm:$0xff]  }
 0x13f   :  { %2765 = vmatprep.subr.bf16.mxu1 %v6073_v49  ;;  %v6376_v49 = vld [vmem:[%s8368_s0 + $0x4] ss:$24 sps:$4 sm:$0xff]  }
 0x140   :  { %2519 = vmatmul.mubr.bf16.vlgmr.msra.gmra.mxu0 %v6956_v56 }
 0x141   :  { %2612 = vmatmul.mubr.bf16.vlgmr.msra.gmra.mxu1 %v6872_v32  ;;  %2673 = vmatpush1.bf16.msra.mxu0 %v6068_v51  ;;  %v6088_v32 = vld [vmem:[#allocation2 + $0xd4] ss:$24 sps:$4 sm:$0xff]  }
 0x142   :  { %2766 = vmatpush1.bf16.msra.mxu1 %v6071_v52  ;;  %2674 = vmatprep.subr.bf16.mxu0 %v6076_v10  ;;  %v6148_v51 = vld [vmem:[#allocation2 + $0x1f4] ss:$24 sps:$4 sm:$0xff]   ;;  %v6149_v10 = vld [vmem:[#allocation2 + $0x4f0] ss:$24 sps:$4 sm:$0xff]  }
 0x143   :  { %2767 = vmatprep.subr.bf16.mxu1 %v6079_v53  ;;  %2528 = vmatprep.mubr.bf16.mxu0 %v6963_v62  ;;  %v6151_v52 = vld [vmem:[#allocation2 + $0x4f4] ss:$24 sps:$4 sm:$0xff]   ;;  %v6154_v53 = vld [vmem:[#allocation2 + $0x1c4] ss:$24 sps:$4 sm:$0xff]  }
 0x144   :  { %2621 = vmatprep.mubr.bf16.mxu1 %v6877_v38  ;;  %v6094_v38 = vld [vmem:[#allocation2 + $0xa4] ss:$24 sps:$4 sm:$0xff]  }
 0x145   :  { %2675 = vmatpush1.bf16.msra.mxu0 %v6074_v57  ;;  %v6157_v57 = vld [vmem:[#allocation2 + $0x4c4] ss:$24 sps:$4 sm:$0xff]  }
 0x146   :  { %2768 = vmatpush1.bf16.msra.mxu1 %v6077_v18  ;;  %2676 = vmatprep.subr.bf16.mxu0 %v6082_v58  ;;  %v6152_v18 = vld [vmem:[#allocation2 + $0x1c0] ss:$24 sps:$4 sm:$0xff]  }
 0x147   :  { %2769 = vmatprep.subr.bf16.mxu1 %v6085_v61  ;;  %v6155_v58 = vld [vmem:[#allocation2 + $0x4c0] ss:$24 sps:$4 sm:$0xff]   ;;  %v6160_v61 = vld [vmem:[#allocation2 + $0x194] ss:$24 sps:$4 sm:$0xff]  }
 0x148   :  { %2529 = vmatmul.mubr.bf16.gmra.mxu0 %v6970_v2 }
 0x149   :  { %2622 = vmatmul.mubr.bf16.gmra.mxu1 %v6885_v44  ;;  %2677 = vmatpush1.bf16.msra.mxu0 %v6080_v22  ;;  %v6100_v44 = vld [vmem:[#allocation2 + $0x74] ss:$24 sps:$4 sm:$0xff]  }
 0x14a   :  { %2770 = vmatpush1.bf16.msra.mxu1 %v6083_v63  ;;  %2678 = vmatprep.subr.bf16.mxu0 %v6088_v32  ;;  %v6163_v22 = vld [vmem:[#allocation2 + $0x494] ss:$24 sps:$4 sm:$0xff]   ;;  %v6161_v63 = vld [vmem:[#allocation2 + $0x490] ss:$24 sps:$4 sm:$0xff]   ;;  %v6166_v32 = vld [vmem:[#allocation2 + $0x764] ss:$24 sps:$4 sm:$0xff]  }
 0x14b   :  { %2771 = vmatprep.subr.bf16.mxu1 %v6091_v1  ;;  %2538 = vmatprep.mubr.bf16.mxu0 %v6977_v9  ;;  %v6164_v1 = vld [vmem:[#allocation2 + $0x760] ss:$24 sps:$4 sm:$0xff]  }
 0x14c   :  { %2631 = vmatprep.mubr.bf16.mxu1 %v6891_v50  ;;  %v6106_v50 = vld [vmem:[#allocation2 + $0x44] ss:$24 sps:$4 sm:$0xff]  }
 0x14d   :  { %2679 = vmatpush1.bf16.msra.mxu0 %v6086_v30  ;;  %v6169_v30 = vld [vmem:[#allocation2 + $0x734] ss:$24 sps:$4 sm:$0xff]  }
 0x14e   :  { %2772 = vmatpush1.bf16.msra.mxu1 %v6089_v5  ;;  %2680 = vmatprep.subr.bf16.mxu0 %v6094_v38  ;;  %v6167_v5 = vld [vmem:[#allocation2 + $0x730] ss:$24 sps:$4 sm:$0xff]  }
 0x14f   :  { %2773 = vmatprep.subr.bf16.mxu1 %v6097_v7 }
 0x150   :  { %2539 = vmatmul.mubr.bf16.gmra.mxu0 %v6984_v14 }
 0x151   :  { %2632 = vmatmul.mubr.bf16.gmra.mxu1 %v6899_v54  ;;  %2681 = vmatpush1.bf16.msra.mxu0 %v6092_v34  ;;  %v6112_v54 = vld [vmem:[#allocation2 + $0x14] ss:$24 sps:$4 sm:$0xff]   ;;  %v6377_v34 = vld [vmem:[%s8368_s0] ss:$24 sps:$4 sm:$0xff]  }
 0x152   :  { %2774 = vmatpush1.bf16.msra.mxu1 %v6095_v11  ;;  %2682 = vmatprep.subr.bf16.mxu0 %v6100_v44  ;;  %v6172_v11 = vld [vmem:[#allocation2 + $0x704] ss:$24 sps:$4 sm:$0xff]  }
 0x153   :  { %2775 = vmatprep.subr.bf16.mxu1 %v6103_v13  ;;  %2548 = vmatprep.mubr.bf16.mxu0 %v6991_v19  ;;  %v6378_v13 = vld [vmem:[%s8368_s0 + $0x34] ss:$24 sps:$4 sm:$0xff]  }
 0x154   :  { %2641 = vmatprep.mubr.bf16.mxu1 %v6905_v60  ;;  %v7005_v60 = vld [vmem:[%s8368_s0 + $0xcc] ss:$24 sps:$4 sm:$0xff]  }
 0x155   :  { %2683 = vmatpush1.bf16.msra.mxu0 %v6098_v42 }
 0x156   :  { %2776 = vmatpush1.bf16.msra.mxu1 %v6101_v15  ;;  %2684 = vmatprep.subr.bf16.mxu0 %v6106_v50 }
 0x157   :  { %2777 = vmatprep.subr.bf16.mxu1 %v6109_v17  ;;  %v6170_v17 = vld [vmem:[#allocation2 + $0x700] ss:$24 sps:$4 sm:$0xff]  }
 0x158   :  { %2549 = vmatmul.mubr.bf16.gmra.mxu0 %v6998_v25 }
 0x159   :  { %2642 = vmatmul.mubr.bf16.gmra.mxu1 %v6913_v0  ;;  %2685 = vmatpush1.bf16.msra.mxu0 %v6104_v46  ;;  %v6122_v0 = vld [vmem:[#allocation2 + $0x2b0] ss:$24 sps:$4 sm:$0xff]  }
 0x15a   :  { %2778 = vmatpush1.bf16.msra.mxu1 %v6107_v20  ;;  %2686 = vmatprep.subr.bf16.mxu0 %v6112_v54 }
 0x15b   :  { %2779 = vmatprep.subr.bf16.mxu1 %v6115_v23  ;;  %2558 = vmatprep.mubr.bf16.mxu0 %v7005_v60 }
 0x15c   :  { %2651 = vmatprep.mubr.bf16.mxu1 %v6919_v6  ;;  %v7019_v6 = vld [vmem:[%s8368_s0 + $0xfc] ss:$24 sps:$4 sm:$0xff]  }
 0x15d   :  { %2687 = vmatpush1.bf16.msra.mxu0 %v6110_v24 }
 0x15e   :  { %2780 = vmatpush1.bf16.msra.mxu1 %v6113_v55  ;;  %2688 = vmatprep.subr.bf16.mxu0 %v6118_v48  ;;  %v6173_v55 = vld [vmem:[#allocation2 + $0x6d0] ss:$24 sps:$4 sm:$0xff]  }
 0x15f   :  { %2781 = vmatprep.subr.bf16.mxu1 %v6121_v26  ;;  %v6379_v48 = vld [vmem:[%s8368_s0 + $0x30] ss:$24 sps:$4 sm:$0xff]  }
 0x160   :  { %2559 = vmatmul.mubr.bf16.gmra.mxu0 %v7012_v33 }
 0x161   :  { %2652 = vmatmul.mubr.bf16.gmra.mxu1 %v6927_v12  ;;  %2689 = vmatpush2.bf16.msra.mxu0 %v6116_v27  ;;  %v6134_v12 = vld [vmem:[#allocation2 + $0x250] ss:$24 sps:$4 sm:$0xff]  }
 0x162   :  { %2782 = vmatpush2.bf16.msra.mxu1 %v6119_v59  ;;  %2690 = vmatprep.subr.bf16.mxu0 %v6124_v29  ;;  %v6380_v59 = vld [vmem:[%s8368_s0 + $0x64] ss:$24 sps:$4 sm:$0xff]  }
 0x163   :  { %2783 = vmatprep.subr.bf16.mxu1 %v6127_v31  ;;  %2568 = vmatprep.mubr.bf16.mxu0 %v7019_v6  ;;  %v6178_v29 = vld [vmem:[#allocation2 + $0x6a4] ss:$24 sps:$4 sm:$0xff]  }
 0x164   :  { %2661 = vmatprep.mubr.bf16.mxu1 %v6933_v16  ;;  %v6140_v16 = vld [vmem:[#allocation2 + $0x220] ss:$24 sps:$4 sm:$0xff]  }
 0x165   :  { %2691 = vmatpush2.bf16.msra.mxu0 %v6122_v0 }
 0x166   :  { %2784 = vmatpush2.bf16.msra.mxu1 %v6125_v3  ;;  %2692 = vmatprep.subr.bf16.mxu0 %v6130_v35  ;;  %v6176_v3 = vld [vmem:[#allocation2 + $0x6a0] ss:$24 sps:$4 sm:$0xff]  }
 0x167   :  { %2785 = vmatprep.subr.bf16.mxu1 %v6133_v36 }
 0x168   :  { %2569 = vmatmul.mubr.bf16.gmra.mxu0 %v7026_v43 }
 0x169   :  { %2662 = vmatmul.mubr.bf16.gmra.mxu1 %v6941_v21  ;;  %2693 = vmatpush2.bf16.msra.mxu0 %v6128_v37  ;;  %v6146_v21 = vld [vmem:[#allocation2 + $0x1f0] ss:$24 sps:$4 sm:$0xff]  }
 0x16a   :  { %2786 = vmatpush2.bf16.msra.mxu1 %v6131_v39  ;;  %2694 = vmatprep.subr.bf16.mxu0 %v6136_v40 }
 0x16b   :  { %2787 = vmatprep.subr.bf16.mxu1 %v6139_v41  ;;  %2704 = vmatprep.mubr.bf16.mxu0 %v6376_v49 }
 0x16c   :  { %2797 = vmatprep.mubr.bf16.mxu1 %v6949_v28  ;;  %v6158_v28 = vld [vmem:[#allocation2 + $0x190] ss:$24 sps:$4 sm:$0xff]  }
 0x16d   :  { %2695 = vmatpush2.bf16.msra.mxu0 %v6134_v12  ;;  %v6381_v12 = vld [vmem:[%s8368_s0 + $0x60] ss:$24 sps:$4 sm:$0xff]  }
 0x16e   :  { %2788 = vmatpush2.bf16.msra.mxu1 %v6137_v8  ;;  %2696 = vmatprep.subr.bf16.mxu0 %v6142_v45  ;;  %v6179_v45 = vld [vmem:[#allocation2 + $0x670] ss:$24 sps:$4 sm:$0xff]  }
 0x16f   :  { %2789 = vmatprep.subr.bf16.mxu1 %v6145_v47 }
 0x171   :  { %2697 = vmatpush2.bf16.msra.mxu0 %v6140_v16  ;;  %v6382_v16 = vld [vmem:[%s8368_s0 + $0x94] ss:$24 sps:$4 sm:$0xff]  }
 0x172   :  { %2790 = vmatpush2.bf16.msra.mxu1 %v6143_v4  ;;  %2698 = vmatprep.subr.bf16.mxu0 %v6148_v51  ;;  %v6184_v4 = vld [vmem:[#allocation2 + $0x644] ss:$24 sps:$4 sm:$0xff]  }
 0x173   :  { %2791 = vmatprep.subr.bf16.mxu1 %v6151_v52 }
 0x175   :  { %2699 = vmatpush2.bf16.msra.mxu0 %v6146_v21 }
 0x176   :  { %2792 = vmatpush2.bf16.msra.mxu1 %v6149_v10  ;;  %2700 = vmatprep.subr.bf16.mxu0 %v6154_v53  ;;  %v6182_v10 = vld [vmem:[#allocation2 + $0x640] ss:$24 sps:$4 sm:$0xff]  }
 0x177   :  { %2793 = vmatprep.subr.bf16.mxu1 %v6157_v57  ;;  %v6187_v57 = vld [vmem:[#allocation2 + $0x614] ss:$24 sps:$4 sm:$0xff]  }
 0x179   :  { %2701 = vmatpush2.bf16.msra.mxu0 %v6152_v18 }
 0x17a   :  { %2794 = vmatpush2.bf16.msra.mxu1 %v6155_v58  ;;  %2702 = vmatprep.subr.bf16.mxu0 %v6160_v61  ;;  %v6383_v61 = vld [vmem:[%s8368_s0 + $0x90] ss:$24 sps:$4 sm:$0xff]  }
 0x17b   :  { %2795 = vmatprep.subr.bf16.mxu1 %v6163_v22 }
 0x17d   :  { %2703 = vmatpush2.bf16.msra.mxu0 %v6158_v28  ;;  %v6185_v28 = vld [vmem:[#allocation2 + $0x610] ss:$24 sps:$4 sm:$0xff]  }
 0x17e   :  { %2796 = vmatpush2.bf16.msra.mxu1 %v6161_v63  ;;  %2858 = vmatprep.subr.bf16.mxu0 %v6166_v32  ;;  %v6384_v32 = vld [vmem:[%s8368_s0 + $0xc4] ss:$24 sps:$4 sm:$0xff]  }
 0x180   :  { %v2148_v38 = vpop.f32.mrf.mxu0  ;;  %2705 = vmatmul.mubr.bf16.vlgmr.msra.gmra.mxu0 %v6377_v34  ;;  %v6188_v34 = vld [vmem:[#allocation2 + $0x8e0] ss:$24 sps:$4 sm:$0xff]  }
 0x181   :  { %v2241_v7 = vpop.f32.mrf.mxu1  ;;  %2798 = vmatmul.mubr.bf16.vlgmr.msra.gmra.mxu1 %v6956_v56  ;;  %2859 = vmatpush1.bf16.msra.mxu0 %v6164_v1  ;;  %v6175_v56 = vld [vmem:[#allocation2 + $0x6d4] ss:$24 sps:$4 sm:$0xff]   ;;  %v6190_v1 = vld [vmem:[#allocation2 + $0x8e4] ss:$24 sps:$4 sm:$0xff]  }
 0x182   :  { %v7038_v44 = vadd.f32 %v2241_v7, %v2148_v38  ;;  %2714 = vmatprep.mubr.bf16.mxu0 %v6378_v13  ;;  %v2150_v42 = vpop.f32.mrf.mxu0  ;;  %2860 = vmatprep.subr.bf16.mxu0 %v6169_v30  ;;  %v6193_v13 = vld [vmem:[#allocation2 + $0x8b4] ss:$24 sps:$4 sm:$0xff]  }
 0x183   :  { %v2243_v15 = vpop.f32.mrf.mxu1  ;;  %2807 = vmatprep.mubr.bf16.mxu1 %v6963_v62 }
 0x184   :  { %v7044_v50 = vadd.f32 %v2243_v15, %v2150_v42  ;;  %v2152_v46 = vpop.f32.mrf.mxu0 }
 0x185   :  { %v2245_v20 = vpop.f32.mrf.mxu1  ;;  %2861 = vmatpush1.bf16.msra.mxu0 %v6167_v5 }
 0x186   :  { %v7046_v54 = vadd.f32 %v2245_v20, %v2152_v46  ;;  %v7048_v23 = vpop.f32.mrf.mxu0  ;;  %2862 = vmatprep.subr.bf16.mxu0 %v6172_v11  ;;  %v6191_v20 = vld [vmem:[#allocation2 + $0x8b0] ss:$24 sps:$4 sm:$0xff]  }
 0x187   :  { %v7050_v24 = vpop.f32.mrf.mxu1 }
 0x188   :  { %2715 = vmatmul.mubr.bf16.gmra.mxu0 %v6379_v48  ;;  %v2158_v62 = vpop.f32.mrf.mxu0  ;;  %v6196_v48 = vld [vmem:[#allocation2 + $0x884] ss:$24 sps:$4 sm:$0xff]  }
 0x189   :  { %2808 = vmatmul.mubr.bf16.gmra.mxu1 %v6970_v2  ;;  %v2251_v26 = vpop.f32.mrf.mxu1  ;;  %2863 = vmatpush1.bf16.msra.mxu0 %v6170_v17  ;;  %v6181_v2 = vld [vmem:[#allocation2 + $0x674] ss:$24 sps:$4 sm:$0xff]   ;;  %v6385_v17 = vld [vmem:[%s8368_s0 + $0xc0] ss:$24 sps:$4 sm:$0xff]  }
 0x18a   :  { %v7056_v27 = vadd.f32 %v2251_v26, %v2158_v62  ;;  %2724 = vmatprep.mubr.bf16.mxu0 %v6380_v59  ;;  %2864 = vmatprep.subr.bf16.mxu0 %v6175_v56  ;;  %v2160_v31 = vpop.f32.mrf.mxu0 }
 0x18b   :  { %v2253_v0 = vpop.f32.mrf.mxu1  ;;  %2817 = vmatprep.mubr.bf16.mxu1 %v6977_v9 }
 0x18c   :  { %v7062_v35 = vadd.f32 %v2253_v0, %v2160_v31  ;;  %v2162_v36 = vpop.f32.mrf.mxu0  ;;  %v6194_v31 = vld [vmem:[#allocation2 + $0x880] ss:$24 sps:$4 sm:$0xff]  }
 0x18d   :  { %v2255_v37 = vpop.f32.mrf.mxu1  ;;  %2865 = vmatpush1.bf16.msra.mxu0 %v6173_v55  ;;  %v6386_v55 = vld [vmem:[%s8368_s0 + $0xf4] ss:$24 sps:$4 sm:$0xff]  }
 0x18e   :  { %v7064_v39 = vadd.f32 %v2255_v37, %v2162_v36  ;;  %2866 = vmatprep.subr.bf16.mxu0 %v6178_v29  ;;  %v7066_v40 = vpop.f32.mrf.mxu0  ;;  %v6387_v37 = vld [vmem:[%s8368_s0 + $0xf0] ss:$24 sps:$4 sm:$0xff]  }
 0x18f   :  { %v7068_v41 = vpop.f32.mrf.mxu1 }
 0x190   :  { %2725 = vmatmul.mubr.bf16.gmra.mxu0 %v6381_v12  ;;  %v2168_v9 = vpop.f32.mrf.mxu0 }
 0x191   :  { %2818 = vmatmul.mubr.bf16.gmra.mxu1 %v6984_v14  ;;  %v2261_v8 = vpop.f32.mrf.mxu1  ;;  %2867 = vmatpush1.bf16.msra.mxu0 %v6176_v3  ;;  %v6199_v3 = vld [vmem:[#allocation2 + $0x854] ss:$24 sps:$4 sm:$0xff]  }
 0x192   :  { %v7074_v47 = vadd.f32 %v2261_v8, %v2168_v9  ;;  %2734 = vmatprep.mubr.bf16.mxu0 %v6382_v16  ;;  %2868 = vmatprep.subr.bf16.mxu0 %v6181_v2  ;;  %v2170_v49 = vpop.f32.mrf.mxu0  ;;  %v6197_v9 = vld [vmem:[#allocation2 + $0x850] ss:$24 sps:$4 sm:$0xff]   ;;  %v6202_v16 = vld [vmem:[#allocation2 + $0x824] ss:$24 sps:$4 sm:$0xff]  }
 0x193   :  { %v2263_v51 = vpop.f32.mrf.mxu1  ;;  %2827 = vmatprep.mubr.bf16.mxu1 %v6991_v19 }
 0x194   :  { %v7080_v52 = vadd.f32 %v2263_v51, %v2170_v49  ;;  %v2172_v14 = vpop.f32.mrf.mxu0 }
 0x195   :  { %v2265_v21 = vpop.f32.mrf.mxu1  ;;  %2869 = vmatpush1.bf16.msra.mxu0 %v6179_v45  ;;  %v6388_v45 = vld [vmem:[%s8368_s0 + $0x14] ss:$24 sps:$4 sm:$0xff]  }
 0x196   :  { %v7082_v53 = vadd.f32 %v2265_v21, %v2172_v14  ;;  %2870 = vmatprep.subr.bf16.mxu0 %v6184_v4  ;;  %v7084_v18 = vpop.f32.mrf.mxu0 }
 0x197   :  { %v7086_v58 = vpop.f32.mrf.mxu1 }
 0x198   :  { %2735 = vmatmul.mubr.bf16.gmra.mxu0 %v6383_v61  ;;  %v2178_v19 = vpop.f32.mrf.mxu0  ;;  %v6203_v61 = vld [vmem:[#allocation2 + $0x7f0] ss:$24 sps:$4 sm:$0xff]  }
 0x199   :  { %2828 = vmatmul.mubr.bf16.gmra.mxu1 %v6998_v25  ;;  %v2271_v22 = vpop.f32.mrf.mxu1  ;;  %2871 = vmatpush1.bf16.msra.mxu0 %v6182_v10 }
 0x19a   :  { %v7092_v63 = vadd.f32 %v2271_v22, %v2178_v19  ;;  %2744 = vmatprep.mubr.bf16.mxu0 %v6384_v32  ;;  %2872 = vmatprep.subr.bf16.mxu0 %v6187_v57  ;;  %v2180_v30 = vpop.f32.mrf.mxu0  ;;  %v6205_v57 = vld [vmem:[#allocation2 + $0x7f4] ss:$24 sps:$4 sm:$0xff]   ;;  %v6208_v19 = vld [vmem:[#allocation2 + $0x7c4] ss:$24 sps:$4 sm:$0xff]   ;;  %v6206_v22 = vld [vmem:[#allocation2 + $0x7c0] ss:$24 sps:$4 sm:$0xff]  }
 0x19b   :  { %v2273_v5 = vpop.f32.mrf.mxu1  ;;  %2837 = vmatprep.mubr.bf16.mxu1 %v7005_v60  ;;  %v6209_v32 = vld [vmem:[#allocation2 + $0x790] ss:$24 sps:$4 sm:$0xff]  }
 0x19c   :  { %v7098_v38 = vadd.f32 %v2273_v5, %v2180_v30  ;;  %v2182_v25 = vpop.f32.mrf.mxu0 }
 0x19d   :  { %v2275_v7 = vpop.f32.mrf.mxu1  ;;  %2873 = vmatpush1.bf16.msra.mxu0 %v6185_v28  ;;  %v6211_v28 = vld [vmem:[#allocation2 + $0x794] ss:$24 sps:$4 sm:$0xff]  }
 0x19e   :  { %v7100_v11 = vadd.f32 %v2275_v7, %v2182_v25  ;;  %2874 = vmatprep.subr.bf16.mxu0 %v6190_v1  ;;  %v7102_v42 = vpop.f32.mrf.mxu0  ;;  %v6389_v25 = vld [vmem:[%s8368_s0 + $0x10] ss:$24 sps:$4 sm:$0xff]  }
 0x19f   :  { %8390 = vst [vmem:[#allocation27_spill] sm:$0xff] %v7102_v42  ;;  %v7104_v15 = vpop.f32.mrf.mxu1 }
 0x1a0   :  { %8391 = vst [vmem:[#allocation28_spill] sm:$0xff] %v7104_v15  ;;  %2745 = vmatmul.mubr.bf16.gmra.mxu0 %v6385_v17  ;;  %v2188_v60 = vpop.f32.mrf.mxu0 }
 0x1a1   :  { %2838 = vmatmul.mubr.bf16.gmra.mxu1 %v7012_v33  ;;  %v2281_v46 = vpop.f32.mrf.mxu1  ;;  %2875 = vmatpush2.bf16.msra.mxu0 %v6188_v34 }
 0x1a2   :  { %v7110_v56 = vadd.f32 %v2281_v46, %v2188_v60  ;;  %2754 = vmatprep.mubr.bf16.mxu0 %v6386_v55  ;;  %2876 = vmatprep.subr.bf16.mxu0 %v6193_v13  ;;  %v2190_v62 = vpop.f32.mrf.mxu0  ;;  %v6390_v13 = vld [vmem:[%s8368_s0 + $0x44] ss:$24 sps:$4 sm:$0xff]  }
 0x1a3   :  { %v2283_v26 = vpop.f32.mrf.mxu1  ;;  %2847 = vmatprep.mubr.bf16.mxu1 %v7019_v6 }
 0x1a4   :  { %v7116_v59 = vadd.f32 %v2283_v26, %v2190_v62  ;;  %v2192_v33 = vpop.f32.mrf.mxu0 }
 0x1a5   :  { %v2285_v29 = vpop.f32.mrf.mxu1  ;;  %2877 = vmatpush2.bf16.msra.mxu0 %v6191_v20 }
 0x1a6   :  { %v7118_v0 = vadd.f32 %v2285_v29, %v2192_v33  ;;  %2878 = vmatprep.subr.bf16.mxu0 %v6196_v48  ;;  %v7120_v2 = vpop.f32.mrf.mxu0  ;;  %v6391_v33 = vld [vmem:[%s8368_s0 + $0x40] ss:$24 sps:$4 sm:$0xff]  }
 0x1a7   :  { %8392 = vst [vmem:[#allocation29_spill] sm:$0xff] %v7120_v2  ;;  %v7122_v36 = vpop.f32.mrf.mxu1 }
 0x1a8   :  { %8393 = vst [vmem:[#allocation30_spill] sm:$0xff] %v7122_v36  ;;  %2755 = vmatmul.mubr.bf16.gmra.mxu0 %v6387_v37  ;;  %v2198_v6 = vpop.f32.mrf.mxu0  ;;  %v6249_v36 = vld [vmem:[%s8371_s3 + $0x154] ss:$12 sps:$4 sm:$0xff]  }
 0x1a9   :  { %2848 = vmatmul.mubr.bf16.gmra.mxu1 %v7026_v43  ;;  %v2291_v12 = vpop.f32.mrf.mxu1  ;;  %2879 = vmatpush2.bf16.msra.mxu0 %v6194_v31  ;;  %v6200_v43 = vld [vmem:[#allocation2 + $0x820] ss:$24 sps:$4 sm:$0xff]  }
 0x1aa   :  { %v7128_v8 = vadd.f32 %v2291_v12, %v2198_v6  ;;  %2890 = vmatprep.mubr.bf16.mxu0 %v6388_v45  ;;  %2880 = vmatprep.subr.bf16.mxu0 %v6199_v3  ;;  %v2200_v4 = vpop.f32.mrf.mxu0 }
 0x1ab   :  { %v2293_v49 = vpop.f32.mrf.mxu1 }
 0x1ac   :  { %v7133_v51 = vadd.f32 %v2293_v49, %v2200_v4  ;;  %v2202_v14 = vpop.f32.mrf.mxu0  ;;  %v6393_v4 = vld [vmem:[%s8368_s0 + $0x70] ss:$24 sps:$4 sm:$0xff]  }
 0x1ad   :  { %v2295_v21 = vpop.f32.mrf.mxu1  ;;  %2881 = vmatpush2.bf16.msra.mxu0 %v6197_v9 }
 0x1ae   :  { %v7135_v10 = vadd.f32 %v2295_v21, %v2202_v14  ;;  %2882 = vmatprep.subr.bf16.mxu0 %v6202_v16  ;;  %v7137_v1 = vpop.f32.mrf.mxu0 }
 0x1af   :  { %8394 = vst [vmem:[#allocation31_spill] sm:$0xff] %v7137_v1  ;;  %v7139_v30 = vpop.f32.mrf.mxu1 }
 0x1b0   :  { %8395 = vst [vmem:[#allocation32_spill] sm:$0xff] %v7139_v30 }
 0x1b1   :  { %2883 = vmatpush2.bf16.msra.mxu0 %v6200_v43 }
 0x1b2   :  { %2884 = vmatprep.subr.bf16.mxu0 %v6205_v57 }
 0x1b5   :  { %2885 = vmatpush2.bf16.msra.mxu0 %v6203_v61 }
 0x1b6   :  { %2886 = vmatprep.subr.bf16.mxu0 %v6208_v19 }
 0x1b9   :  { %2887 = vmatpush2.bf16.msra.mxu0 %v6206_v22 }
 0x1ba   :  { %2888 = vmatprep.subr.bf16.mxu0 %v6211_v28 }
 0x1bd   :  { %2889 = vmatpush2.bf16.msra.mxu0 %v6209_v32  ;;  %v6395_v32 = vld [vmem:[%s8368_s0 + $0xa0] ss:$24 sps:$4 sm:$0xff]  }
 0x1c0   :  { %v2334_v5 = vpop.f32.mrf.mxu0  ;;  %2891 = vmatmul.mubr.bf16.vlgmr.msra.gmra.mxu0 %v6389_v25  ;;  %v6212_v25 = vld [vmem:[%s8371_s3 + $0xa8] ss:$12 sps:$4 sm:$0xff]  }
 0x1c1   :  { %v7144_v7 = vpop.f32.mrf.mxu1  ;;  %v7147_v34 = vadd.f32 %v2334_v5, %v7038_v44  ;;  %2900 = vmatprep.mubr.bf16.mxu0 %v6390_v13  ;;  %v6214_v13 = vld [vmem:[%s8371_s3 + $0xac] ss:$12 sps:$4 sm:$0xff]  }
 0x1c2   :  { %v2336_v17 = vpop.f32.mrf.mxu0  ;;  %3563 = vmatprep.subr.bf16.mxu1 %v6214_v13 }
 0x1c3   :  { %v7152_v60 = vpop.f32.mrf.mxu1  ;;  %v7155_v46 = vadd.f32 %v2336_v17, %v7044_v50  ;;  %3564 = vmatpush1.bf16.msra.mxu1 %v6212_v25 }
 0x1c4   :  { %v2338_v20 = vpop.f32.mrf.mxu0 }
 0x1c5   :  { %v7157_v55 = vpop.f32.mrf.mxu1  ;;  %v7160_v48 = vadd.f32 %v2338_v20, %v7046_v54  ;;  %v6392_v54 = vld [vmem:[%s8368_s0 + $0x74] ss:$24 sps:$4 sm:$0xff]  }
 0x1c6   :  { %v7162_v62 = vpop.f32.mrf.mxu0 }
 0x1c7   :  { %8396 = vst [vmem:[#allocation33_spill] sm:$0xff] %v7162_v62  ;;  %v7164_v44 = vpop.f32.mrf.mxu1 }
 0x1c8   :  { %v2344_v26 = vpop.f32.mrf.mxu0  ;;  %2901 = vmatmul.mubr.bf16.gmra.mxu0 %v6391_v33 }
 0x1c9   :  { %v7169_v29 = vpop.f32.mrf.mxu1  ;;  %v7172_v50 = vadd.f32 %v2344_v26, %v7056_v27  ;;  %2910 = vmatprep.mubr.bf16.mxu0 %v6392_v54 }
 0x1ca   :  { %v2346_v31 = vpop.f32.mrf.mxu0 }
 0x1cb   :  { %v7177_v3 = vpop.f32.mrf.mxu1  ;;  %v7180_v37 = vadd.f32 %v2346_v31, %v7062_v35  ;;  %v6215_v31 = vld [vmem:[%s8371_s3 + $0x90] ss:$12 sps:$4 sm:$0xff]  }
 0x1cc   :  { %v2348_v6 = vpop.f32.mrf.mxu0 }
 0x1cd   :  { %v7182_v12 = vpop.f32.mrf.mxu1  ;;  %v7185_v9 = vadd.f32 %v2348_v6, %v7064_v39  ;;  %v6394_v39 = vld [vmem:[%s8368_s0 + $0xa4] ss:$24 sps:$4 sm:$0xff]   ;;  %v6217_v6 = vld [vmem:[%s8371_s3 + $0x94] ss:$12 sps:$4 sm:$0xff]  }
 0x1ce   :  { %v7187_v45 = vpop.f32.mrf.mxu0  ;;  %3565 = vmatprep.subr.bf16.mxu1 %v6217_v6 }
 0x1cf   :  { %8397 = vst [vmem:[#allocation34_spill] sm:$0xff] %v7187_v45  ;;  %v7189_v27 = vpop.f32.mrf.mxu1  ;;  %3566 = vmatpush1.bf16.msra.mxu1 %v6215_v31  ;;  %v6223_v31 = vld [vmem:[%s8371_s3 + $0x64] ss:$12 sps:$4 sm:$0xff]   ;;  %v2975_v45 = vlaneseq }
 0x1d0   :  { %v2354_v16 = vpop.f32.mrf.mxu0  ;;  %2911 = vmatmul.mubr.bf16.gmra.mxu0 %v6393_v4 }
 0x1d1   :  { %v7194_v49 = vpop.f32.mrf.mxu1  ;;  %v7197_v35 = vadd.f32 %v2354_v16, %v7074_v47  ;;  %2920 = vmatprep.mubr.bf16.mxu0 %v6394_v39  ;;  %v6397_v39 = vld [vmem:[%s8368_s0 + $0xd0] ss:$24 sps:$4 sm:$0xff]   ;;  %v7362_v1 = vshrl.u32 %v2975_v45, 7 }
 0x1d2   :  { %v2356_v14 = vpop.f32.mrf.mxu0 }
 0x1d3   :  { %v7202_v21 = vpop.f32.mrf.mxu1  ;;  %v7205_v43 = vadd.f32 %v2356_v14, %v7080_v52  ;;  %vm2977_vm0 = vcmp.lt.s32.totalorder %v7362_v1, 7  ;;  %vm3050_vm1 = vcmp.lt.s32.totalorder %v7362_v1, 6  ;;  %vm3785_vm2 = vcmp.lt.s32.totalorder %v7362_v1, 4 }
 0x1d4   :  { %v2358_v57 = vpop.f32.mrf.mxu0 }
 0x1d5   :  { %v7207_v61 = vpop.f32.mrf.mxu1  ;;  %v7210_v19 = vadd.f32 %v2358_v57, %v7082_v53  ;;  %v6396_v53 = vld [vmem:[%s8368_s0 + $0xd4] ss:$24 sps:$4 sm:$0xff]   ;;  %v6398_v57 = vld [vmem:[%s8368_s0 + $0x104] ss:$24 sps:$4 sm:$0xff]  }
 0x1d6   :  { %v7212_v22 = vpop.f32.mrf.mxu0 }
 0x1d7   :  { %8398 = vst [vmem:[#allocation35_spill] sm:$0xff] %v7212_v22  ;;  %v7214_v47 = vpop.f32.mrf.mxu1 }
 0x1d8   :  { %v2364_v28 = vpop.f32.mrf.mxu0  ;;  %2921 = vmatmul.mubr.bf16.gmra.mxu0 %v6395_v32  ;;  %v6220_v32 = vld [vmem:[%s8371_s3 + $0x7c] ss:$12 sps:$4 sm:$0xff]  }
 0x1d9   :  { %v7219_v5 = vpop.f32.mrf.mxu1  ;;  %v7222_v52 = vadd.f32 %v2364_v28, %v7092_v63  ;;  %2930 = vmatprep.mubr.bf16.mxu0 %v6396_v53  ;;  %v6218_v28 = vld [vmem:[%s8371_s3 + $0x78] ss:$12 sps:$4 sm:$0xff]   ;;  %3567 = vmatprep.subr.bf16.mxu1 %v6220_v32 }
 0x1da   :  { %v2366_v17 = vpop.f32.mrf.mxu0  ;;  %3568 = vmatpush1.bf16.msra.mxu1 %v6218_v28  ;;  %v6225_v28 = vld [vmem:[%s8371_s3 + $0x48] ss:$12 sps:$4 sm:$0xff]   ;;  %v6227_v32 = vld [vmem:[%s8371_s3 + $0x4c] ss:$12 sps:$4 sm:$0xff]  }
 0x1db   :  { %v7233_v20 = vpop.f32.mrf.mxu1  ;;  %v7236_v26 = vadd.f32 %v2366_v17, %v7098_v38  ;;  %3569 = vmatprep.subr.bf16.mxu1 %v6223_v31 }
 0x1dc   :  { %v2368_v63 = vpop.f32.mrf.mxu0 }
 0x1dd   :  { %v7238_v33 = vpop.f32.mrf.mxu1  ;;  %v7241_v54 = vadd.f32 %v2368_v63, %v7100_v11  ;;  %v6221_v63 = vld [vmem:[%s8371_s3 + $0x60] ss:$12 sps:$4 sm:$0xff]  }
 0x1de   :  { %v7249_v16 = vpop.f32.mrf.mxu0  ;;  %3570 = vmatpush1.bf16.msra.mxu1 %v6221_v63 }
 0x1df   :  { %8399 = vst [vmem:[#allocation36_spill] sm:$0xff] %v7249_v16  ;;  %v7251_v38 = vpop.f32.mrf.mxu1  ;;  %3571 = vmatprep.subr.bf16.mxu1 %v6227_v32 }
 0x1e0   :  { %v2374_v4 = vpop.f32.mrf.mxu0  ;;  %2931 = vmatmul.mubr.bf16.gmra.mxu0 %v6397_v39 }
 0x1e1   :  { %v7256_v11 = vpop.f32.mrf.mxu1  ;;  %v7259_v14 = vadd.f32 %v2374_v4, %v7110_v56  ;;  %2940 = vmatprep.mubr.bf16.mxu0 %v6398_v57 }
 0x1e2   :  { %v2376_v53 = vpop.f32.mrf.mxu0  ;;  %3572 = vmatpush1.bf16.msra.mxu1 %v6225_v28  ;;  %v6233_v28 = vld [vmem:[%s8371_s3 + $0x98] ss:$12 sps:$4 sm:$0xff]  }
 0x1e3   :  { %v7271_v25 = vadd.f32 %v2376_v53, %v7116_v59  ;;  %v7273_v13 = vpop.f32.mrf.mxu1  ;;  %v6224_v59 = vld [vmem:[%s8371_s3 + $0x170] ss:$12 sps:$4 sm:$0xff]  }
 0x1e4   :  { %v2378_v56 = vpop.f32.mrf.mxu0  ;;  %5483 = vmatprep.subr.bf16.mxu0 %v6224_v59  ;;  %v6228_v53 = vld [vmem:[%s8371_s3 + $0xb0] ss:$12 sps:$4 sm:$0xff]  }
 0x1e5   :  { %v7276_v17 = vadd.f32 %v2378_v56, %v7118_v0  ;;  %v6399_v0 = vld [vmem:[%s8368_s0 + $0x100] ss:$24 sps:$4 sm:$0xff]   ;;  %v7292_v39 = vpop.f32.mrf.mxu1  ;;  %5484 = vmatpush3.bf16.msra.mxu0 %v6228_v53 }
 0x1e6   :  { %v7284_v6 = vpop.f32.mrf.mxu0  ;;  %v6234_v53 = vld [vmem:[%s8371_s3 + $0x18] ss:$12 sps:$4 sm:$0xff]  }
 0x1e7   :  { %8400 = vst [vmem:[#allocation37_spill] sm:$0xff] %v7284_v6  ;;  %v7309_v63 = vpop.f32.mrf.mxu1 }
 0x1e8   :  { %v2384_v4 = vpop.f32.mrf.mxu0  ;;  %2941 = vmatmul.mubr.bf16.gmra.mxu0 %v6399_v0  ;;  %v6231_v0 = vld [vmem:[%s8371_s3 + $0x34] ss:$12 sps:$4 sm:$0xff]  }
 0x1e9   :  { %v7295_v57 = vadd.f32 %v2384_v4, %v7128_v8  ;;  %v6229_v4 = vld [vmem:[%s8371_s3 + $0x30] ss:$12 sps:$4 sm:$0xff]   ;;  %3573 = vmatprep.subr.bf16.mxu1 %v6231_v0  ;;  %v7329_v32 = vpop.f32.mrf.mxu1  ;;  %v6241_v0 = vld [vmem:[%s8371_s3 + $0x80] ss:$12 sps:$4 sm:$0xff]  }
 0x1ea   :  { %v2386_v56 = vpop.f32.mrf.mxu0  ;;  %3574 = vmatpush1.bf16.msra.mxu1 %v6229_v4 }
 0x1eb   :  { %v7307_v31 = vadd.f32 %v2386_v56, %v7133_v51  ;;  %v6232_v51 = vld [vmem:[%s8371_s3 + $0x158] ss:$12 sps:$4 sm:$0xff]   ;;  %v6237_v56 = vld [vmem:[%s8371_s3 + $0x140] ss:$12 sps:$4 sm:$0xff]   ;;  %v7343_v4 = vpop.f32.mrf.mxu1 }
 0x1ec   :  { %v2388_v8 = vpop.f32.mrf.mxu0  ;;  %5485 = vmatprep.subr.bf16.mxu0 %v6232_v51  ;;  %v6238_v51 = vld [vmem:[%s8371_s3] ss:$12 sps:$4 sm:$0xff]  }
 0x1ed   :  { %v7312_v59 = vadd.f32 %v2388_v8, %v7135_v10  ;;  %v6236_v10 = vld [vmem:[%s8371_s3 + $0x1c] ss:$12 sps:$4 sm:$0xff]   ;;  %5486 = vmatpush3.bf16.msra.mxu0 %v6233_v28  ;;  %v6240_v8 = vld [vmem:[%s8371_s3 + $0x4] ss:$12 sps:$4 sm:$0xff]   ;;  %v7348_v28 = vpop.f32.mrf.mxu1 }
 0x1ee   :  { %3575 = vmatprep.subr.bf16.mxu1 %v6236_v10  ;;  %5487 = vmatprep.subr.bf16.mxu0 %v6237_v56  ;;  %v7352_v6 = vpop.f32.mrf.mxu0 }
 0x1ef   :  { %3576 = vmatpush1.bf16.msra.mxu1 %v6234_v53  ;;  %v7350_v10 = vpop.f32.mrf.mxu1  ;;  %8401 = vst [vmem:[#allocation38_spill] sm:$0xff] %v7352_v6  ;;  %v6244_v53 = vld [vmem:[%s8371_s3 + $0x16c] ss:$12 sps:$4 sm:$0xff]  }
 0x1f0   :  { %3577 = vmatprep.subr.bf16.mxu1 %v6240_v8  ;;  %v6242_v8 = vld [vmem:[%s8371_s3 + $0x168] ss:$12 sps:$4 sm:$0xff]  }
 0x1f1   :  { %5488 = vmatpush3.bf16.msra.mxu0 %v6241_v0 }
 0x1f3   :  { %3578 = vmatpush1.bf16.msra.mxu1 %v6238_v51 }
 0x1f4   :  { %3579 = vmatprep.subr.bf16.mxu1 %v6244_v53 }
 0x1f7   :  { %3580 = vmatpush2.bf16.msra.mxu1 %v6242_v8 }
 0x1f8   :  { %3581 = vmatprep.subr.bf16.mxu1 %v6249_v36  ;;  %v6251_v36 = vld [vmem:[%s8371_s3 + $0x138] ss:$12 sps:$4 sm:$0xff]  }
 0x200   :  { %v2520_v16 = vpop.f32.mrf.mxu0 }
 0x201   :  { %v2613_v22 = vpop.f32.mrf.mxu1  ;;  %v2521_v56 = vadd.f32 %v2520_v16, %v7144_v7  ;;  %v6245_v16 = vld [vmem:[%s8371_s3 + $0x128] ss:$12 sps:$4 sm:$0xff]  }
 0x202   :  { %v2522_v0 = vpop.f32.mrf.mxu0  ;;  %5489 = vmatprep.subr.bf16.mxu0 %v6245_v16 }
 0x203   :  { %v2615_v62 = vpop.f32.mrf.mxu1  ;;  %v2523_v51 = vadd.f32 %v2522_v0, %v7152_v60  ;;  %v7367_v2 = vadd.f32 %v2613_v22, %v2521_v56  ;;  %v6247_v60 = vld [vmem:[%s8371_s3 + $0x150] ss:$12 sps:$4 sm:$0xff]  }
 0x204   :  { %v2524_v6 = vpop.f32.mrf.mxu0  ;;  %3582 = vmatpush2.bf16.msra.mxu1 %v6247_v60 }
 0x205   :  { %v2617_v30 = vpop.f32.mrf.mxu1  ;;  %v2525_v7 = vadd.f32 %v2524_v6, %v7157_v55  ;;  %v7376_v53 = vadd.f32 %v2615_v62, %v2523_v51  ;;  %v6253_v6 = vld [vmem:[%s8371_s3 + $0x13c] ss:$12 sps:$4 sm:$0xff]   ;;  %v8382_v56 = vrot.slane %v7367_v2, 1 }
 0x206   :  { %v2526_v45 = vpop.f32.mrf.mxu0  ;;  %3583 = vmatprep.subr.bf16.mxu1 %v6253_v6 }
 0x207   :  { %v2619_v8 = vpop.f32.mrf.mxu1  ;;  %v2527_v0 = vadd.f32 %v2526_v45, %v7164_v44  ;;  %v2618_v15 = vadd.f32 %v2617_v30, %v2525_v7  ;;  %v8384_v30 = vrot.slane %v7376_v53, 1 }
 0x208   :  { %v2530_v55 = vpop.f32.mrf.mxu0  ;;  %3584 = vmatpush2.bf16.msra.mxu1 %v6251_v36 }
 0x209   :  { %v2623_v22 = vpop.f32.mrf.mxu1  ;;  %v2953_v62 = vrot.slane %v2618_v15, 1  ;;  %v2531_v51 = vadd.f32 %v2530_v55, %v7169_v29  ;;  %v7385_v42 = vadd.f32 %v2619_v8, %v2527_v0  ;;  %v6257_v55 = vld [vmem:[%s8371_s3 + $0x124] ss:$12 sps:$4 sm:$0xff]  }
 0x20a   :  { %v2532_v44 = vpop.f32.mrf.mxu0  ;;  %3585 = vmatprep.subr.bf16.mxu1 %v6257_v55 }
 0x20b   :  { %v2625_v7 = vpop.f32.mrf.mxu1  ;;  %v2998_v16 = vsel %vm2977_vm0, %v8382_v56, %v2953_v62  ;;  %v8383_v15 = vrot.slane %v7385_v42, 1  ;;  %v2533_v29 = vadd.f32 %v2532_v44, %v7177_v3  ;;  %v2624_v60 = vadd.f32 %v2623_v22, %v2531_v51  ;;  %v6255_v22 = vld [vmem:[%s8371_s3 + $0x120] ss:$12 sps:$4 sm:$0xff]  }
 0x20c   :  { %v7398_v45 = vadd.f32 %v2998_v16, %v7147_v34  ;;  %v2534_v8 = vpop.f32.mrf.mxu0  ;;  %v6246_v34 = vld [vmem:[%s8371_s3 + $0x68] ss:$12 sps:$4 sm:$0xff]   ;;  %3586 = vmatpush2.bf16.msra.mxu1 %v6255_v22 }
 0x20d   :  { %v2627_v0 = vpop.f32.mrf.mxu1  ;;  %v2999_v6 = vsel %vm2977_vm0, %v8384_v30, %v8383_v15  ;;  %v2955_v56 = vrot.slane %v2624_v60, 1  ;;  %v2535_v3 = vadd.f32 %v2534_v8, %v7182_v12  ;;  %v7419_v36 = vadd.f32 %v2625_v7, %v2533_v29  ;;  %5490 = vmatpush3.bf16.msra.mxu0 %v6246_v34  ;;  %v6262_v7 = vld [vmem:[%s8371_s3 + $0x10c] ss:$12 sps:$4 sm:$0xff]  }
 0x20e   :  { %8402 = vst [vmem:[#allocation39_spill] sm:$0xff] %v7398_v45  ;;  %v7417_v51 = vadd.f32 %v2999_v6, %v7155_v46  ;;  %v2536_v44 = vpop.f32.mrf.mxu0  ;;  %v6250_v46 = vld [vmem:[%s8371_s3 + $0x110] ss:$12 sps:$4 sm:$0xff]   ;;  %3587 = vmatprep.subr.bf16.mxu1 %v6262_v7 }
 0x20f   :  { %v2629_v16 = vpop.f32.mrf.mxu1  ;;  %v2996_v60 = vsel %vm2977_vm0, %v2953_v62, %v2955_v56  ;;  %v2537_v12 = vadd.f32 %v2536_v44, %v7189_v27  ;;  %v2628_v8 = vadd.f32 %v2627_v0, %v2535_v3  ;;  %v6260_v0 = vld [vmem:[%s8371_s3 + $0x108] ss:$12 sps:$4 sm:$0xff]   ;;  %v8389_v55 = vrot.slane %v7419_v36, 1  ;;  %5491 = vmatprep.subr.bf16.mxu0 %v6250_v46  ;;  %v6264_v46 = vld [vmem:[%s8371_s3 + $0xf0] ss:$12 sps:$4 sm:$0xff]  }
 0x210   :  { %8403 = vst [vmem:[#allocation40_spill] sm:$0xff] %v7417_v51  ;;  %v7425_v15 = vadd.f32 %v2996_v60, %v7160_v48  ;;  %v2540_v30 = vpop.f32.mrf.mxu0  ;;  %v6254_v48 = vld [vmem:[%s8371_s3 + $0x50] ss:$12 sps:$4 sm:$0xff]   ;;  %3588 = vmatpush2.bf16.msra.mxu1 %v6260_v0 }
 0x211   :  { %v2633_v45 = vpop.f32.mrf.mxu1  ;;  %v2957_v29 = vrot.slane %v2628_v8, 1  ;;  %v2541_v62 = vadd.f32 %v2540_v30, %v7194_v49  ;;  %v7434_v27 = vadd.f32 %v2629_v16, %v2537_v12  ;;  %5492 = vmatpush3.bf16.msra.mxu0 %v6254_v48  ;;  %v6258_v12 = vld [vmem:[%s8371_s3 + $0xf8] ss:$12 sps:$4 sm:$0xff]  }
 0x212   :  { %8404 = vst [vmem:[#allocation41_spill] sm:$0xff] %v7425_v15  ;;  %v2542_v6 = vpop.f32.mrf.mxu0  ;;  %v6259_v8 = vld [vmem:[%s8371_s3 + $0x38] ss:$12 sps:$4 sm:$0xff]   ;;  %5493 = vmatprep.subr.bf16.mxu0 %v6258_v12 }
 0x213   :  { %v2635_v3 = vpop.f32.mrf.mxu1  ;;  %v2994_v34 = vsel %vm2977_vm0, %v2955_v56, %v2957_v29  ;;  %v8387_v49 = vrot.slane %v7434_v27, 1  ;;  %v2543_v30 = vadd.f32 %v2542_v6, %v7202_v21  ;;  %v2634_v22 = vadd.f32 %v2633_v45, %v2541_v62  ;;  %v6266_v56 = vld [vmem:[%s8371_s3 + $0xf4] ss:$12 sps:$4 sm:$0xff]  }
 0x214   :  { %v7448_v44 = vadd.f32 %v2994_v34, %v7172_v50  ;;  %v2544_v16 = vpop.f32.mrf.mxu0  ;;  %3589 = vmatprep.subr.bf16.mxu1 %v6266_v56  ;;  %v8435_v15 = vld [vmem:[#allocation28_spill] sm:$0xff] }
 0x215   :  { %v2637_v60 = vpop.f32.mrf.mxu1  ;;  %v2995_v21 = vsel %vm2977_vm0, %v8389_v55, %v8387_v49  ;;  %v2959_v45 = vrot.slane %v2634_v22, 1  ;;  %v2545_v50 = vadd.f32 %v2544_v16, %v7207_v61  ;;  %v7472_v62 = vadd.f32 %v2635_v3, %v2543_v30  ;;  %5494 = vmatpush3.bf16.msra.mxu0 %v6259_v8  ;;  %3590 = vmatpush2.bf16.msra.mxu1 %v6264_v46  ;;  %v6263_v3 = vld [vmem:[%s8371_s3 + $0xe0] ss:$12 sps:$4 sm:$0xff]   ;;  %v6270_v30 = vld [vmem:[%s8371_s3 + $0xdc] ss:$12 sps:$4 sm:$0xff]  }
 0x216   :  { %8405 = vst [vmem:[#allocation42_spill] sm:$0xff] %v7448_v44  ;;  %v7470_v7 = vadd.f32 %v2995_v21, %v7180_v37  ;;  %v2546_v48 = vpop.f32.mrf.mxu0  ;;  %5495 = vmatprep.subr.bf16.mxu0 %v6263_v3  ;;  %3591 = vmatprep.subr.bf16.mxu1 %v6270_v30  ;;  %v6273_v3 = vld [vmem:[%s8371_s3 + $0xc0] ss:$12 sps:$4 sm:$0xff]  }
 0x217   :  { %v2639_v0 = vpop.f32.mrf.mxu1  ;;  %v2992_v61 = vsel %vm2977_vm0, %v2957_v29, %v2959_v45  ;;  %v2547_v6 = vadd.f32 %v2546_v48, %v7214_v47  ;;  %v2638_v34 = vadd.f32 %v2637_v60, %v2545_v50  ;;  %v6268_v60 = vld [vmem:[%s8371_s3 + $0xd8] ss:$12 sps:$4 sm:$0xff]   ;;  %v8388_v56 = vrot.slane %v7472_v62, 1  ;;  %v8434_v44 = vld [vmem:[#allocation27_spill] sm:$0xff] }
 0x218   :  { %8406 = vst [vmem:[#allocation43_spill] sm:$0xff] %v7470_v7  ;;  %v7478_v22 = vadd.f32 %v2992_v61, %v7185_v9  ;;  %v2550_v16 = vpop.f32.mrf.mxu0  ;;  %v6267_v9 = vld [vmem:[%s8371_s3 + $0x20] ss:$12 sps:$4 sm:$0xff]   ;;  %v2268_v7 = vadd.f32 %v7086_v58, %v7084_v18 }
 0x219   :  { %v2643_v37 = vpop.f32.mrf.mxu1  ;;  %v2961_v12 = vrot.slane %v2638_v34, 1  ;;  %v2551_v29 = vadd.f32 %v2550_v16, %v7219_v5  ;;  %v7487_v47 = vadd.f32 %v2639_v0, %v2547_v6  ;;  %5496 = vmatpush3.bf16.msra.mxu0 %v6267_v9  ;;  %3592 = vmatpush2.bf16.msra.mxu1 %v6268_v60  ;;  %v6271_v34 = vld [vmem:[%s8371_s3 + $0xc8] ss:$12 sps:$4 sm:$0xff]  }
 0x21a   :  { %8407 = vst [vmem:[#allocation44_spill] sm:$0xff] %v7478_v22  ;;  %v2552_v21 = vpop.f32.mrf.mxu0  ;;  %5497 = vmatprep.subr.bf16.mxu0 %v6271_v34  ;;  %v2258_v22 = vadd.f32 %v7068_v41, %v7066_v40  ;;  %v3107_v40 = vsub.s32 1, %v7362_v1  ;;  %v8441_v41 = vld [vmem:[#allocation33_spill] sm:$0xff]  ;;  %v8442_v58 = vld [vmem:[#allocation34_spill] sm:$0xff] }
 0x21b   :  { %v2645_v50 = vpop.f32.mrf.mxu1  ;;  %v2990_v8 = vsel %vm2977_vm0, %v2959_v45, %v2961_v12  ;;  %v8385_v5 = vrot.slane %v7487_v47, 1  ;;  %v2553_v46 = vadd.f32 %v2552_v21, %v7233_v20  ;;  %v2644_v48 = vadd.f32 %v2643_v37, %v2551_v29  ;;  %v6275_v45 = vld [vmem:[%s8371_s3 + $0xc4] ss:$12 sps:$4 sm:$0xff]   ;;  %v6272_v37 = vld [vmem:[%s8371_s3 + $0x8] ss:$12 sps:$4 sm:$0xff]  }
 0x21c   :  { %v7501_v0 = vadd.f32 %v2990_v8, %v7197_v35  ;;  %v2554_v61 = vpop.f32.mrf.mxu0  ;;  %3593 = vmatprep.subr.bf16.mxu1 %v6275_v45 }
 0x21d   :  { %v2647_v6 = vpop.f32.mrf.mxu1  ;;  %v2991_v20 = vsel %vm2977_vm0, %v8388_v56, %v8385_v5  ;;  %v2963_v16 = vrot.slane %v2644_v48, 1  ;;  %v2555_v35 = vadd.f32 %v2554_v61, %v7238_v33  ;;  %v7525_v29 = vadd.f32 %v2645_v50, %v2553_v46  ;;  %5498 = vmatpush3.bf16.msra.mxu0 %v6272_v37  ;;  %3594 = vmatpush2.bf16.msra.mxu1 %v6273_v3 }
 0x21e   :  { %8408 = vst [vmem:[#allocation45_spill] sm:$0xff] %v7501_v0  ;;  %v7523_v30 = vadd.f32 %v2991_v20, %v7205_v43  ;;  %v2556_v9 = vpop.f32.mrf.mxu0  ;;  %v2248_v0 = vadd.f32 %v7050_v24, %v7048_v23  ;;  %v3099_v24 = vld [vmem:[#allocation5] sm:$0x3] }
 0x21f   :  { %v2649_v60 = vpop.f32.mrf.mxu1  ;;  %v2988_v33 = vsel %vm2977_vm0, %v2961_v12, %v2963_v16  ;;  %v2557_v21 = vadd.f32 %v2556_v9, %v7251_v38  ;;  %v2648_v8 = vadd.f32 %v2647_v6, %v2555_v35  ;;  %v8386_v34 = vrot.slane %v7525_v29, 1 }
 0x220   :  { %8409 = vst [vmem:[#allocation46_spill] sm:$0xff] %v7523_v30  ;;  %v7531_v48 = vadd.f32 %v2988_v33, %v7210_v19  ;;  %v2560_v61 = vpop.f32.mrf.mxu0  ;;  %v2341_v18 = vadd.f32 %v8441_v41, %v2248_v0 }
 0x221   :  { %v2653_v43 = vpop.f32.mrf.mxu1  ;;  %v2965_v20 = vrot.slane %v2648_v8, 1  ;;  %v2561_v50 = vadd.f32 %v2560_v61, %v7256_v11  ;;  %v2650_v46 = vadd.f32 %v2649_v60, %v2557_v21 }
 0x222   :  { %8410 = vst [vmem:[#allocation47_spill] sm:$0xff] %v7531_v48  ;;  %v2562_v45 = vpop.f32.mrf.mxu0 }
 0x223   :  { %v2655_v5 = vpop.f32.mrf.mxu1  ;;  %v2986_v12 = vsel %vm2977_vm0, %v2963_v16, %v2965_v20  ;;  %v2966_v38 = vrot.slane %v2650_v46, 1  ;;  %v2563_v6 = vadd.f32 %v2562_v45, %v7273_v13  ;;  %v2654_v35 = vadd.f32 %v2653_v43, %v2561_v50 }
 0x224   :  { %v7539_v19 = vadd.f32 %v2986_v12, %v7222_v52  ;;  %v2564_v37 = vpop.f32.mrf.mxu0 }
 0x225   :  { %v2657_v3 = vpop.f32.mrf.mxu1  ;;  %v2987_v11 = vsel %vm2977_vm0, %v8386_v34, %v2966_v38  ;;  %v2967_v9 = vrot.slane %v2654_v35, 1  ;;  %v2565_v60 = vadd.f32 %v2564_v37, %v7292_v39  ;;  %v2656_v33 = vadd.f32 %v2655_v5, %v2563_v6 }
 0x226   :  { %8411 = vst [vmem:[#allocation48_spill] sm:$0xff] %v7539_v19  ;;  %v7547_v16 = vadd.f32 %v2987_v11, %v7236_v26  ;;  %v2566_v21 = vpop.f32.mrf.mxu0 }
 0x227   :  { %v2659_v13 = vpop.f32.mrf.mxu1  ;;  %v2984_v52 = vsel %vm2977_vm0, %v2965_v20, %v2967_v9  ;;  %v2968_v8 = vrot.slane %v2656_v33, 1  ;;  %v2567_v61 = vadd.f32 %v2566_v21, %v7309_v63  ;;  %v2658_v43 = vadd.f32 %v2657_v3, %v2565_v60 }
 0x228   :  { %8412 = vst [vmem:[#allocation49_spill] sm:$0xff] %v7547_v16  ;;  %v7553_v50 = vadd.f32 %v2984_v52, %v7241_v54  ;;  %v2570_v46 = vpop.f32.mrf.mxu0 }
 0x229   :  { %v2663_v45 = vpop.f32.mrf.mxu1  ;;  %v7557_v39 = vsel %vm2977_vm0, %v2966_v38, %v2968_v8  ;;  %v2969_v26 = vrot.slane %v2658_v43, 1  ;;  %v2571_v5 = vadd.f32 %v2570_v46, %v7329_v32  ;;  %v2660_v12 = vadd.f32 %v2659_v13, %v2567_v61 }
 0x22a   :  { %8413 = vst [vmem:[#allocation50_spill] sm:$0xff] %v7553_v50  ;;  %v2572_v6 = vpop.f32.mrf.mxu0 }
 0x22b   :  { %v2665_v35 = vpop.f32.mrf.mxu1  ;;  %v2982_v20 = vsel %vm2977_vm0, %v2967_v9, %v2969_v26  ;;  %v2970_v63 = vrot.slane %v2660_v12, 1  ;;  %v2573_v37 = vadd.f32 %v2572_v6, %v7343_v4  ;;  %v2664_v54 = vadd.f32 %v2663_v45, %v2571_v5 }
 0x22c   :  { %v7564_v3 = vadd.f32 %v2982_v20, %v7259_v14  ;;  %v2574_v11 = vpop.f32.mrf.mxu0  ;;  %v8417_v5 = vrot.slane %v7367_v2, 1 }
 0x22d   :  { %v2667_v60 = vpop.f32.mrf.mxu1  ;;  %v2983_v38 = vsel %vm2977_vm0, %v2968_v8, %v2970_v63  ;;  %v2971_v33 = vrot.slane %v2664_v54, 1  ;;  %v2575_v32 = vadd.f32 %v2574_v11, %v7348_v28  ;;  %v2666_v21 = vadd.f32 %v2665_v35, %v2573_v37 }
 0x22e   :  { %8414 = vst [vmem:[#allocation51_spill] sm:$0xff] %v7564_v3  ;;  %v7570_v13 = vadd.f32 %v2983_v38, %v7271_v25  ;;  %v2576_v9 = vpop.f32.mrf.mxu0  ;;  %v8420_v35 = vrot.slane %v7376_v53, 1 }
 0x22f   :  { %v2669_v52 = vpop.f32.mrf.mxu1  ;;  %v2980_v4 = vsel %vm2977_vm0, %v2969_v26, %v2971_v33  ;;  %v2972_v61 = vrot.slane %v2666_v21, 1  ;;  %v2577_v14 = vadd.f32 %v2576_v9, %v7350_v10  ;;  %v2668_v43 = vadd.f32 %v2667_v60, %v2575_v32 }
 0x230   :  { %8415 = vst [vmem:[#allocation52_spill] sm:$0xff] %v7570_v13  ;;  %v7576_v46 = vadd.f32 %v2980_v4, %v7276_v17 }
 0x231   :  { %v7580_v8 = vsel %vm2977_vm0, %v2970_v63, %v2972_v61  ;;  %v2973_v28 = vrot.slane %v2668_v43, 1  ;;  %v2670_v45 = vadd.f32 %v2669_v52, %v2577_v14 }
 0x232   :  { %8416 = vst [vmem:[#allocation53_spill] sm:$0xff] %v7576_v46 }
 0x233   :  { %v2978_v25 = vsel %vm2977_vm0, %v2971_v33, %v2973_v28  ;;  %v3000_v26 = vsel %vm2977_vm0, %v2973_v28, %v8417_v5  ;;  %v2974_v12 = vrot.slane %v2670_v45, 1  ;;  %v6278_v45 = vld [vmem:[#allocation8 + $0xac] ss:$12 sps:$4 sm:$0xff]  }
 0x234   :  { %v7589_v10 = vadd.f32 %v2978_v25, %v7295_v57  ;;  %v7592_v17 = vadd.f32 %v3000_v26, %v7312_v59  ;;  %4043 = vmatprep.subr.bf16.mxu1 %v6278_v45 }
 0x235   :  { %v2979_v6 = vsel %vm2977_vm0, %v2972_v61, %v2974_v12  ;;  %v7600_v20 = vsel %vm2977_vm0, %v2974_v12, %v8420_v35 }
 0x236   :  { %8418 = vst [vmem:[#allocation54_spill] sm:$0xff] %v7589_v10  ;;  %8419 = vst [vmem:[#allocation55_spill] sm:$0xff] %v7592_v17  ;;  %v7603_v2 = vadd.f32 %v2979_v6, %v7307_v31 }
 0x238   :  { %8421 = vst [vmem:[#allocation56_spill] sm:$0xff] %v7603_v2 }
 0x240   :  { %v7605_v63 = vpop.f32.mrf.mxu0 }
 0x241   :  { %v7607_v37 = vpop.f32.mrf.mxu1 }
 0x242   :  { %v7609_v57 = vpop.f32.mrf.mxu0 }
 0x243   :  { %v7611_v59 = vpop.f32.mrf.mxu1 }
 0x244   :  { %v7613_v54 = vpop.f32.mrf.mxu0 }
 0x245   :  { %v7615_v11 = vpop.f32.mrf.mxu1 }
 0x246   :  { %v7617_v53 = vpop.f32.mrf.mxu0 }
 0x247   :  { %v7619_v60 = vpop.f32.mrf.mxu1 }
 0x248   :  { %v7621_v38 = vpop.f32.mrf.mxu0 }
 0x249   :  { %v7623_v31 = vpop.f32.mrf.mxu1 }
 0x24a   :  { %v7625_v33 = vpop.f32.mrf.mxu0 }
 0x24b   :  { %v7627_v32 = vpop.f32.mrf.mxu1 }
 0x24c   :  { %v7629_v21 = vpop.f32.mrf.mxu0 }
 0x24d   :  { %v7631_v9 = vpop.f32.mrf.mxu1 }
 0x24e   :  { %v7633_v52 = vpop.f32.mrf.mxu0 }
 0x24f   :  { %v7635_v4 = vpop.f32.mrf.mxu1 }
 0x250   :  { %v7637_v61 = vpop.f32.mrf.mxu0 }
 0x251   :  { %v7641_v43 = vpop.f32.mrf.mxu1 }
 0x252   :  { %v7639_v14 = vpop.f32.mrf.mxu0 }
 0x253   :  { %v7647_v5 = vpop.f32.mrf.mxu1 }
 0x254   :  { %v7643_v28 = vpop.f32.mrf.mxu0 }
 0x255   :  { %v7653_v6 = vpop.f32.mrf.mxu1 }
 0x256   :  { %v7645_v25 = vpop.f32.mrf.mxu0 }
 0x257   :  { %v7659_v49 = vpop.f32.mrf.mxu1 }
 0x258   :  { %v7649_v26 = vpop.f32.mrf.mxu0 }
 0x259   :  { %v7663_v55 = vpop.f32.mrf.mxu1 }
 0x25a   :  { %v7651_v12 = vpop.f32.mrf.mxu0 }
 0x25b   :  { %v7667_v17 = vpop.f32.mrf.mxu1 }
 0x25c   :  { %v7655_v35 = vpop.f32.mrf.mxu0 }
 0x25d   :  { %v7671_v10 = vpop.f32.mrf.mxu1 }
 0x25e   :  { %v7657_v34 = vpop.f32.mrf.mxu0 }
 0x25f   :  { %8422 = vst [vmem:[#allocation57_spill] sm:$0xff] %v7657_v34  ;;  %v7675_v13 = vpop.f32.mrf.mxu1  ;;  %v8445_v34 = vrot.slane %v7419_v36, 1  ;;  %v8451_v36 = vld [vmem:[#allocation37_spill] sm:$0xff] }
 0x260   :  { %v7661_v56 = vpop.f32.mrf.mxu0  ;;  %8427 = vst [vmem:[#allocation62_spill] sm:$0xff] %v7675_v13 }
 0x261   :  { %8423 = vst [vmem:[#allocation58_spill] sm:$0xff] %v7661_v56  ;;  %v7679_v50 = vpop.f32.mrf.mxu1 }
 0x262   :  { %v7665_v2 = vpop.f32.mrf.mxu0  ;;  %8429 = vst [vmem:[#allocation64_spill] sm:$0xff] %v7679_v50  ;;  %v2351_v50 = vadd.f32 %v8442_v58, %v2258_v22  ;;  %v8449_v22 = vrot.slane %v7525_v29, 1  ;;  %v2802_v29 = vadd.f32 %v7611_v59, %v7609_v57  ;;  %v2806_v57 = vadd.f32 %v7619_v60, %v7617_v53 }
 0x263   :  { %8424 = vst [vmem:[#allocation59_spill] sm:$0xff] %v7665_v2  ;;  %v7683_v19 = vpop.f32.mrf.mxu1 }
 0x264   :  { %v7669_v45 = vpop.f32.mrf.mxu0  ;;  %8431 = vst [vmem:[#allocation66_spill] sm:$0xff] %v7683_v19  ;;  %v8440_v19 = vld [vmem:[#allocation32_spill] sm:$0xff] }
 0x265   :  { %8425 = vst [vmem:[#allocation60_spill] sm:$0xff] %v7669_v45  ;;  %v7687_v30 = vpop.f32.mrf.mxu1  ;;  %v8437_v45 = vld [vmem:[#allocation29_spill] sm:$0xff] }
 0x266   :  { %v7673_v46 = vpop.f32.mrf.mxu0  ;;  %8433 = vst [vmem:[#allocation68_spill] sm:$0xff] %v7687_v30  ;;  %v8439_v30 = vld [vmem:[#allocation31_spill] sm:$0xff] }
 0x267   :  { %8426 = vst [vmem:[#allocation61_spill] sm:$0xff] %v7673_v46  ;;  %v2298_v2 = vadd.f32 %v8440_v19, %v8439_v30  ;;  %v7704_v23 = vpop.f32.mrf.mxu1  ;;  %v8447_v19 = vrot.slane %v7472_v62, 1 }
 0x268   :  { %v7677_v3 = vpop.f32.mrf.mxu0 }
 0x269   :  { %8428 = vst [vmem:[#allocation63_spill] sm:$0xff] %v7677_v3  ;;  %v2278_v3 = vadd.f32 %v8435_v15, %v8434_v44  ;;  %v8443_v15 = vld [vmem:[#allocation35_spill] sm:$0xff]  ;;  %v2849_v58 = vpop.f32.mrf.mxu1 }
 0x26a   :  { %v7681_v16 = vpop.f32.mrf.mxu0  ;;  %v2361_v44 = vadd.f32 %v8443_v15, %v2268_v7  ;;  %v8450_v7 = vrot.slane %v7487_v47, 1  ;;  %v2804_v47 = vadd.f32 %v7615_v11, %v7613_v54  ;;  %v2816_v11 = vadd.f32 %v7635_v4, %v7633_v52 }
 0x26b   :  { %8430 = vst [vmem:[#allocation65_spill] sm:$0xff] %v7681_v16  ;;  %v3103_v16 = vsub.s32 0, %v7362_v1  ;;  %v2851_v53 = vpop.f32.mrf.mxu1  ;;  %v6341_v1 = vld [vmem:[#allocation14 + $0x70] sm:$0xff]  }
 0x26c   :  { %v7685_v48 = vpop.f32.mrf.mxu0 }
 0x26d   :  { %8432 = vst [vmem:[#allocation67_spill] sm:$0xff] %v7685_v48  ;;  %v8438_v48 = vld [vmem:[#allocation30_spill] sm:$0xff] }
 0x26e   :  { %v7697_v46 = vpop.f32.mrf.mxu0  ;;  %v2288_v51 = vadd.f32 %v8438_v48, %v8437_v45  ;;  %v8446_v48 = vrot.slane %v7385_v42, 1  ;;  %v8448_v45 = vrot.slane %v7434_v27, 1  ;;  %v2800_v42 = vadd.f32 %v7607_v37, %v7605_v63 }
 0x26f   :  { %8436 = vst [vmem:[#allocation27_spill] sm:$0xff] %v7697_v46  ;;  %v8444_v46 = vld [vmem:[#allocation36_spill] sm:$0xff]  ;;  %v7734_v27 = vrot.slane %v3099_v24, %v3103_v16 }
 0x270   :  { %v2371_v56 = vadd.f32 %v8444_v46, %v2278_v3  ;;  %v2997_v30 = vsel %vm2977_vm0, %v8446_v48, %v8445_v34  ;;  %v2993_v0 = vsel %vm2977_vm0, %v8448_v45, %v8447_v19  ;;  %v2989_v3 = vsel %vm2977_vm0, %v8450_v7, %v8449_v22  ;;  %v8452_v34 = vld [vmem:[#allocation38_spill] sm:$0xff]  ;;  %v8460_v7 = vld [vmem:[#allocation40_spill] sm:$0xff] }
 0x271   :  { %v2381_v46 = vadd.f32 %v8451_v36, %v2288_v51  ;;  %v2391_v41 = vadd.f32 %v8452_v34, %v2298_v2  ;;  %v7742_v48 = vrot.slane %v3099_v24, %v3107_v40  ;;  %v3005_v63 = vadd.f32 %v2997_v30, %v2341_v18  ;;  %v8457_v30 = vld [vmem:[#allocation64_spill] sm:$0xff] }
 0x272   :  { %v7744_v51 = vadd.f32 %v2993_v0, %v2351_v50  ;;  %v7746_v2 = vadd.f32 %v2989_v3, %v2361_v44  ;;  %v7749_v37 = vadd.f32 %v7557_v39, %v2371_v56  ;;  %v2810_v50 = vadd.f32 %v7623_v31, %v7621_v38  ;;  %v2853_v44 = vpop.f32.mrf.mxu1  ;;  %v8461_v36 = vld [vmem:[#allocation60_spill] sm:$0xff] }
 0x273   :  { %v7752_v19 = vadd.f32 %v7580_v8, %v2381_v46  ;;  %v7759_v54 = vadd.f32 %v7600_v20, %v2391_v41  ;;  %v2812_v56 = vadd.f32 %v7627_v32, %v7625_v33  ;;  %v2814_v39 = vadd.f32 %v7631_v9, %v7629_v21  ;;  %v8462_v46 = vld [vmem:[#allocation68_spill] sm:$0xff] }
 0x274   :  { %v2820_v20 = vadd.f32 %v7641_v43, %v7637_v61  ;;  %v2822_v38 = vadd.f32 %v7647_v5, %v7639_v14  ;;  %v2824_v31 = vadd.f32 %v7653_v6, %v7643_v28  ;;  %v7778_v33 = vadd.f32 %v7659_v49, %v7645_v25  ;;  %v8453_v43 = vld [vmem:[#allocation39_spill] sm:$0xff]  ;;  %v8454_v5 = vld [vmem:[#allocation57_spill] sm:$0xff]  ;;  %v8455_v6 = vld [vmem:[#allocation62_spill] sm:$0xff] }
 0x275   :  { %v7787_v61 = vadd.f32 %v7663_v55, %v7649_v26  ;;  %v7791_v14 = vadd.f32 %v7667_v17, %v7651_v12  ;;  %v7795_v49 = vadd.f32 %v7671_v10, %v7655_v35  ;;  %v7800_v18 = vadd.f32 %v8455_v6, %v8454_v5  ;;  %v8456_v12 = vld [vmem:[#allocation58_spill] sm:$0xff]  ;;  %v8458_v10 = vld [vmem:[#allocation59_spill] sm:$0xff] }
 0x276   :  { %v7808_v45 = vadd.f32 %v8457_v30, %v8456_v12  ;;  %v8459_v35 = vld [vmem:[#allocation66_spill] sm:$0xff]  ;;  %v7820_v34 = vadd.f32 %v8462_v46, %v8461_v36  ;;  %v8470_v36 = vld [vmem:[#allocation43_spill] sm:$0xff] }
 0x277   :  { %v7812_v0 = vadd.f32 %v8459_v35, %v8458_v10  ;;  %v8468_v10 = vld [vmem:[#allocation27_spill] sm:$0xff]  ;;  %v8469_v35 = vld [vmem:[#allocation42_spill] sm:$0xff] }
 0x280   :  { %v2892_v13 = vpop.f32.mrf.mxu0 }
 0x281   :  { %v7740_v15 = vadd.f32 %v2892_v13, %v2800_v42 }
 0x282   :  { %v2894_v62 = vpop.f32.mrf.mxu0 }
 0x283   :  { %v7756_v59 = vadd.f32 %v2894_v62, %v2802_v29  ;;  %v3026_v60 = vrot.slane %v7740_v15, 2 }
 0x284   :  { %v2896_v16 = vpop.f32.mrf.mxu0 }
 0x285   :  { %v2897_v13 = vadd.f32 %v2896_v16, %v2804_v47  ;;  %v3027_v21 = vrot.slane %v7756_v59, 2  ;;  %v8463_v47 = vld [vmem:[#allocation61_spill] sm:$0xff] }
 0x286   :  { %v2898_v8 = vpop.f32.mrf.mxu0  ;;  %v7826_v16 = vadd.f32 %v7704_v23, %v8463_v47  ;;  %v8467_v23 = vld [vmem:[#allocation67_spill] sm:$0xff] }
 0x287   :  { %v3028_v24 = vrot.slane %v2897_v13, 2  ;;  %v2899_v40 = vadd.f32 %v2898_v8, %v2806_v57  ;;  %v8464_v57 = vld [vmem:[#allocation63_spill] sm:$0xff] }
 0x288   :  { %v2902_v32 = vpop.f32.mrf.mxu0  ;;  %v7829_v13 = vadd.f32 %v2849_v58, %v8464_v57 }
 0x289   :  { %v3071_v9 = vsel %vm3050_vm1, %v3026_v60, %v3028_v24  ;;  %v3029_v52 = vrot.slane %v2899_v40, 2  ;;  %v2903_v4 = vadd.f32 %v2902_v32, %v2810_v50  ;;  %v8465_v50 = vld [vmem:[#allocation41_spill] sm:$0xff]  ;;  %v2855_v32 = vpop.f32.mrf.mxu1 }
 0x28a   :  { %v3075_v28 = vadd.f32 %v3071_v9, %v8453_v43  ;;  %v2904_v25 = vpop.f32.mrf.mxu0  ;;  %v8466_v43 = vld [vmem:[#allocation65_spill] sm:$0xff] }
 0x28b   :  { %v3072_v55 = vsel %vm3050_vm1, %v3027_v21, %v3029_v52  ;;  %v3030_v26 = vrot.slane %v2903_v4, 2  ;;  %v2905_v17 = vadd.f32 %v2904_v25, %v2812_v56  ;;  %v7840_v25 = vadd.f32 %v2853_v44, %v8467_v23 }
 0x28c   :  { %v7815_v22 = vadd.f32 %v7734_v27, %v3075_v28  ;;  %v3076_v3 = vadd.f32 %v3072_v55, %v8460_v7  ;;  %v2906_v42 = vpop.f32.mrf.mxu0  ;;  %v7837_v28 = vadd.f32 %v2851_v53, %v8466_v43 }
 0x28d   :  { %v3069_v41 = vsel %vm3050_vm1, %v3028_v24, %v3030_v26  ;;  %v3031_v62 = vrot.slane %v2905_v17, 2  ;;  %v2907_v29 = vadd.f32 %v2906_v42, %v2814_v39 }
 0x28e   :  { %v3077_v56 = vadd.f32 %v3069_v41, %v8465_v50  ;;  %v2908_v8 = vpop.f32.mrf.mxu0  ;;  %v3112_v40 = vadd.f32 %v7742_v48, %v3076_v3  ;;  %v3135_v9 = vmax.f32 %v7815_v22, 0.0 }
 0x28f   :  { %v3070_v24 = vsel %vm3050_vm1, %v3029_v52, %v3031_v62  ;;  %v3032_v4 = vrot.slane %v2907_v29, 2  ;;  %v2909_v39 = vadd.f32 %v2908_v8, %v2816_v11  ;;  %v7846_v52 = vadd.f32 %v2855_v32, %v8468_v10 }
 0x290   :  { %v3113_v58 = vadd.f32 %v7734_v27, %v3077_v56  ;;  %v3078_v5 = vadd.f32 %v3070_v24, %v3005_v63  ;;  %v2912_v6 = vpop.f32.mrf.mxu0  ;;  %v3136_v30 = vmax.f32 %v3112_v40, 0.0  ;;  %v7850_v7 = vrot.slane %v3135_v9, 1 }
 0x291   :  { %v3067_v55 = vsel %vm3050_vm1, %v3030_v26, %v3032_v4  ;;  %v3033_v17 = vrot.slane %v2909_v39, 2  ;;  %v2913_v12 = vadd.f32 %v2912_v6, %v2820_v20 }
 0x292   :  { %v3137_v11 = vmax.f32 %v3113_v58, 0.0  ;;  %v3079_v53 = vadd.f32 %v3067_v55, %v8469_v35  ;;  %v2914_v22 = vpop.f32.mrf.mxu0  ;;  %v3114_v44 = vadd.f32 %v7742_v48, %v3078_v5  ;;  %v7860_v56 = vrot.slane %v3136_v30, 1 }
 0x293   :  { %v3068_v63 = vsel %vm3050_vm1, %v3031_v62, %v3033_v17  ;;  %v3034_v3 = vrot.slane %v2913_v12, 2  ;;  %v2915_v42 = vadd.f32 %v2914_v22, %v2822_v38  ;;  %v8471_v38 = vld [vmem:[#allocation44_spill] sm:$0xff] }
 0x294   :  { %v3161_v26 = vrot.slane %v3137_v11, 1  ;;  %v7855_v20 = vadd.f32 %v7734_v27, %v3079_v53  ;;  %v3080_v46 = vadd.f32 %v3068_v63, %v8470_v36  ;;  %v2916_v41 = vpop.f32.mrf.mxu0  ;;  %v3138_v29 = vmax.f32 %v3114_v44, 0.0  ;;  %v8472_v53 = vld [vmem:[#allocation45_spill] sm:$0xff] }
 0x295   :  { %v3065_v47 = vsel %vm3050_vm1, %v3032_v4, %v3034_v3  ;;  %v3035_v57 = vrot.slane %v2915_v42, 2  ;;  %v2917_v50 = vadd.f32 %v2916_v41, %v2824_v31 }
 0x296   :  { %v3139_v8 = vmax.f32 %v7855_v20, 0.0  ;;  %v7864_v62 = vadd.f32 %v7742_v48, %v3080_v46  ;;  %v3081_v40 = vadd.f32 %v3065_v47, %v8471_v38  ;;  %v2918_v32 = vpop.f32.mrf.mxu0  ;;  %v3162_v24 = vrot.slane %v3138_v29, 1 }
 0x297   :  { %v3066_v39 = vsel %vm3050_vm1, %v3033_v17, %v3035_v57  ;;  %v3036_v43 = vrot.slane %v2917_v50, 2  ;;  %v2919_v23 = vadd.f32 %v2918_v32, %v7778_v33  ;;  %v3203_v31 = vsel %vm2977_vm0, %v7850_v7, %v3161_v26 }
 0x298   :  { %v7875_v4 = vrot.slane %v3139_v8, 1  ;;  %v3140_v58 = vmax.f32 %v7864_v62, 0.0  ;;  %v3082_v5 = vadd.f32 %v3066_v39, %v7744_v51  ;;  %v2922_v6 = vpop.f32.mrf.mxu0  ;;  %v3204_v55 = vsel %vm2977_vm0, %v7860_v56, %v3162_v24  ;;  %v8474_v39 = vld [vmem:[#allocation47_spill] sm:$0xff]  ;;  %v6282_v62 = vld [vmem:[#allocation8 + $0x78] ss:$12 sps:$4 sm:$0xff]  }
 0x299   :  { %v3063_v33 = vsel %vm3050_vm1, %v3034_v3, %v3036_v43  ;;  %v3037_v17 = vrot.slane %v2919_v23, 2  ;;  %v2923_v12 = vadd.f32 %v2922_v6, %v7787_v61  ;;  %v3208_v10 = vmax.f32 %v3136_v30, %v3204_v55  ;;  %v8473_v30 = vld [vmem:[#allocation46_spill] sm:$0xff] }
 0x29a   :  { %v3164_v35 = vrot.slane %v3140_v58, 1  ;;  %v3083_v22 = vadd.f32 %v3063_v33, %v8472_v53  ;;  %v2924_v44 = vpop.f32.mrf.mxu0  ;;  %v3201_v51 = vsel %vm2977_vm0, %v3161_v26, %v7875_v4  ;;  %v3207_v63 = vmax.f32 %v3135_v9, %v3203_v31  ;;  %v6276_v33 = vld [vmem:[#allocation8 + $0xa8] ss:$12 sps:$4 sm:$0xff]  }
 0x29b   :  { %v3064_v42 = vsel %vm3050_vm1, %v3035_v57, %v3037_v17  ;;  %v3038_v36 = vrot.slane %v2923_v12, 2  ;;  %v2925_v3 = vadd.f32 %v2924_v44, %v7791_v14  ;;  %v3209_v46 = vmax.f32 %v3137_v11, %v3201_v51  ;;  %v6281_v44 = vld [vmem:[#allocation8 + $0x94] ss:$12 sps:$4 sm:$0xff]  }
 0x29c   :  { %v7895_v61 = vadd.f32 %v7734_v27, %v3083_v22  ;;  %v3084_v41 = vadd.f32 %v3064_v42, %v8473_v30  ;;  %v2926_v47 = vpop.f32.mrf.mxu0  ;;  %v3202_v50 = vsel %vm2977_vm0, %v3162_v24, %v3164_v35  ;;  %v3118_v38 = vadd.f32 %v7742_v48, %v3082_v5  ;;  %v8475_v42 = vld [vmem:[#allocation48_spill] sm:$0xff] }
 0x29d   :  { %v3061_v9 = vsel %vm3050_vm1, %v3036_v43, %v3038_v36  ;;  %v3039_v26 = vrot.slane %v2925_v3, 2  ;;  %v2927_v57 = vadd.f32 %v2926_v47, %v7795_v49  ;;  %v3210_v32 = vmax.f32 %v3138_v29, %v3202_v50  ;;  %v6279_v47 = vld [vmem:[#allocation8 + $0x90] ss:$12 sps:$4 sm:$0xff]  }
 0x29e   :  { %v3143_v14 = vmax.f32 %v7895_v61, 0.0  ;;  %v7906_v11 = vadd.f32 %v7742_v48, %v3084_v41  ;;  %v7909_v23 = vadd.f32 %v3061_v9, %v8474_v39  ;;  %v2928_v31 = vpop.f32.mrf.mxu0  ;;  %v3231_v6 = vpack.c.bf16 %v3209_v46, %v3207_v63 }
 0x29f   :  { %v3062_v24 = vsel %vm3050_vm1, %v3037_v17, %v3039_v26  ;;  %v3040_v5 = vrot.slane %v2927_v57, 2  ;;  %v2929_v43 = vadd.f32 %v2928_v31, %v7800_v18  ;;  %v3232_v55 = vpack.c.bf16 %v3210_v32, %v3208_v10 }
 0x2a0   :  { %v7916_v49 = vrot.slane %v3143_v14, 1  ;;  %v3144_v29 = vmax.f32 %v7906_v11, 0.0  ;;  %v3086_v12 = vadd.f32 %v3062_v24, %v7746_v2  ;;  %v2932_v53 = vpop.f32.mrf.mxu0  ;;  %v3142_v22 = vmax.f32 %v3118_v38, 0.0  ;;  %v8476_v38 = vld [vmem:[#allocation49_spill] sm:$0xff] }
 0x2a1   :  { %v3059_v51 = vsel %vm3050_vm1, %v3038_v36, %v3040_v5  ;;  %v3041_v17 = vrot.slane %v2929_v43, 2  ;;  %v2933_v63 = vadd.f32 %v2932_v53, %v7808_v45  ;;  %3595 = vmatprep.mubr.bf16.mxu1 %v3232_v55  ;;  %3688 = vmatprep.mubr.bf16.mxu0 %v3232_v55  ;;  %v3117_v18 = vadd.f32 %v7734_v27, %v3081_v40 }
 0x2a2   :  { %v7926_v10 = vrot.slane %v3144_v29, 1  ;;  %v3087_v3 = vadd.f32 %v3059_v51, %v8475_v42  ;;  %v2934_v2 = vpop.f32.mrf.mxu0  ;;  %3596 = vmatmul.mubr.bf16.vlgmr.msra.gmra.mxu1 %v3231_v6  ;;  %3689 = vmatmul.mubr.bf16.vlgmr.msra.gmra.mxu0 %v3231_v6  ;;  %v3166_v46 = vrot.slane %v3142_v22, 1  ;;  %v7930_v30 = vadd.f32 %v7742_v48, %v3086_v12 }
 0x2a3   :  { %v3060_v45 = vsel %vm3050_vm1, %v3039_v26, %v3041_v17  ;;  %v3042_v36 = vrot.slane %v2933_v63, 2  ;;  %v2935_v41 = vadd.f32 %v2934_v2, %v7812_v0  ;;  %v3141_v40 = vmax.f32 %v3117_v18, 0.0  ;;  %4044 = vmatpush1.bf16.msra.mxu1 %v6276_v33  ;;  %v6284_v26 = vld [vmem:[#allocation8 + $0x7c] ss:$12 sps:$4 sm:$0xff]  }
 0x2a4   :  { %v7936_v50 = vadd.f32 %v7734_v27, %v3087_v3  ;;  %v3088_v9 = vadd.f32 %v3060_v45, %v8476_v38  ;;  %v2936_v57 = vpop.f32.mrf.mxu0  ;;  %v3198_v32 = vsel %vm2977_vm0, %v3166_v46, %v7926_v10  ;;  %v3200_v39 = vsel %vm2977_vm0, %v3164_v35, %v3166_v46  ;;  %4045 = vmatprep.subr.bf16.mxu1 %v6281_v44  ;;  %v8477_v33 = vld [vmem:[#allocation50_spill] sm:$0xff]  ;;  %v8478_v45 = vld [vmem:[#allocation51_spill] sm:$0xff] }
 0x2a5   :  { %v3057_v0 = vsel %vm3050_vm1, %v3040_v5, %v3042_v36  ;;  %v3043_v31 = vrot.slane %v2935_v41, 2  ;;  %v2937_v6 = vadd.f32 %v2936_v57, %v7820_v34  ;;  %v3212_v24 = vmax.f32 %v3140_v58, %v3200_v39  ;;  %v8479_v39 = vld [vmem:[#allocation52_spill] sm:$0xff] }
 0x2a6   :  { %v3147_v43 = vmax.f32 %v7936_v50, 0.0  ;;  %v7951_v55 = vadd.f32 %v7742_v48, %v3088_v9  ;;  %v7954_v12 = vadd.f32 %v3057_v0, %v8477_v33  ;;  %v2938_v35 = vpop.f32.mrf.mxu0  ;;  %v3214_v53 = vmax.f32 %v3142_v22, %v3198_v32  ;;  %v8480_v33 = vld [vmem:[#allocation53_spill] sm:$0xff] }
 0x2a7   :  { %v3058_v44 = vsel %vm3050_vm1, %v3041_v17, %v3043_v31  ;;  %v3044_v5 = vrot.slane %v2937_v6, 2  ;;  %v2939_v51 = vadd.f32 %v2938_v35, %v7826_v16  ;;  %v3165_v34 = vrot.slane %v3141_v40, 1  ;;  %4046 = vmatpush1.bf16.msra.mxu1 %v6279_v47 }
 0x2a8   :  { %v7961_v58 = vrot.slane %v3147_v43, 1  ;;  %v3148_v63 = vmax.f32 %v7951_v55, 0.0  ;;  %v7965_v18 = vadd.f32 %v3058_v44, %v7749_v37  ;;  %v2942_v42 = vpop.f32.mrf.mxu0  ;;  %v3234_v22 = vpack.c.bf16 %v3214_v53, %v3212_v24  ;;  %4047 = vmatprep.subr.bf16.mxu1 %v6284_v26 }
 0x2a9   :  { %v3055_v17 = vsel %vm3050_vm1, %v3042_v36, %v3044_v5  ;;  %v3045_v3 = vrot.slane %v2939_v51, 2  ;;  %v2943_v16 = vadd.f32 %v2942_v42, %v7829_v13  ;;  %v3197_v2 = vsel %vm2977_vm0, %v3165_v34, %v7916_v49 }
 0x2aa   :  { %v7975_v46 = vrot.slane %v3148_v63, 1  ;;  %v3091_v37 = vadd.f32 %v3055_v17, %v8478_v45  ;;  %3605 = vmatprep.mubr.bf16.mxu1 %v3234_v22  ;;  %3696 = vmatprep.mubr.bf16.mxu0 %v3234_v22  ;;  %v2944_v41 = vpop.f32.mrf.mxu0  ;;  %v3199_v36 = vsel %vm2977_vm0, %v7875_v4, %v3165_v34  ;;  %v3213_v47 = vmax.f32 %v3141_v40, %v3197_v2  ;;  %v8481_v45 = vld [vmem:[#allocation54_spill] sm:$0xff] }
 0x2ab   :  { %v3056_v13 = vsel %vm3050_vm1, %v3043_v31, %v3045_v3  ;;  %v3046_v38 = vrot.slane %v2943_v16, 2  ;;  %v2945_v9 = vadd.f32 %v2944_v41, %v7837_v28  ;;  %v3211_v57 = vmax.f32 %v3139_v8, %v3199_v36  ;;  %4048 = vmatpush1.bf16.msra.mxu1 %v6282_v62 }
 0x2ac   :  { %v7987_v32 = vadd.f32 %v7734_v27, %v3091_v37  ;;  %v3092_v26 = vadd.f32 %v3056_v13, %v8479_v39  ;;  %v2946_v0 = vpop.f32.mrf.mxu0  ;;  %v3146_v6 = vmax.f32 %v7930_v30, 0.0  ;;  %v3121_v4 = vadd.f32 %v7734_v27, %v7909_v23  ;;  %v8482_v37 = vld [vmem:[#allocation55_spill] sm:$0xff] }
 0x2ad   :  { %v3053_v40 = vsel %vm3050_vm1, %v3044_v5, %v3046_v38  ;;  %v3047_v31 = vrot.slane %v2945_v9, 2  ;;  %v3233_v28 = vpack.c.bf16 %v3213_v47, %v3211_v57  ;;  %v2947_v20 = vadd.f32 %v2946_v0, %v7840_v25  ;;  %v8483_v57 = vld [vmem:[#allocation56_spill] sm:$0xff] }
 0x2ae   :  { %v3151_v8 = vmax.f32 %v7987_v32, 0.0  ;;  %v7998_v24 = vadd.f32 %v7742_v48, %v3092_v26  ;;  %v3093_v35 = vadd.f32 %v3053_v40, %v8480_v33  ;;  %v2948_v53 = vpop.f32.mrf.mxu0  ;;  %v3170_v44 = vrot.slane %v3146_v6, 1 }
 0x2af   :  { %v3054_v30 = vsel %vm3050_vm1, %v3045_v3, %v3047_v31  ;;  %3606 = vmatmul.mubr.bf16.gmra.mxu1 %v3233_v28  ;;  %3697 = vmatmul.mubr.bf16.gmra.mxu0 %v3233_v28  ;;  %v3048_v23 = vrot.slane %v2947_v20, 2  ;;  %v2949_v5 = vadd.f32 %v2948_v53, %v7846_v52  ;;  %v3145_v51 = vmax.f32 %v3121_v4, 0.0 }
 0x2b0   :  { %v3175_v25 = vrot.slane %v3151_v8, 1  ;;  %v3152_v34 = vmax.f32 %v7998_v24, 0.0  ;;  %v3129_v62 = vadd.f32 %v7734_v27, %v3093_v35  ;;  %v3094_v42 = vadd.f32 %v3054_v30, %v7752_v19  ;;  %v6285_v24 = vld [vmem:[#allocation8 + $0xb0] ss:$12 sps:$4 sm:$0xff]  }
 0x2b1   :  { %v3051_v22 = vsel %vm3050_vm1, %v3046_v38, %v3048_v23  ;;  %v3073_v17 = vsel %vm3050_vm1, %v3048_v23, %v3026_v60  ;;  %v3049_v3 = vrot.slane %v2949_v5, 2  ;;  %v3194_v52 = vsel %vm2977_vm0, %v3170_v44, %v7975_v46  ;;  %5590 = vmatprep.subr.bf16.mxu0 %v6285_v24 }
 0x2b2   :  { %v8020_v16 = vrot.slane %v3152_v34, 1  ;;  %v3153_v2 = vmax.f32 %v3129_v62, 0.0  ;;  %v3095_v19 = vadd.f32 %v3051_v22, %v8481_v45  ;;  %v3097_v41 = vadd.f32 %v3073_v17, %v8482_v37  ;;  %5591 = vmatpush3.bf16.msra.mxu0 %v6285_v24 }
 0x2b3   :  { %v3052_v15 = vsel %vm3050_vm1, %v3047_v31, %v3049_v3  ;;  %v3074_v60 = vsel %vm3050_vm1, %v3049_v3, %v3027_v21  ;;  %v3196_v36 = vsel %vm2977_vm0, %v7926_v10, %v3170_v44  ;;  %v3218_v47 = vmax.f32 %v3146_v6, %v3194_v52 }
 0x2b4   :  { %v3177_v13 = vrot.slane %v3153_v2, 1  ;;  %v8034_v38 = vadd.f32 %v7734_v27, %v3095_v19  ;;  %v8037_v9 = vadd.f32 %v7734_v27, %v3097_v41  ;;  %v3096_v39 = vadd.f32 %v3052_v15, %v8483_v57 }
 0x2b5   :  { %v3098_v26 = vadd.f32 %v3074_v60, %v7759_v54  ;;  %v3216_v59 = vmax.f32 %v3144_v29, %v3196_v36  ;;  %v3169_v21 = vrot.slane %v3145_v51, 1  ;;  %v3126_v0 = vadd.f32 %v7742_v48, %v7965_v18 }
 0x2b6   :  { %v3155_v10 = vmax.f32 %v8034_v38, 0.0  ;;  %v3157_v6 = vmax.f32 %v8037_v9, 0.0  ;;  %v3132_v4 = vadd.f32 %v7742_v48, %v3096_v39  ;;  %v3125_v40 = vadd.f32 %v7734_v27, %v7954_v12  ;;  %v6290_v39 = vld [vmem:[#allocation8 + $0x48] ss:$12 sps:$4 sm:$0xff]  }
 0x2b7   :  { %v3236_v31 = vpack.c.bf16 %v3218_v47, %v3216_v59  ;;  %v3193_v54 = vsel %vm2977_vm0, %v3169_v21, %v7961_v58  ;;  %v3195_v11 = vsel %vm2977_vm0, %v7916_v49, %v3169_v21  ;;  %v3150_v29 = vmax.f32 %v3126_v0, 0.0  ;;  %v6293_v59 = vld [vmem:[#allocation8 + $0x80] ss:$12 sps:$4 sm:$0xff]   ;;  %v6294_v21 = vld [vmem:[#allocation8 + $0x30] ss:$12 sps:$4 sm:$0xff]  }
 0x2b8   :  { %v3179_v18 = vrot.slane %v3155_v10, 1  ;;  %v3181_v28 = vrot.slane %v3157_v6, 1  ;;  %v3156_v20 = vmax.f32 %v3132_v4, 0.0  ;;  %v3215_v33 = vmax.f32 %v3143_v14, %v3195_v11  ;;  %v6296_v0 = vld [vmem:[#allocation8 + $0x34] ss:$12 sps:$4 sm:$0xff]  }
 0x2b9   :  { %3615 = vmatprep.mubr.bf16.mxu1 %v3236_v31  ;;  %3704 = vmatprep.mubr.bf16.mxu0 %v3236_v31  ;;  %v3217_v35 = vmax.f32 %v3145_v51, %v3193_v54  ;;  %v3174_v27 = vrot.slane %v3150_v29, 1  ;;  %v3149_v12 = vmax.f32 %v3125_v40, 0.0  ;;  %v3130_v53 = vadd.f32 %v7742_v48, %v3094_v42  ;;  %v6301_v4 = vld [vmem:[#allocation8 + $0x50] ss:$12 sps:$4 sm:$0xff]   ;;  %v6298_v40 = vld [vmem:[#allocation8 + $0x18] ss:$12 sps:$4 sm:$0xff]  }
 0x2ba   :  { %v3180_v44 = vrot.slane %v3156_v20, 1  ;;  %v3185_v30 = vsel %vm2977_vm0, %v3177_v13, %v3179_v18  ;;  %v3187_v49 = vsel %vm2977_vm0, %v3175_v25, %v3177_v13  ;;  %v3134_v23 = vadd.f32 %v7742_v48, %v3098_v26  ;;  %v6292_v26 = vld [vmem:[#allocation8 + $0x4c] ss:$12 sps:$4 sm:$0xff]   ;;  %v6304_v31 = vld [vmem:[#allocation8 + $0x4] ss:$12 sps:$4 sm:$0xff]  }
 0x2bb   :  { %v3235_v5 = vpack.c.bf16 %v3217_v35, %v3215_v33  ;;  %v3190_v61 = vsel %vm2977_vm0, %v3174_v27, %v8020_v16  ;;  %v3192_v14 = vsel %vm2977_vm0, %v7975_v46, %v3174_v27  ;;  %v3173_v51 = vrot.slane %v3149_v12, 1  ;;  %v6305_v54 = vld [vmem:[#allocation8 + $0x38] ss:$12 sps:$4 sm:$0xff]   ;;  %v6302_v11 = vld [vmem:[#allocation8] ss:$12 sps:$4 sm:$0xff]  }
 0x2bc   :  { %v3220_v62 = vmax.f32 %v3148_v63, %v3192_v14  ;;  %v3222_v42 = vmax.f32 %v3150_v29, %v3190_v61  ;;  %v3154_v22 = vmax.f32 %v3130_v53, 0.0  ;;  %v3223_v17 = vmax.f32 %v3151_v8, %v3187_v49  ;;  %v6306_v29 = vld [vmem:[#allocation8 + $0x20] ss:$12 sps:$4 sm:$0xff]  }
 0x2bd   :  { %3616 = vmatmul.mubr.bf16.gmra.mxu1 %v3235_v5  ;;  %3705 = vmatmul.mubr.bf16.gmra.mxu0 %v3235_v5  ;;  %v3189_v48 = vsel %vm2977_vm0, %v3173_v51, %v3175_v25  ;;  %v3191_v3 = vsel %vm2977_vm0, %v7961_v58, %v3173_v51  ;;  %v3225_v52 = vmax.f32 %v3153_v2, %v3185_v30  ;;  %v3158_v46 = vmax.f32 %v3134_v23, 0.0 }
 0x2be   :  { %v3238_v45 = vpack.c.bf16 %v3222_v42, %v3220_v62  ;;  %v3219_v55 = vmax.f32 %v3147_v43, %v3191_v3  ;;  %v3221_v63 = vmax.f32 %v3149_v12, %v3189_v48  ;;  %v3178_v19 = vrot.slane %v3154_v22, 1 }
 0x2bf   :  { %v3239_v37 = vpack.c.bf16 %v3225_v52, %v3223_v17  ;;  %v3182_v32 = vrot.slane %v3158_v46, 1  ;;  %v3183_v8 = vsel %vm2977_vm0, %v3179_v18, %v3181_v28  ;;  %v3205_v25 = vsel %vm2977_vm0, %v3181_v28, %v7850_v7  ;;  %v6307_v28 = vld [vmem:[#allocation8 + $0x8] ss:$12 sps:$4 sm:$0xff]  }
 0x2c0   :  { %3625 = vmatprep.mubr.bf16.mxu1 %v3238_v45  ;;  %3712 = vmatprep.mubr.bf16.mxu0 %v3238_v45  ;;  %v3237_v58 = vpack.c.bf16 %v3221_v63, %v3219_v55  ;;  %v3186_v2 = vsel %vm2977_vm0, %v3178_v19, %v3180_v44  ;;  %v3188_v50 = vsel %vm2977_vm0, %v8020_v16, %v3178_v19  ;;  %v6289_v16 = vld [vmem:[#allocation8 + $0x98] ss:$12 sps:$4 sm:$0xff]   ;;  %v6650_v18 = vmov 0   ;;  %v8114_v19 = vld [vmem:[#allocation7] ss:$0 sm:$0xff] }
 0x2c1   :  { %v3224_v43 = vmax.f32 %v3152_v34, %v3188_v50  ;;  %v3226_v41 = vmax.f32 %v3154_v22, %v3186_v2  ;;  %v3184_v15 = vsel %vm2977_vm0, %v3180_v44, %v3182_v32  ;;  %v3206_v7 = vsel %vm2977_vm0, %v3182_v32, %v7860_v56  ;;  %v6286_v56 = vld [vmem:[#allocation8 + $0x60] ss:$12 sps:$4 sm:$0xff]   ;;  %v6288_v34 = vld [vmem:[#allocation8 + $0x64] ss:$12 sps:$4 sm:$0xff]   ;;  %5592 = vmatprep.subr.bf16.mxu0 %v6289_v16 }
 0x2c2   :  { %v3228_v60 = vmax.f32 %v3156_v20, %v3184_v15  ;;  %v3230_v36 = vmax.f32 %v3158_v46, %v3206_v7  ;;  %v3227_v47 = vmax.f32 %v3155_v10, %v3183_v8  ;;  %v3229_v13 = vmax.f32 %v3157_v6, %v3205_v25  ;;  %4049 = vmatprep.subr.bf16.mxu1 %v6288_v34  ;;  %v6297_v10 = vld [vmem:[#allocation8 + $0x68] ss:$12 sps:$4 sm:$0xff]   ;;  %v6310_v20 = vld [vmem:[#allocation11 + $0xac] ss:$12 sps:$4 sm:$0xff]  }
 0x2c3   :  { %v3240_v38 = vpack.c.bf16 %v3226_v41, %v3224_v43  ;;  %4050 = vmatpush1.bf16.msra.mxu1 %v6286_v56  ;;  %5593 = vmatpush3.bf16.msra.mxu0 %v6289_v16  ;;  %v6300_v6 = vld [vmem:[#allocation8 + $0x1c] ss:$12 sps:$4 sm:$0xff]  }
 0x2c4   :  { %v3242_v9 = vpack.c.bf16 %v3230_v36, %v3228_v60  ;;  %v3241_v57 = vpack.c.bf16 %v3229_v13, %v3227_v47  ;;  %4051 = vmatprep.subr.bf16.mxu1 %v6292_v26  ;;  %5594 = vmatprep.subr.bf16.mxu0 %v6293_v59 }
 0x2c5   :  { %3626 = vmatmul.mubr.bf16.gmra.mxu1 %v3237_v58  ;;  %3713 = vmatmul.mubr.bf16.gmra.mxu0 %v3237_v58 }
 0x2c6   :  { %3635 = vmatprep.mubr.bf16.mxu1 %v3240_v38  ;;  %3720 = vmatprep.mubr.bf16.mxu0 %v3240_v38 }
 0x2c7   :  { %4052 = vmatpush1.bf16.msra.mxu1 %v6290_v39  ;;  %5595 = vmatpush3.bf16.msra.mxu0 %v6293_v59 }
 0x2c8   :  { %4053 = vmatprep.subr.bf16.mxu1 %v6296_v0  ;;  %5596 = vmatprep.subr.bf16.mxu0 %v6297_v10 }
 0x2cb   :  { %4054 = vmatpush1.bf16.msra.mxu1 %v6294_v21  ;;  %5597 = vmatpush3.bf16.msra.mxu0 %v6297_v10 }
 0x2cc   :  { %4055 = vmatprep.subr.bf16.mxu1 %v6300_v6  ;;  %5598 = vmatprep.subr.bf16.mxu0 %v6301_v4 }
 0x2cd   :  { %3636 = vmatmul.mubr.bf16.gmra.mxu1 %v3239_v37  ;;  %3721 = vmatmul.mubr.bf16.gmra.mxu0 %v3239_v37 }
 0x2ce   :  { %3645 = vmatprep.mubr.bf16.mxu1 %v3242_v9  ;;  %3728 = vmatprep.mubr.bf16.mxu0 %v3242_v9 }
 0x2cf   :  { %4056 = vmatpush1.bf16.msra.mxu1 %v6298_v40  ;;  %5599 = vmatpush3.bf16.msra.mxu0 %v6301_v4 }
 0x2d0   :  { %4057 = vmatprep.subr.bf16.mxu1 %v6304_v31  ;;  %5600 = vmatprep.subr.bf16.mxu0 %v6305_v54 }
 0x2d3   :  { %4058 = vmatpush1.bf16.msra.mxu1 %v6302_v11  ;;  %5601 = vmatpush3.bf16.msra.mxu0 %v6305_v54 }
 0x2d4   :  { %5602 = vmatprep.subr.bf16.mxu0 %v6306_v29  ;;  %4498 = vmatprep.subr.bf16.mxu1 %v6310_v20 }
 0x2d5   :  { %3646 = vmatmul.mubr.bf16.gmra.mxu1 %v3241_v57  ;;  %3729 = vmatmul.mubr.bf16.gmra.mxu0 %v3241_v57 }
 0x2d6   :  { %4075 = vmatprep.mubr.bf16.mxu1 %v6650_v18 }
 0x2d7   :  { %5603 = vmatpush3.bf16.msra.mxu0 %v6306_v29 }
 0x2d8   :  { %5604 = vmatprep.subr.bf16.mxu0 %v6307_v28 }
 0x2db   :  { %5605 = vmatpush3.bf16.msra.mxu0 %v6307_v28 }
 0x362   :  { %v3597_v33 = vpop.f32.mrf.mxu1  ;;  %v5499_v35 = vpop.f32.mrf.mxu0 }
 0x364   :  { %v8099_v27 = vpop.f32.mrf.mxu1  ;;  %v5500_v12 = vpop.f32.mrf.mxu0 }
 0x365   :  { %v3737_v23 = vrot.slane %v8099_v27, 2  ;;  %v8102_v5 = vadd.f32 %v5500_v12, %v5499_v35 }
 0x366   :  { %v3601_v53 = vpop.f32.mrf.mxu1  ;;  %v5502_v44 = vpop.f32.mrf.mxu0 }
 0x367   :  { %v3773_v42 = vrot.slane %v8102_v5, 4 }
 0x368   :  { %v3603_v30 = vpop.f32.mrf.mxu1  ;;  %v5503_v49 = vpop.f32.mrf.mxu0 }
 0x369   :  { %v3738_v61 = vrot.slane %v3603_v30, 2  ;;  %v5504_v14 = vadd.f32 %v5503_v49, %v5502_v44 }
 0x36b   :  { %v3759_v51 = vsel %vm3050_vm1, %v3737_v23, %v3738_v61  ;;  %v3774_v62 = vrot.slane %v5504_v14, 4 }
 0x36c   :  { %v3761_v22 = vadd.f32 %v3759_v51, %v3597_v33 }
 0x36d   :  { %v3796_v17 = vsel %vm3785_vm2, %v3773_v42, %v3774_v62 }
 0x36e   :  { %v3798_v45 = vadd.f32 %v3796_v17, %v3761_v22  ;;  %v6308_v22 = vld [vmem:[#allocation11 + $0xa8] ss:$12 sps:$4 sm:$0xff]  }
 0x36f   :  { %v3607_v48 = vpop.f32.mrf.mxu1  ;;  %v5505_v3 = vpop.f32.mrf.mxu0 }
 0x370   :  { %v3817_v43 = vadd.f32 %v8114_v19, %v3798_v45 }
 0x371   :  { %v3609_v52 = vpop.f32.mrf.mxu1  ;;  %v5506_v46 = vpop.f32.mrf.mxu0 }
 0x372   :  { %v3739_v55 = vrot.slane %v3609_v52, 2  ;;  %v5507_v63 = vadd.f32 %v5506_v46, %v5505_v3  ;;  %v3829_v9 = vmax.f32 %v3817_v43, 0.0  ;;  %v6313_v52 = vld [vmem:[#allocation11 + $0x94] ss:$12 sps:$4 sm:$0xff]   ;;  %v6311_v43 = vld [vmem:[#allocation11 + $0x90] ss:$12 sps:$4 sm:$0xff]  }
 0x373   :  { %v3611_v37 = vpop.f32.mrf.mxu1  ;;  %v5508_v32 = vpop.f32.mrf.mxu0 }
 0x374   :  { %v3758_v8 = vsel %vm3050_vm1, %v3738_v61, %v3739_v55  ;;  %v3775_v25 = vrot.slane %v5507_v63, 4  ;;  %v8129_v59 = vrot.slane %v3829_v9, 2 }
 0x375   :  { %v3762_v58 = vadd.f32 %v3758_v8, %v3601_v53  ;;  %v3613_v2 = vpop.f32.mrf.mxu1  ;;  %v5509_v50 = vpop.f32.mrf.mxu0 }
 0x376   :  { %v3795_v41 = vsel %vm3785_vm2, %v3774_v62, %v3775_v25  ;;  %v3740_v15 = vrot.slane %v3613_v2, 2  ;;  %v5510_v7 = vadd.f32 %v5509_v50, %v5508_v32 }
 0x377   :  { %v3799_v60 = vadd.f32 %v3795_v41, %v3762_v58 }
 0x378   :  { %v3757_v36 = vsel %vm3050_vm1, %v3739_v55, %v3740_v15  ;;  %v3776_v47 = vrot.slane %v5510_v7, 4  ;;  %v6316_v7 = vld [vmem:[#allocation11 + $0x7c] ss:$12 sps:$4 sm:$0xff]  }
 0x379   :  { %v3818_v13 = vadd.f32 %v8114_v19, %v3799_v60  ;;  %v3763_v38 = vadd.f32 %v3757_v36, %v3607_v48 }
 0x37a   :  { %v3794_v57 = vsel %vm3785_vm2, %v3775_v25, %v3776_v47 }
 0x37b   :  { %v3830_v24 = vmax.f32 %v3818_v13, 0.0  ;;  %v3800_v56 = vadd.f32 %v3794_v57, %v3763_v38 }
 0x37d   :  { %v3842_v34 = vrot.slane %v3830_v24, 2  ;;  %v8127_v16 = vadd.f32 %v8114_v19, %v3800_v56  ;;  %v3617_v39 = vpop.f32.mrf.mxu1  ;;  %v5511_v26 = vpop.f32.mrf.mxu0 }
 0x37f   :  { %v3831_v21 = vmax.f32 %v8127_v16, 0.0  ;;  %v3619_v0 = vpop.f32.mrf.mxu1  ;;  %v5512_v10 = vpop.f32.mrf.mxu0  ;;  %v3863_v6 = vsel %vm3050_vm1, %v8129_v59, %v3842_v34 }
 0x380   :  { %v3741_v4 = vrot.slane %v3619_v0, 2  ;;  %v5513_v40 = vadd.f32 %v5512_v10, %v5511_v26  ;;  %v3865_v20 = vmax.f32 %v3829_v9, %v3863_v6  ;;  %v6314_v0 = vld [vmem:[#allocation11 + $0x78] ss:$12 sps:$4 sm:$0xff]  }
 0x381   :  { %v8137_v31 = vrot.slane %v3831_v21, 2  ;;  %v3621_v54 = vpop.f32.mrf.mxu1  ;;  %v5514_v11 = vpop.f32.mrf.mxu0 }
 0x382   :  { %v3756_v29 = vsel %vm3050_vm1, %v3740_v15, %v3741_v4  ;;  %v3777_v28 = vrot.slane %v5513_v40, 4 }
 0x383   :  { %v3862_v33 = vsel %vm3050_vm1, %v3842_v34, %v8137_v31  ;;  %v3764_v35 = vadd.f32 %v3756_v29, %v3611_v37  ;;  %v3623_v12 = vpop.f32.mrf.mxu1  ;;  %v5515_v53 = vpop.f32.mrf.mxu0 }
 0x384   :  { %v3866_v44 = vmax.f32 %v3830_v24, %v3862_v33  ;;  %v3793_v30 = vsel %vm3785_vm2, %v3776_v47, %v3777_v28  ;;  %v3742_v49 = vrot.slane %v3623_v12, 2  ;;  %v5516_v61 = vadd.f32 %v5515_v53, %v5514_v11 }
 0x385   :  { %v3801_v14 = vadd.f32 %v3793_v30, %v3764_v35  ;;  %v3627_v51 = vpop.f32.mrf.mxu1  ;;  %v5517_v62 = vpop.f32.mrf.mxu0 }
 0x386   :  { %v3755_v17 = vsel %vm3050_vm1, %v3741_v4, %v3742_v49  ;;  %v3778_v48 = vrot.slane %v5516_v61, 4  ;;  %v3877_v3 = vpack.c.bf16 %v3866_v44, %v3865_v20 }
 0x387   :  { %v3820_v46 = vadd.f32 %v8114_v19, %v3801_v14  ;;  %v3765_v45 = vadd.f32 %v3755_v17, %v3617_v39  ;;  %v3629_v55 = vpop.f32.mrf.mxu1  ;;  %v5518_v63 = vpop.f32.mrf.mxu0 }
 0x388   :  { %v3792_v37 = vsel %vm3785_vm2, %v3777_v28, %v3778_v48  ;;  %v3743_v32 = vrot.slane %v3629_v55, 2  ;;  %v5519_v8 = vadd.f32 %v5518_v63, %v5517_v62  ;;  %4076 = vmatmul.mubr.bf16.vlgmr.msra.gmra.mxu1 %v3877_v3  ;;  %5606 = vmatprep.mubr.bf16.mxu0 %v3877_v3 }
 0x389   :  { %v3832_v25 = vmax.f32 %v3820_v46, 0.0  ;;  %v3802_v58 = vadd.f32 %v3792_v37, %v3765_v45  ;;  %v3631_v2 = vpop.f32.mrf.mxu1  ;;  %v5520_v50 = vpop.f32.mrf.mxu0  ;;  %4085 = vmatprep.mubr.bf16.mxu1 %v6650_v18  ;;  %4499 = vmatpush1.bf16.msra.mxu1 %v6308_v22 }
 0x38a   :  { %v3754_v41 = vsel %vm3050_vm1, %v3742_v49, %v3743_v32  ;;  %v3779_v15 = vrot.slane %v5519_v8, 4  ;;  %4500 = vmatprep.subr.bf16.mxu1 %v6313_v52 }
 0x38b   :  { %v3844_v60 = vrot.slane %v3832_v25, 2  ;;  %v8155_v36 = vadd.f32 %v8114_v19, %v3802_v58  ;;  %v3766_v47 = vadd.f32 %v3754_v41, %v3621_v54  ;;  %v3633_v13 = vpop.f32.mrf.mxu1  ;;  %v5521_v38 = vpop.f32.mrf.mxu0 }
 0x38c   :  { %v3791_v9 = vsel %vm3785_vm2, %v3778_v48, %v3779_v15  ;;  %v3744_v57 = vrot.slane %v3633_v13, 2  ;;  %v5522_v24 = vadd.f32 %v5521_v38, %v5520_v50 }
 0x38d   :  { %v3833_v56 = vmax.f32 %v8155_v36, 0.0  ;;  %v3803_v34 = vadd.f32 %v3791_v9, %v3766_v47  ;;  %v3637_v39 = vpop.f32.mrf.mxu1  ;;  %v5523_v26 = vpop.f32.mrf.mxu0  ;;  %4501 = vmatpush1.bf16.msra.mxu1 %v6311_v43  ;;  %v3861_v28 = vsel %vm3050_vm1, %v8137_v31, %v3844_v60 }
 0x38e   :  { %v3753_v10 = vsel %vm3050_vm1, %v3743_v32, %v3744_v57  ;;  %v3780_v6 = vrot.slane %v5522_v24, 4  ;;  %4502 = vmatprep.subr.bf16.mxu1 %v6316_v7  ;;  %v3867_v31 = vmax.f32 %v3831_v21, %v3861_v28 }
 0x38f   :  { %v3845_v4 = vrot.slane %v3833_v56, 2  ;;  %v3822_v40 = vadd.f32 %v8114_v19, %v3803_v34  ;;  %v3767_v54 = vadd.f32 %v3753_v10, %v3627_v51  ;;  %v3639_v11 = vpop.f32.mrf.mxu1  ;;  %v5524_v29 = vpop.f32.mrf.mxu0 }
 0x390   :  { %v3790_v20 = vsel %vm3785_vm2, %v3779_v15, %v3780_v6  ;;  %v3745_v33 = vrot.slane %v3639_v11, 2  ;;  %v5525_v35 = vadd.f32 %v5524_v29, %v5523_v26 }
 0x391   :  { %v3834_v12 = vmax.f32 %v3822_v40, 0.0  ;;  %v3804_v53 = vadd.f32 %v3790_v20, %v3767_v54  ;;  %v3641_v44 = vpop.f32.mrf.mxu1  ;;  %v5526_v30 = vpop.f32.mrf.mxu0  ;;  %v3860_v49 = vsel %vm3050_vm1, %v3844_v60, %v3845_v4  ;;  %4503 = vmatpush1.bf16.msra.mxu1 %v6314_v0 }
 0x392   :  { %v3752_v61 = vsel %vm3050_vm1, %v3744_v57, %v3745_v33  ;;  %v3781_v14 = vrot.slane %v5525_v35, 4  ;;  %v3868_v51 = vmax.f32 %v3832_v25, %v3860_v49 }
 0x393   :  { %v3846_v62 = vrot.slane %v3834_v12, 2  ;;  %v8175_v22 = vadd.f32 %v8114_v19, %v3804_v53  ;;  %v3768_v17 = vadd.f32 %v3752_v61, %v3631_v2  ;;  %v3643_v48 = vpop.f32.mrf.mxu1  ;;  %v5527_v3 = vpop.f32.mrf.mxu0 }
 0x394   :  { %v3789_v52 = vsel %vm3785_vm2, %v3780_v6, %v3781_v14  ;;  %v3746_v46 = vrot.slane %v3643_v48, 2  ;;  %v5528_v45 = vadd.f32 %v5527_v3, %v5526_v30  ;;  %v3878_v55 = vpack.c.bf16 %v3868_v51, %v3867_v31 }
 0x395   :  { %v3835_v63 = vmax.f32 %v8175_v22, 0.0  ;;  %v3805_v37 = vadd.f32 %v3789_v52, %v3768_v17  ;;  %v3647_v32 = vpop.f32.mrf.mxu1  ;;  %v5529_v16 = vpop.f32.mrf.mxu0  ;;  %v3859_v41 = vsel %vm3050_vm1, %v3845_v4, %v3846_v62 }
 0x396   :  { %v3751_v21 = vsel %vm3050_vm1, %v3745_v33, %v3746_v46  ;;  %v3782_v8 = vrot.slane %v5528_v45, 4  ;;  %4086 = vmatmul.mubr.bf16.gmra.mxu1 %v3878_v55  ;;  %5607 = vmatmul.mubr.bf16.vlgmr.msra.gmra.mxu0 %v3878_v55  ;;  %v3869_v34 = vmax.f32 %v3833_v56, %v3859_v41  ;;  %v6322_v41 = vld [vmem:[#allocation11 + $0x4c] ss:$12 sps:$4 sm:$0xff]  }
 0x397   :  { %v3847_v25 = vrot.slane %v3835_v63, 2  ;;  %v3824_v58 = vadd.f32 %v8114_v19, %v3805_v37  ;;  %v3769_v2 = vadd.f32 %v3751_v21, %v3637_v39  ;;  %v3649_v50 = vpop.f32.mrf.mxu1  ;;  %v5530_v43 = vpop.f32.mrf.mxu0  ;;  %4095 = vmatprep.mubr.bf16.mxu1 %v6650_v18 }
 0x398   :  { %v3788_v15 = vsel %vm3785_vm2, %v3781_v14, %v3782_v8  ;;  %v3747_v7 = vrot.slane %v3649_v50, 2  ;;  %v5531_v60 = vadd.f32 %v5530_v43, %v5529_v16  ;;  %v6319_v50 = vld [vmem:[#allocation11 + $0x64] ss:$12 sps:$4 sm:$0xff]  }
 0x399   :  { %v3836_v36 = vmax.f32 %v3824_v58, 0.0  ;;  %v3806_v47 = vadd.f32 %v3788_v15, %v3769_v2  ;;  %v3651_v13 = vpop.f32.mrf.mxu1  ;;  %v5532_v38 = vpop.f32.mrf.mxu0  ;;  %v3858_v9 = vsel %vm3050_vm1, %v3846_v62, %v3847_v25  ;;  %v6317_v2 = vld [vmem:[#allocation11 + $0x60] ss:$12 sps:$4 sm:$0xff]   ;;  %4504 = vmatprep.subr.bf16.mxu1 %v6319_v50  ;;  %v6323_v43 = vld [vmem:[#allocation11 + $0xb0] ss:$12 sps:$4 sm:$0xff]  }
 0x39a   :  { %v3750_v57 = vsel %vm3050_vm1, %v3746_v46, %v3747_v7  ;;  %v3783_v24 = vrot.slane %v5531_v60, 4  ;;  %v3870_v39 = vmax.f32 %v3834_v12, %v3858_v9  ;;  %4505 = vmatpush1.bf16.msra.mxu1 %v6317_v2  ;;  %5618 = vmatprep.subr.bf16.mxu0 %v6323_v43  ;;  %v6324_v15 = vld [vmem:[#allocation11 + $0x98] ss:$12 sps:$4 sm:$0xff]   ;;  %v6327_v60 = vld [vmem:[#allocation11 + $0x34] ss:$12 sps:$4 sm:$0xff]  }
 0x39b   :  { %v3848_v26 = vrot.slane %v3836_v36, 2  ;;  %v3825_v0 = vadd.f32 %v8114_v19, %v3806_v47  ;;  %v3770_v10 = vadd.f32 %v3750_v57, %v3641_v44  ;;  %v3653_v6 = vpop.f32.mrf.mxu1  ;;  %v5533_v4 = vpop.f32.mrf.mxu0  ;;  %5619 = vmatpush3.bf16.msra.mxu0 %v6323_v43  ;;  %4506 = vmatprep.subr.bf16.mxu1 %v6322_v41  ;;  %v6332_v47 = vld [vmem:[#allocation11 + $0x68] ss:$12 sps:$4 sm:$0xff]   ;;  %v6333_v9 = vld [vmem:[#allocation11 + $0x50] ss:$12 sps:$4 sm:$0xff]  }
 0x39c   :  { %v3787_v40 = vsel %vm3785_vm2, %v3782_v8, %v3783_v24  ;;  %v3748_v54 = vrot.slane %v3653_v6, 2  ;;  %v5534_v11 = vadd.f32 %v5533_v4, %v5532_v38  ;;  %v3879_v29 = vpack.c.bf16 %v3870_v39, %v3869_v34  ;;  %5620 = vmatprep.subr.bf16.mxu0 %v6324_v15  ;;  %v6329_v38 = vld [vmem:[#allocation11 + $0x18] ss:$12 sps:$4 sm:$0xff]   ;;  %v6338_v39 = vld [vmem:[#allocation11 + $0x20] ss:$12 sps:$4 sm:$0xff]  }
 0x39d   :  { %v3837_v28 = vmax.f32 %v3825_v0, 0.0  ;;  %v3807_v20 = vadd.f32 %v3787_v40, %v3770_v10  ;;  %v3857_v12 = vsel %vm3050_vm1, %v3847_v25, %v3848_v26  ;;  %v6336_v57 = vld [vmem:[#allocation11 + $0x4] ss:$12 sps:$4 sm:$0xff]  }
 0x39e   :  { %v3749_v33 = vsel %vm3050_vm1, %v3747_v7, %v3748_v54  ;;  %v3760_v56 = vsel %vm3050_vm1, %v3748_v54, %v3737_v23  ;;  %v3784_v35 = vrot.slane %v5534_v11, 4  ;;  %4096 = vmatmul.mubr.bf16.gmra.mxu1 %v3879_v29  ;;  %5610 = vmatprep.mubr.bf16.mxu0 %v3879_v29  ;;  %v3871_v62 = vmax.f32 %v3835_v63, %v3857_v12  ;;  %v6328_v7 = vld [vmem:[#allocation11 + $0x80] ss:$12 sps:$4 sm:$0xff]   ;;  %v6337_v34 = vld [vmem:[#allocation11 + $0x38] ss:$12 sps:$4 sm:$0xff]  }
 0x39f   :  { %v3849_v53 = vrot.slane %v3837_v28, 2  ;;  %v3826_v44 = vadd.f32 %v8114_v19, %v3807_v20  ;;  %v3771_v30 = vadd.f32 %v3749_v33, %v3647_v32  ;;  %v3772_v49 = vadd.f32 %v3760_v56, %v3651_v13  ;;  %4105 = vmatprep.mubr.bf16.mxu1 %v6650_v18  ;;  %5621 = vmatpush3.bf16.msra.mxu0 %v6324_v15  ;;  %v6331_v13 = vld [vmem:[#allocation11 + $0x1c] ss:$12 sps:$4 sm:$0xff]  }
 0x3a0   :  { %v3786_v61 = vsel %vm3785_vm2, %v3783_v24, %v3784_v35  ;;  %v3797_v27 = vsel %vm3785_vm2, %v3784_v35, %v3773_v42  ;;  %5622 = vmatprep.subr.bf16.mxu0 %v6328_v7  ;;  %v6334_v24 = vld [vmem:[#allocation11] ss:$12 sps:$4 sm:$0xff]  }
 0x3a1   :  { %v3838_v23 = vmax.f32 %v3826_v44, 0.0  ;;  %v3808_v14 = vadd.f32 %v3786_v61, %v3771_v30  ;;  %v3809_v31 = vadd.f32 %v3797_v27, %v3772_v49  ;;  %v3856_v51 = vsel %vm3050_vm1, %v3848_v26, %v3849_v53  ;;  %v6339_v26 = vld [vmem:[#allocation11 + $0x8] ss:$12 sps:$4 sm:$0xff]   ;;  %v8238_v49 = vld [vmem:[#allocation10] ss:$0 sm:$0xff] }
 0x3a2   :  { %v3872_v22 = vmax.f32 %v3836_v36, %v3856_v51  ;;  %v6325_v36 = vld [vmem:[#allocation11 + $0x30] ss:$12 sps:$4 sm:$0xff]  }
 0x3a3   :  { %v3850_v17 = vrot.slane %v3838_v23, 2  ;;  %v3827_v48 = vadd.f32 %v8114_v19, %v3808_v14  ;;  %v3828_v3 = vadd.f32 %v8114_v19, %v3809_v31  ;;  %5623 = vmatpush3.bf16.msra.mxu0 %v6328_v7 }
 0x3a4   :  { %v3880_v52 = vpack.c.bf16 %v3872_v22, %v3871_v62  ;;  %5624 = vmatprep.subr.bf16.mxu0 %v6332_v47 }
 0x3a5   :  { %v3839_v46 = vmax.f32 %v3827_v48, 0.0  ;;  %v3840_v45 = vmax.f32 %v3828_v3, 0.0  ;;  %v3855_v55 = vsel %vm3050_vm1, %v3849_v53, %v3850_v17 }
 0x3a6   :  { %4106 = vmatmul.mubr.bf16.gmra.mxu1 %v3880_v52  ;;  %5611 = vmatmul.mubr.bf16.gmra.mxu0 %v3880_v52  ;;  %v3873_v32 = vmax.f32 %v3837_v28, %v3855_v55 }
 0x3a7   :  { %v3851_v5 = vrot.slane %v3839_v46, 2  ;;  %v3852_v42 = vrot.slane %v3840_v45, 2  ;;  %4115 = vmatprep.mubr.bf16.mxu1 %v6650_v18  ;;  %5625 = vmatpush3.bf16.msra.mxu0 %v6332_v47 }
 0x3a8   :  { %5626 = vmatprep.subr.bf16.mxu0 %v6333_v9 }
 0x3a9   :  { %v3854_v63 = vsel %vm3050_vm1, %v3850_v17, %v3851_v5  ;;  %v3853_v37 = vsel %vm3050_vm1, %v3851_v5, %v3852_v42  ;;  %v3864_v19 = vsel %vm3050_vm1, %v3852_v42, %v8129_v59  ;;  %v6320_v59 = vld [vmem:[#allocation11 + $0x48] ss:$12 sps:$4 sm:$0xff]  }
 0x3aa   :  { %v3874_v16 = vmax.f32 %v3838_v23, %v3854_v63  ;;  %v3875_v21 = vmax.f32 %v3839_v46, %v3853_v37  ;;  %v3876_v8 = vmax.f32 %v3840_v45, %v3864_v19  ;;  %4507 = vmatpush1.bf16.msra.mxu1 %v6320_v59 }
 0x3ab   :  { %4508 = vmatprep.subr.bf16.mxu1 %v6327_v60  ;;  %5627 = vmatpush3.bf16.msra.mxu0 %v6333_v9 }
 0x3ac   :  { %v3881_v25 = vpack.c.bf16 %v3874_v16, %v3873_v32  ;;  %v3882_v58 = vpack.c.bf16 %v3876_v8, %v3875_v21  ;;  %5628 = vmatprep.subr.bf16.mxu0 %v6337_v34 }
 0x3ae   :  { %4116 = vmatmul.mubr.bf16.gmra.mxu1 %v3881_v25  ;;  %5614 = vmatprep.mubr.bf16.mxu0 %v3881_v25 }
 0x3af   :  { %5615 = vmatmul.mubr.bf16.gmra.mxu0 %v3882_v58  ;;  %4125 = vmatprep.mubr.bf16.mxu1 %v6650_v18 }
 0x3b0   :  { %4509 = vmatpush1.bf16.msra.mxu1 %v6325_v36  ;;  %5629 = vmatpush3.bf16.msra.mxu0 %v6337_v34 }
 0x3b1   :  { %4510 = vmatprep.subr.bf16.mxu1 %v6331_v13  ;;  %5630 = vmatprep.subr.bf16.mxu0 %v6338_v39 }
 0x3b4   :  { %4511 = vmatpush1.bf16.msra.mxu1 %v6329_v38  ;;  %5631 = vmatpush3.bf16.msra.mxu0 %v6338_v39 }
 0x3b5   :  { %4512 = vmatprep.subr.bf16.mxu1 %v6336_v57  ;;  %5632 = vmatprep.subr.bf16.mxu0 %v6339_v26 }
 0x3b6   :  { %4126 = vmatmul.mubr.bf16.gmra.mxu1 %v3882_v58 }
 0x3b7   :  { %4530 = vmatprep.mubr.bf16.mxu1 %v6650_v18 }
 0x3b8   :  { %4513 = vmatpush1.bf16.msra.mxu1 %v6334_v24  ;;  %5633 = vmatpush3.bf16.msra.mxu0 %v6339_v26 }
 0x448   :  { %v4077_v0 = vpop.f32.mrf.mxu1 }
 0x44a   :  { %v8227_v10 = vpop.f32.mrf.mxu1 }
 0x44b   :  { %v4217_v54 = vrot.slane %v8227_v10, 4 }
 0x44c   :  { %v4081_v6 = vpop.f32.mrf.mxu1 }
 0x44e   :  { %v4083_v4 = vpop.f32.mrf.mxu1 }
 0x44f   :  { %v4218_v40 = vrot.slane %v4083_v4, 4 }
 0x451   :  { %v4239_v33 = vsel %vm3785_vm2, %v4217_v54, %v4218_v40 }
 0x452   :  { %v4241_v44 = vadd.f32 %v4239_v33, %v4077_v0 }
 0x456   :  { %v4087_v11 = vpop.f32.mrf.mxu1  ;;  %v5608_v29 = vpop.f32.mrf.mxu0 }
 0x458   :  { %v4089_v28 = vpop.f32.mrf.mxu1  ;;  %v8230_v20 = vpop.f32.mrf.mxu0 }
 0x459   :  { %v4219_v56 = vrot.slane %v4089_v28, 4 }
 0x45a   :  { %v4091_v35 = vpop.f32.mrf.mxu1  ;;  %v5609_v12 = vpop.f32.mrf.mxu0 }
 0x45b   :  { %v4238_v53 = vsel %vm3785_vm2, %v4218_v40, %v4219_v56 }
 0x45c   :  { %v4242_v30 = vadd.f32 %v4238_v53, %v4081_v6  ;;  %v4093_v61 = vpop.f32.mrf.mxu1  ;;  %v4173_v27 = vpop.f32.mrf.mxu0 }
 0x45d   :  { %v4220_v23 = vrot.slane %v4093_v61, 4  ;;  %v4253_v14 = vadd.f32 %v4241_v44, %v4173_v27 }
 0x45e   :  { %v4254_v31 = vadd.f32 %v5608_v29, %v4242_v30  ;;  %v4097_v51 = vpop.f32.mrf.mxu1 }
 0x45f   :  { %v4237_v62 = vsel %vm3785_vm2, %v4219_v56, %v4220_v23  ;;  %v4272_v22 = vadd.f32 %v8238_v49, %v4253_v14 }
 0x460   :  { %v4273_v17 = vadd.f32 %v8238_v49, %v4254_v31  ;;  %v4243_v48 = vadd.f32 %v4237_v62, %v4087_v11  ;;  %v4099_v3 = vpop.f32.mrf.mxu1 }
 0x461   :  { %v4284_v52 = vmax.f32 %v4272_v22, 0.0  ;;  %v4221_v46 = vrot.slane %v4099_v3, 4 }
 0x462   :  { %v4285_v45 = vmax.f32 %v4273_v17, 0.0  ;;  %v4255_v5 = vadd.f32 %v5609_v12, %v4243_v48  ;;  %v4101_v42 = vpop.f32.mrf.mxu1 }
 0x463   :  { %v8244_v55 = vrot.slane %v4284_v52, 4  ;;  %v4236_v32 = vsel %vm3785_vm2, %v4220_v23, %v4221_v46 }
 0x464   :  { %v8247_v63 = vadd.f32 %v8238_v49, %v4255_v5  ;;  %v4297_v37 = vrot.slane %v4285_v45, 4  ;;  %v4103_v19 = vpop.f32.mrf.mxu1  ;;  %v4244_v2 = vadd.f32 %v4236_v32, %v4091_v35 }
 0x465   :  { %v4222_v16 = vrot.slane %v4103_v19, 4 }
 0x466   :  { %v4286_v21 = vmax.f32 %v8247_v63, 0.0  ;;  %v4107_v8 = vpop.f32.mrf.mxu1  ;;  %v5612_v25 = vpop.f32.mrf.mxu0  ;;  %v4318_v58 = vsel %vm3785_vm2, %v8244_v55, %v4297_v37 }
 0x467   :  { %v4235_v41 = vsel %vm3785_vm2, %v4221_v46, %v4222_v16  ;;  %v4320_v36 = vmax.f32 %v4284_v52, %v4318_v58 }
 0x468   :  { %v4298_v50 = vrot.slane %v4286_v21, 4  ;;  %v4109_v43 = vpop.f32.mrf.mxu1  ;;  %v4186_v59 = vpop.f32.mrf.mxu0  ;;  %v4245_v24 = vadd.f32 %v4235_v41, %v4097_v51 }
 0x469   :  { %v4223_v15 = vrot.slane %v4109_v43, 4  ;;  %v4256_v7 = vadd.f32 %v4244_v2, %v4186_v59 }
 0x46a   :  { %v4317_v60 = vsel %vm3785_vm2, %v4297_v37, %v4298_v50  ;;  %v4111_v47 = vpop.f32.mrf.mxu1  ;;  %v5613_v13 = vpop.f32.mrf.mxu0 }
 0x46b   :  { %v4321_v38 = vmax.f32 %v4285_v45, %v4317_v60  ;;  %v4234_v9 = vsel %vm3785_vm2, %v4222_v16, %v4223_v15  ;;  %v4275_v57 = vadd.f32 %v8238_v49, %v4256_v7 }
 0x46c   :  { %v4246_v34 = vadd.f32 %v4234_v9, %v4101_v42  ;;  %v4113_v39 = vpop.f32.mrf.mxu1  ;;  %v4189_v26 = vpop.f32.mrf.mxu0 }
 0x46d   :  { %v4332_v0 = vpack.c.bf16 %v4321_v38, %v4320_v36  ;;  %v4287_v6 = vmax.f32 %v4275_v57, 0.0  ;;  %v4224_v4 = vrot.slane %v4113_v39, 4  ;;  %v4257_v40 = vadd.f32 %v4245_v24, %v4189_v26 }
 0x46e   :  { %v4258_v11 = vadd.f32 %v5612_v25, %v4246_v34  ;;  %v4117_v29 = vpop.f32.mrf.mxu1 }
 0x46f   :  { %v4299_v28 = vrot.slane %v4287_v6, 4  ;;  %v4233_v33 = vsel %vm3785_vm2, %v4223_v15, %v4224_v4  ;;  %v4276_v56 = vadd.f32 %v8238_v49, %v4257_v40  ;;  %v5616_v35 = vpop.f32.mrf.mxu0  ;;  %4531 = vmatmul.mubr.bf16.vlgmr.msra.gmra.mxu1 %v4332_v0  ;;  %5634 = vmatprep.mubr.bf16.mxu0 %v4332_v0 }
 0x470   :  { %v4277_v12 = vadd.f32 %v8238_v49, %v4258_v11  ;;  %v4247_v53 = vadd.f32 %v4233_v33, %v4107_v8  ;;  %v4119_v44 = vpop.f32.mrf.mxu1  ;;  %4539 = vmatprep.mubr.bf16.mxu1 %v6650_v18 }
 0x471   :  { %v4288_v30 = vmax.f32 %v4276_v56, 0.0  ;;  %v4225_v61 = vrot.slane %v4119_v44, 4  ;;  %v4202_v27 = vpop.f32.mrf.mxu0  ;;  %v4316_v51 = vsel %vm3785_vm2, %v4298_v50, %v4299_v28 }
 0x472   :  { %v4289_v23 = vmax.f32 %v4277_v12, 0.0  ;;  %v4259_v14 = vadd.f32 %v5613_v13, %v4247_v53  ;;  %v4121_v31 = vpop.f32.mrf.mxu1  ;;  %v4322_v19 = vmax.f32 %v4286_v21, %v4316_v51 }
 0x473   :  { %v4300_v62 = vrot.slane %v4288_v30, 4  ;;  %v4232_v22 = vsel %vm3785_vm2, %v4224_v4, %v4225_v61  ;;  %v5617_v45 = vpop.f32.mrf.mxu0 }
 0x474   :  { %v4278_v17 = vadd.f32 %v8238_v49, %v4259_v14  ;;  %v4301_v48 = vrot.slane %v4289_v23, 4  ;;  %v4248_v3 = vadd.f32 %v4232_v22, %v4111_v47  ;;  %v4123_v52 = vpop.f32.mrf.mxu1 }
 0x475   :  { %v4315_v46 = vsel %vm3785_vm2, %v4299_v28, %v4300_v62  ;;  %v4226_v5 = vrot.slane %v4123_v52, 4  ;;  %v4205_v59 = vpop.f32.mrf.mxu0 }
 0x476   :  { %v4290_v42 = vmax.f32 %v4278_v17, 0.0  ;;  %v4260_v63 = vadd.f32 %v4248_v3, %v4202_v27  ;;  %v4127_v37 = vpop.f32.mrf.mxu1  ;;  %v4323_v32 = vmax.f32 %v4287_v6, %v4315_v46  ;;  %v4314_v16 = vsel %vm3785_vm2, %v4300_v62, %v4301_v48 }
 0x477   :  { %v4231_v8 = vsel %vm3785_vm2, %v4225_v61, %v4226_v5  ;;  %v4324_v36 = vmax.f32 %v4288_v30, %v4314_v16  ;;  %v6348_v16 = vld [vmem:[#allocation14 + $0x20] sm:$0xff]  }
 0x478   :  { %v4302_v25 = vrot.slane %v4290_v42, 4  ;;  %v4279_v58 = vadd.f32 %v8238_v49, %v4260_v63  ;;  %v4249_v2 = vadd.f32 %v4231_v8, %v4117_v29  ;;  %v4129_v50 = vpop.f32.mrf.mxu1  ;;  %v4333_v43 = vpack.c.bf16 %v4323_v32, %v4322_v19  ;;  %v6343_v63 = vld [vmem:[#allocation14 + $0x38] sm:$0xff]   ;;  %v6346_v19 = vld [vmem:[#allocation14 + $0x28] sm:$0xff]  }
 0x479   :  { %v4227_v41 = vrot.slane %v4129_v50, 4  ;;  %v6347_v32 = vld [vmem:[#allocation14 + $0x58] sm:$0xff]   ;;  %v6352_v50 = vld [vmem:[#allocation14 + $0x48] sm:$0xff]  }
 0x47a   :  { %v4291_v15 = vmax.f32 %v4279_v58, 0.0  ;;  %v4261_v7 = vadd.f32 %v4249_v2, %v4205_v59  ;;  %v4131_v60 = vpop.f32.mrf.mxu1  ;;  %4540 = vmatmul.mubr.bf16.gmra.mxu1 %v4333_v43  ;;  %5635 = vmatmul.mubr.bf16.vlgmr.msra.gmra.mxu0 %v4333_v43  ;;  %v4313_v21 = vsel %vm3785_vm2, %v4301_v48, %v4302_v25  ;;  %v6349_v8 = vld [vmem:[#allocation14 + $0x18] sm:$0xff]   ;;  %v6351_v58 = vld [vmem:[#allocation14 + $0x10] sm:$0xff]   ;;  %v6353_v2 = vld [vmem:[#allocation14 + $0x8] sm:$0xff]  }
 0x47b   :  { %v4230_v47 = vsel %vm3785_vm2, %v4226_v5, %v4227_v41  ;;  %v4325_v13 = vmax.f32 %v4289_v23, %v4313_v21  ;;  %4546 = vmatprep.mubr.bf16.mxu1 %v6650_v18  ;;  %v6340_v5 = vld [vmem:[#allocation14 + $0x78] sm:$0xff]   ;;  %v6354_v43 = vld [vmem:[#allocation14] sm:$0xff]  }
 0x47c   :  { %v4303_v38 = vrot.slane %v4291_v15, 4  ;;  %v4280_v9 = vadd.f32 %v8238_v49, %v4261_v7  ;;  %v4250_v57 = vadd.f32 %v4230_v47, %v4121_v31  ;;  %v4133_v24 = vpop.f32.mrf.mxu1  ;;  %v6355_v59 = vld [vmem:[#allocation14 + $0x40] sm:$0xff]  }
 0x47d   :  { %v4228_v34 = vrot.slane %v4133_v24, 4  ;;  %v4334_v39 = vpack.c.bf16 %v4325_v13, %v4324_v36 }
 0x47e   :  { %v4292_v26 = vmax.f32 %v4280_v9, 0.0  ;;  %v4262_v0 = vadd.f32 %v5616_v35, %v4250_v57  ;;  %v4312_v6 = vsel %vm3785_vm2, %v4302_v25, %v4303_v38  ;;  %v6350_v25 = vld [vmem:[#allocation14 + $0x50] sm:$0xff]  }
 0x47f   :  { %v4229_v4 = vsel %vm3785_vm2, %v4227_v41, %v4228_v34  ;;  %v4240_v40 = vsel %vm3785_vm2, %v4228_v34, %v4217_v54  ;;  %5638 = vmatprep.mubr.bf16.mxu0 %v4334_v39  ;;  %v4326_v44 = vmax.f32 %v4290_v42, %v4312_v6  ;;  %v6651_v42 = vmov 0.0  }
 0x480   :  { %v4304_v11 = vrot.slane %v4292_v26, 4  ;;  %v4251_v29 = vadd.f32 %v4229_v4, %v4127_v37  ;;  %v4252_v28 = vadd.f32 %v4240_v40, %v4131_v60  ;;  %v4281_v33 = vadd.f32 %v8238_v49, %v4262_v0  ;;  %5646 = vmatprep.subr.bf16.mxu1 %v6651_v42  ;;  %5666 = vmatprep.subr.bf16.mxu0 %v6651_v42  ;;  %v6344_v37 = vld [vmem:[#allocation14 + $0x30] sm:$0xff]  }
 0x481   :  { %5647 = vmatpush3.bf16.msra.mxu1 %v6340_v5  ;;  %5667 = vmatpush3.bf16.msra.mxu0 %v6343_v63 }
 0x482   :  { %v4311_v56 = vsel %vm3785_vm2, %v4303_v38, %v4304_v11  ;;  %v4263_v35 = vadd.f32 %v5617_v45, %v4251_v29  ;;  %v4264_v12 = vadd.f32 %v4252_v28, %v8230_v20  ;;  %4547 = vmatmul.mubr.bf16.gmra.mxu1 %v4334_v39  ;;  %v4293_v53 = vmax.f32 %v4281_v33, 0.0  ;;  %5648 = vmatprep.subr.bf16.mxu1 %v6651_v42 }
 0x483   :  { %v4327_v30 = vmax.f32 %v4291_v15, %v4311_v56  ;;  %4552 = vmatprep.mubr.bf16.mxu1 %v6650_v18  ;;  %5668 = vmatprep.subr.bf16.mxu0 %v6651_v42 }
 0x484   :  { %v4282_v10 = vadd.f32 %v8238_v49, %v4263_v35  ;;  %v4283_v54 = vadd.f32 %v8238_v49, %v4264_v12  ;;  %v4305_v61 = vrot.slane %v4293_v53, 4 }
 0x485   :  { %v4335_v27 = vpack.c.bf16 %v4327_v30, %v4326_v44  ;;  %5649 = vmatpush3.bf16.msra.mxu1 %v6341_v1  ;;  %5669 = vmatpush3.bf16.msra.mxu0 %v6344_v37 }
 0x486   :  { %v4294_v23 = vmax.f32 %v4282_v10, 0.0  ;;  %v4295_v14 = vmax.f32 %v4283_v54, 0.0  ;;  %v4310_v20 = vsel %vm3785_vm2, %v4304_v11, %v4305_v61  ;;  %5650 = vmatprep.subr.bf16.mxu1 %v6651_v42  ;;  %5670 = vmatprep.subr.bf16.mxu0 %v6651_v42  ;;  %v5456_v10 = vld [vmem:[#allocation13] ss:$0 sm:$0xff] }
 0x487   :  { %5639 = vmatmul.mubr.bf16.gmra.mxu0 %v4335_v27  ;;  %v4328_v17 = vmax.f32 %v4292_v26, %v4310_v20 }
 0x488   :  { %v4307_v31 = vrot.slane %v4295_v14, 4  ;;  %v4306_v51 = vrot.slane %v4294_v23, 4 }
 0x489   :  { %5671 = vmatpush3.bf16.msra.mxu0 %v6346_v19 }
 0x48a   :  { %4553 = vmatmul.mubr.bf16.gmra.mxu1 %v4335_v27  ;;  %v4309_v62 = vsel %vm3785_vm2, %v4305_v61, %v4306_v51  ;;  %v4308_v22 = vsel %vm3785_vm2, %v4306_v51, %v4307_v31  ;;  %v4319_v49 = vsel %vm3785_vm2, %v4307_v31, %v8244_v55  ;;  %v6342_v55 = vld [vmem:[#allocation14 + $0x68] sm:$0xff]   ;;  %5672 = vmatprep.subr.bf16.mxu0 %v6651_v42 }
 0x48b   :  { %v4329_v48 = vmax.f32 %v4293_v53, %v4309_v62  ;;  %v4330_v3 = vmax.f32 %v4294_v23, %v4308_v22  ;;  %v4331_v52 = vmax.f32 %v4295_v14, %v4319_v49  ;;  %4561 = vmatprep.mubr.bf16.mxu1 %v6650_v18  ;;  %5651 = vmatpush3.bf16.msra.mxu1 %v6342_v55 }
 0x48c   :  { %5652 = vmatprep.subr.bf16.mxu1 %v6651_v42 }
 0x48d   :  { %v4336_v46 = vpack.c.bf16 %v4329_v48, %v4328_v17  ;;  %v4337_v45 = vpack.c.bf16 %v4331_v52, %v4330_v3  ;;  %5673 = vmatpush3.bf16.msra.mxu0 %v6348_v16 }
 0x48e   :  { %5674 = vmatprep.subr.bf16.mxu0 %v6651_v42 }
 0x48f   :  { %5642 = vmatprep.mubr.bf16.mxu0 %v4336_v46 }
 0x490   :  { %5643 = vmatmul.mubr.bf16.gmra.mxu0 %v4337_v45 }
 0x491   :  { %5675 = vmatpush3.bf16.msra.mxu0 %v6349_v8  ;;  %5682 = vmatprep.mubr.msk.bf16.mxu0 %vm6652_vm3, %v6651_v42 }
 0x492   :  { %4562 = vmatmul.mubr.bf16.gmra.mxu1 %v4336_v46  ;;  %5676 = vmatprep.subr.bf16.mxu0 %v6651_v42 }
 0x493   :  { %4568 = vmatprep.mubr.bf16.mxu1 %v6650_v18  ;;  %v6345_v18 = vld [vmem:[#allocation14 + $0x60] sm:$0xff]  }
 0x494   :  { %5653 = vmatpush3.bf16.msra.mxu1 %v6345_v18 }
 0x495   :  { %5654 = vmatprep.subr.bf16.mxu1 %v6651_v42  ;;  %5677 = vmatpush3.bf16.msra.mxu0 %v6351_v58 }
 0x496   :  { %5678 = vmatprep.subr.bf16.mxu0 %v6651_v42 }
 0x498   :  { %5655 = vmatpush3.bf16.msra.mxu1 %v6347_v32 }
 0x499   :  { %5656 = vmatprep.subr.bf16.mxu1 %v6651_v42  ;;  %5679 = vmatpush3.bf16.msra.mxu0 %v6353_v2 }
 0x49a   :  { %4569 = vmatmul.mubr.bf16.gmra.mxu1 %v4337_v45  ;;  %5680 = vmatprep.subr.bf16.mxu0 %v6651_v42 }
 0x49b   :  { %5662 = vmatprep.mubr.msk.bf16.mxu1 %vm6652_vm3, %v6651_v42 }
 0x49c   :  { %5657 = vmatpush3.bf16.msra.mxu1 %v6350_v25  ;;  %v6356_v25 = vld [vmem:[%s8379_s11 + $0x38] sm:$0xff]  }
 0x49d   :  { %5658 = vmatprep.subr.bf16.mxu1 %v6651_v42  ;;  %5681 = vmatpush3.bf16.msra.mxu0 %v6354_v43  ;;  %v6358_v43 = vld [vmem:[%s8379_s11 + $0x28] sm:$0xff]  }
 0x4a0   :  { %5659 = vmatpush3.bf16.msra.mxu1 %v6352_v50  ;;  %v6357_v50 = vld [vmem:[%s8379_s11 + $0x30] sm:$0xff]  }
 0x4a1   :  { %5660 = vmatprep.subr.bf16.mxu1 %v6651_v42 }
 0x4a4   :  { %5661 = vmatpush3.bf16.msra.mxu1 %v6355_v59  ;;  %v6359_v59 = vld [vmem:[%s8379_s11 + $0x20] sm:$0xff]  }
 0x4a5   :  { %5686 = vmatprep.subr.bf16.mxu1 %v6651_v42 }
 0x52f   :  { %v4532_v41 = vpop.f32.mrf.mxu1 }
 0x531   :  { %v4534_v15 = vpop.f32.mrf.mxu1 }
 0x532   :  { %v6361_v15 = vld [vmem:[%s8379_s11 + $0x10] sm:$0xff]  }
 0x533   :  { %v4535_v7 = vpop.f32.mrf.mxu1 }
 0x535   :  { %v4537_v60 = vpop.f32.mrf.mxu1 }
 0x536   :  { %v4648_v56 = vadd.f32 %v4537_v60, %v4532_v41  ;;  %v6360_v41 = vld [vmem:[%s8379_s11 + $0x18] sm:$0xff]   ;;  %v6363_v60 = vld [vmem:[%s8379_s11] sm:$0xff]  }
 0x53a   :  { %v4541_v21 = vpop.f32.mrf.mxu1  ;;  %v5636_v36 = vpop.f32.mrf.mxu0 }
 0x53b   :  { %v4652_v53 = vadd.f32 %v5636_v36, %v4648_v56 }
 0x53c   :  { %v4542_v47 = vpop.f32.mrf.mxu1  ;;  %v4609_v13 = vpop.f32.mrf.mxu0 }
 0x53d   :  { %v4649_v44 = vadd.f32 %v4542_v47, %v4535_v7  ;;  %v4663_v31 = vadd.f32 %v5456_v10, %v4652_v53  ;;  %v6362_v7 = vld [vmem:[%s8379_s11 + $0x8] sm:$0xff]   ;;  %s5020_s11 = sshll.u32 %s6653_s5, 4  ;;  %s5021_s11 = int_to_ptr.vmem [resolvable:$true] %s5020_s11 }
 0x53e   :  { %v4544_v38 = vpop.f32.mrf.mxu1  ;;  %v5637_v9 = vpop.f32.mrf.mxu0  ;;  %v5473_v13 = vld [vmem:[#allocation16] ss:$0 sm:$0xff]  ;;  %s6600_s27 = scalar_lea.vmem %s5021_s11, 32  ;;  %p6605_p9 = scmp.lt.s32.totalorder %s5021_s11, %s5021_s11 }
 0x53f   :  { %v4653_v51 = vadd.f32 %v5637_v9, %v4649_v44  ;;  %v4667_v52 = vmax.f32 %v4663_v31, 0.0  ;;  %p6601_p8 = scmp.ne.s32.totalorder %s5021_s11, %s6600_s27  ;;  %p6606_p10 = scmp.lt.s32.totalorder %s6600_s27, %s6600_s27 }
 0x540   :  { %v4545_v57 = vpop.f32.mrf.mxu1  ;;  %v4611_v24 = vpop.f32.mrf.mxu0 }
 0x541   :  { %v4664_v46 = vadd.f32 %v5456_v10, %v4653_v51  ;;  %p6607_p11 = por %p6606_p10, %p6605_p9 }
 0x542   :  { %v4548_v34 = vpop.f32.mrf.mxu1 }
 0x543   :  { %v4668_v19 = vmax.f32 %v4664_v46, 0.0  ;;  %p6608_p12 = pnand %p6607_p11, %p6601_p8 }
 0x544   :  { %v4549_v39 = vpop.f32.mrf.mxu1 }
 0x546   :  { %v4550_v26 = vpop.f32.mrf.mxu1 }
 0x547   :  { %v5640_v0 = vpop.f32.mrf.mxu0 }
 0x548   :  { %v4551_v6 = vpop.f32.mrf.mxu1 }
 0x549   :  { %v4623_v4 = vpop.f32.mrf.mxu0 }
 0x54a   :  { %v4554_v40 = vpop.f32.mrf.mxu1  ;;  %v5474_v4 = vld [vmem:[#allocation17] ss:$0 sm:$0xff] }
 0x54b   :  { %v5641_v11 = vpop.f32.mrf.mxu0 }
 0x54c   :  { %v4556_v29 = vpop.f32.mrf.mxu1 }
 0x54d   :  { %v4625_v28 = vpop.f32.mrf.mxu0 }
 0x54e   :  { %v4557_v33 = vpop.f32.mrf.mxu1 }
 0x550   :  { %v4559_v35 = vpop.f32.mrf.mxu1  ;;  %v5644_v12 = vpop.f32.mrf.mxu0 }
 0x551   :  { %v4650_v30 = vadd.f32 %v4559_v35, %v4554_v40 }
 0x552   :  { %v4563_v54 = vpop.f32.mrf.mxu1  ;;  %v4635_v61 = vpop.f32.mrf.mxu0 }
 0x553   :  { %v4654_v27 = vadd.f32 %v4650_v30, %v4635_v61 }
 0x554   :  { %v4564_v23 = vpop.f32.mrf.mxu1  ;;  %v5645_v14 = vpop.f32.mrf.mxu0 }
 0x555   :  { %v4665_v20 = vadd.f32 %v5456_v10, %v4654_v27  ;;  %v4651_v62 = vadd.f32 %v4564_v23, %v4557_v33 }
 0x556   :  { %v4566_v22 = vpop.f32.mrf.mxu1  ;;  %v4638_v49 = vpop.f32.mrf.mxu0 }
 0x557   :  { %v4669_v17 = vmax.f32 %v4665_v20, 0.0  ;;  %v4655_v48 = vadd.f32 %v4651_v62, %v4638_v49 }
 0x558   :  { %v4567_v3 = vpop.f32.mrf.mxu1 }
 0x559   :  { %v4672_v45 = vrot.slane %v4669_v17, 7  ;;  %v4666_v5 = vadd.f32 %v5456_v10, %v4655_v48 }
 0x55a   :  { %v4570_v1 = vpop.f32.mrf.mxu1 }
 0x55b   :  { %v4675_v55 = vsel %vm4674_vm4, %v4667_v52, %v4672_v45  ;;  %v4670_v63 = vmax.f32 %v4666_v5, 0.0 }
 0x55c   :  { %v4680_v37 = vpack.c.bf16 %v4675_v55, %v4675_v55  ;;  %v4571_v18 = vpop.f32.mrf.mxu1 }
 0x55d   :  { %v4677_v32 = vrot.slane %v4670_v63, 7 }
 0x55e   :  { %v4572_v16 = vpop.f32.mrf.mxu1  ;;  %5683 = vmatmul.mubr.bf16.vlgmr.msra.gmra.mxu0 %v4680_v37 }
 0x55f   :  { %v4679_v8 = vsel %vm4674_vm4, %v4668_v19, %v4677_v32 }
 0x560   :  { %v4697_v58 = vpack.c.bf16 %v4679_v8, %v4679_v8  ;;  %v4573_v2 = vpop.f32.mrf.mxu1 }
 0x562   :  { %5663 = vmatmul.mubr.bf16.vlgmr.msra.gmra.mxu1 %v4697_v58 }
 0x563   :  { %5687 = vmatpush3.bf16.msra.mxu1 %v6356_v25  ;;  %5702 = vmatprep.mubr.msk.bf16.mxu1 %vm6652_vm3, %v6651_v42 }
 0x564   :  { %5688 = vmatprep.subr.bf16.mxu1 %v6651_v42 }
 0x567   :  { %5689 = vmatpush3.bf16.msra.mxu1 %v6357_v50 }
 0x568   :  { %5690 = vmatprep.subr.bf16.mxu1 %v6651_v42 }
 0x56b   :  { %5691 = vmatpush3.bf16.msra.mxu1 %v6358_v43 }
 0x56c   :  { %5692 = vmatprep.subr.bf16.mxu1 %v6651_v42 }
 0x56f   :  { %5693 = vmatpush3.bf16.msra.mxu1 %v6359_v59 }
 0x570   :  { %5694 = vmatprep.subr.bf16.mxu1 %v6651_v42 }
 0x573   :  { %5695 = vmatpush3.bf16.msra.mxu1 %v6360_v41 }
 0x574   :  { %5696 = vmatprep.subr.bf16.mxu1 %v6651_v42 }
 0x577   :  { %5697 = vmatpush3.bf16.msra.mxu1 %v6361_v15 }
 0x578   :  { %5698 = vmatprep.subr.bf16.mxu1 %v6651_v42 }
 0x57b   :  { %5699 = vmatpush3.bf16.msra.mxu1 %v6362_v7 }
 0x57c   :  { %5700 = vmatprep.subr.bf16.mxu1 %v6651_v42 }
 0x57f   :  { %5701 = vmatpush3.bf16.msra.mxu1 %v6363_v60 }
 0x61e   :  { %v4885_v21 = vpop.f32.mrf.mxu0 }
 0x620   :  { %v5684_v36 = vpop.f32.mrf.mxu0 }
 0x622   :  { %v4797_v47 = vpop.f32.mrf.mxu1  ;;  %v4888_v38 = vpop.f32.mrf.mxu0 }
 0x623   :  { %v4886_v9 = vadd.f32 %v4885_v21, %v4797_v47 }
 0x624   :  { %v5664_v57 = vpop.f32.mrf.mxu1  ;;  %v5685_v24 = vpop.f32.mrf.mxu0 }
 0x625   :  { %v4898_v34 = vadd.f32 %v5473_v13, %v4886_v9 }
 0x626   :  { %v4800_v39 = vpop.f32.mrf.mxu1 }
 0x627   :  { %v4899_v26 = vmax.f32 %v4898_v34, 0.0 }
 0x628   :  { %v5665_v0 = vpop.f32.mrf.mxu1 }
 0x629   :  { %v4900_v6 = vpack.c.bf16 %v4899_v26, %v4899_v26 }
 0x62b   :  { %5703 = vmatmul.mubr.bf16.vlgmr.msra.gmra.mxu1 %v4900_v6 }
 0x6eb   :  { %v5006_v40 = vpop.f32.mrf.mxu1 }
 0x6ec   :  { %v5007_v42 = vadd.f32 %v5474_v4, %v5006_v40 }
 0x6ed   :  { %v5704_v11 = vpop.f32.mrf.mxu1 }
 0x6ee   :  { %5013 = vst.msk [vmem:[#allocation19] sm:$0x3] %vm5012_vm5, %v5007_v42 }
 0x6ef   :  { %v5009_v29 = vpop.f32.mrf.mxu1 }
 0x6f0   :  { %6611 = shalt.err (!%p6608_p12)
}
 0x6f1   :  { %5023 = dma.vmem_to_hbm [thread:$0]  %s5021_s11, 32, %s8381_s13, [#allocation4]   ;;  %v5705_v28 = vpop.f32.mrf.mxu1 }
 0x6f2   :  { %6632 = dma.done.wait [#allocation4], 32  }
 0x6f3   :  { %6633 = vsyncadd [#allocation4], 4294967264 }
 0x6f4   :  { %5027 = vsyncpa [#allocation3], 1 }
 0x6f5   :  { %5028 = vsyncpa [#allocation6], 1 }
 0x6f6   :  { %5029 = vsyncpa [#allocation9], 1 }
 0x6f7   :  { %5030 = vsyncpa [#allocation12], 1 }
 0x6f8   :  { %5031 = vsyncpa [#allocation15], 1 }
 0x6f9   :  { %5032 = vsyncpa [#allocation18], 1 }
 0x6fa   :  { %5033 = vsyncpa [#allocation4], 1 }

</bundles_post_ra>
